<compile_context>
chip_gen: v5e
topology: v5e:2x2
jax: 0.10.0
libtpu: 0.0.40
codegen_flags: <defaults>
</compile_context>

<pallas_src>
import functools

import numpy as np
import jax
import jax.numpy as jnp
from jax import lax
from jax.experimental import pallas as pl
from jax.experimental.pallas import tpu as pltpu


# ---------------------------------------------------------------------------
# Small helpers used inside the kernels.
# ---------------------------------------------------------------------------
def _zero_boundary_halo_rows(y, band_idx, num_bands, bh):
    """Zero the top/bottom halo row when the band touches the image edge.

    This reproduces the conv's zero padding along H without building a padded copy.
    y: (bh+2, W, C) f32.
    """
    row = lax.broadcasted_iota(jnp.int32, (bh + 2, 1, 1), 0)
    keep = jnp.logical_and(
        jnp.logical_or(band_idx > 0, row != 0),
        jnp.logical_or(band_idx < num_bands - 1, row != bh + 1))
    return jnp.where(keep, y, 0.0)


def _band_conv3x3(y_pad, w_ref, xw_ref, *, bh, W, Ci, cdt, concat_kw):
    """3x3 conv over one H-band.

    y_pad:  (bh+2, W, Ci) f32; rows 0 and bh+1 are halo rows (already zeroed at the
            image boundary, i.e. they ARE the zero H padding).
    w_ref:  (3, 3*Ci, Co) weights (compute dtype); rows per kh tap ordered (kw, ci).
    xw_ref: (bh+2, W, 3*Ci) VMEM scratch (compute dtype) for the small-Ci concat path,
            or None for the per-tap path.
    Returns (bh*W, Co) f32 accumulator (no bias).
    """
    f32 = jnp.float32
    # Circular W padding in-register via XLU rotates.  Rolls stay f32 (portable across
    # Mosaic versions); everything downstream (concat scratch, matmul operands) is cdt.
    left = pltpu.roll(y_pad, shift=1, axis=1)        # column w-1 (wraps)
    right = pltpu.roll(y_pad, shift=W - 1, axis=1)   # column w+1 (wraps)

    if concat_kw:
        # Small Ci: deepen the MXU contraction to K = 3*Ci.  The concat is written once
        # to a bf16 VMEM scratch; the per-kh dots read row views of that scratch (no
        # per-kh activation-sized value copies, no separate zero-padded xp buffer).
        xw_ref[...] = jnp.concatenate(
            [left.astype(cdt), y_pad.astype(cdt), right.astype(cdt)], axis=-1)
        acc = jnp.dot(xw_ref[0:bh, :, :].reshape(bh * W, 3 * Ci), w_ref[0],
                      preferred_element_type=f32)
        acc = acc + jnp.dot(xw_ref[1:bh + 1, :, :].reshape(bh * W, 3 * Ci), w_ref[1],
                            preferred_element_type=f32)
        acc = acc + jnp.dot(xw_ref[2:bh + 2, :, :].reshape(bh * W, 3 * Ci), w_ref[2],
                            preferred_element_type=f32)
        return acc

    # Large Ci (already fills the MXU depth): per-tap K=Ci dots, no 3*Ci-wide buffers.
    parts = tuple(a.astype(cdt) for a in (left, y_pad, right))     # kw = 0, 1, 2
    acc = None
    for kh in range(3):
        for j, t in enumerate(parts):
            d = jnp.dot(t[kh:kh + bh].reshape(bh * W, Ci),
                        w_ref[kh, j * Ci:(j + 1) * Ci, :],
                        preferred_element_type=f32)
            acc = d if acc is None else acc + d
    return acc


# ---------------------------------------------------------------------------
# Stage 1 kernel: GN1-affine + SiLU -> conv1 + (bias + temb row).
# ---------------------------------------------------------------------------
def _stage1_kernel(xb_ref, xt_ref, xbm_ref, s1_ref, b1_ref, trow_ref, w1_ref,
                   h1_ref, *scratch, bh, W, concat_kw, cdt):
    f32 = jnp.float32
    b = pl.program_id(1)
    nb = pl.num_programs(1)
    Cin = xb_ref.shape[-1]
    Cp = h1_ref.shape[-1]

    # Band plus one halo row on each side (rows delivered by the BlockSpecs).
    x = jnp.concatenate([xt_ref[0], xb_ref[0], xbm_ref[0]], axis=0).astype(f32)

    # GroupNorm(32, Cin) as a per-channel affine (stats precomputed per image by the
    # XLA pre-pass) followed by SiLU; elementwise math stays f32.
    y = x * s1_ref[0] + b1_ref[0]
    y = y * jax.nn.sigmoid(y)
    y = _zero_boundary_halo_rows(y, b, nb, bh)

    acc = _band_conv3x3(y, w1_ref, scratch[0] if concat_kw else None,
                        bh=bh, W=W, Ci=Cin, cdt=cdt, concat_kw=concat_kw)
    acc = acc + trow_ref[0].astype(f32)        # conv1 bias + temb projection (pre-folded)
    h1_ref[0] = acc.reshape(bh, W, Cp).astype(h1_ref.dtype)


# ---------------------------------------------------------------------------
# Stage 2 kernel: GN2-affine + SiLU -> conv2 + bias -> shortcut + residual.
# ---------------------------------------------------------------------------
def _stage2_kernel(hb_ref, ht_ref, hbm_ref, s2_ref, b2_ref, w2_ref, cb2_ref,
                   xb_ref, *rest, bh, W, concat_kw, has_nin, cdt):
    if has_nin:
        ninw_ref, ninb_ref, o_ref, *scratch = rest
    else:
        o_ref, *scratch = rest
        ninw_ref = ninb_ref = None
    f32 = jnp.float32
    b = pl.program_id(1)
    nb = pl.num_programs(1)
    Cin = xb_ref.shape[-1]
    Cp = o_ref.shape[-1]

    h = jnp.concatenate([ht_ref[0], hb_ref[0], hbm_ref[0]], axis=0).astype(f32)
    y = h * s2_ref[0] + b2_ref[0]
    y = y * jax.nn.sigmoid(y)
    # TODO(synk): training-mode dropout would mask y here; eval mode => identity.
    y = _zero_boundary_halo_rows(y, b, nb, bh)

    acc = _band_conv3x3(y, w2_ref, scratch[0] if concat_kw else None,
                        bh=bh, W=W, Ci=Cp, cdt=cdt, concat_kw=concat_kw)
    acc = acc + cb2_ref[...].astype(f32)

    # Shortcut (1x1 conv if Cin != Cout, identity otherwise) fused with the residual.
    xb = xb_ref[0].reshape(bh * W, Cin)
    if has_nin:
        res = jnp.dot(xb.astype(cdt), ninw_ref[...], preferred_element_type=f32)
        res = res + ninb_ref[...].astype(f32)
    else:
        res = xb.astype(f32)
        if Cp > Cin:
            res = jnp.concatenate(
                [res, jnp.zeros((bh * W, Cp - Cin), f32)], axis=-1)
    o_ref[0] = (res + acc).reshape(bh, W, Cp).astype(o_ref.dtype)


# ---------------------------------------------------------------------------
# XLA pre-pass: per-image GroupNorm stats -> per-channel (scale, shift).
# ---------------------------------------------------------------------------
def _gn_affine(x_nhwc, gamma, beta, num_groups, eps):
    """Two-pass mean/var (jnp.var centres first -> no E[x^2]-E[x]^2 cancellation)."""
    N, H, W, C = x_nhwc.shape
    cg = C // num_groups
    xg = x_nhwc.astype(jnp.float32).reshape(N, H * W, num_groups, cg)
    mean = xg.mean(axis=(1, 3))                               # (N, G)
    var = xg.var(axis=(1, 3))                                 # (N, G)
    rstd = lax.rsqrt(var + eps)
    mean_c = jnp.repeat(mean, cg, axis=1)                     # (N, C)
    rstd_c = jnp.repeat(rstd, cg, axis=1)                     # (N, C)
    scale = rstd_c * gamma.astype(jnp.float32)[None, :]
    shift = beta.astype(jnp.float32)[None, :] - mean_c * scale
    return scale, shift


def _pick_band_rows(H, W, row_bytes, vmem_budget=8 << 20):
    """Rows per H-band: largest divisor of H whose working set fits the VMEM budget,
    preferring >=2 bands so the 'parallel' band axis feeds both v7x TensorCores."""
    per_row = max(1, W * row_bytes * 6)                       # ~6 live band-row temps
    target = max(1, vmem_budget // per_row)
    divs = [d for d in range(1, H + 1) if H % d == 0]
    fit = [d for d in divs if d <= target] or [1]
    best = fit[-1]
    if best == H and len(fit) > 1:
        best = fit[-2]
    return best


# ---------------------------------------------------------------------------
# ResnetBlock forward wrapper (PyTorch-style NCHW I/O).
# ---------------------------------------------------------------------------
def resnet_block_forward(params, x_nchw, temb, *, num_groups=32, eps=1e-6,
                         compute_dtype=jnp.bfloat16, lane_pad=True,
                         vmem_limit_bytes=48 * 1024 * 1024):
    f32 = jnp.float32
    cdt = compute_dtype
    G = num_groups

    # NOTE(perf): keeping activations NHWC across consecutive ResnetBlocks would avoid
    # these two full-size HBM transposes; kept only for PyTorch NCHW interface parity.
    x = jnp.transpose(x_nchw, (0, 2, 3, 1)).astype(f32)       # (N, H, W, Cin)
    N, H, W, Cin = x.shape
    Cout = params["conv1_w"].shape[-1]
    has_nin = Cin != Cout
    # TODO(synk): use_conv_shortcut=True (3x3 shortcut conv) variant not implemented.

    # Lane-dense outputs: pad output channels up to 128 so stores are unmasked vst.
    Cp = max(Cout, 128) if lane_pad else Cout

    def padc(a, width, axis=-1):
        if a.shape[axis] == width:
            return a
        pads = [(0, 0)] * a.ndim
        pads[axis] = (0, width - a.shape[axis])
        return jnp.pad(a, pads)

    # ---- XLA pre-pass: GN1 stats + temb projection folded with conv1 bias ----------
    scale1, shift1 = _gn_affine(x, params["norm1_g"], params["norm1_b"], G, eps)
    t = temb.astype(f32) * jax.nn.sigmoid(temb.astype(f32))
    trow = t @ params["temb_w"].astype(f32) + params["temb_b"] + params["conv1_b"]
    trow = padc(trow.astype(f32), Cp).reshape(N, 1, Cp)       # (N, 1, Cp)

    # Conv weights: the three kw taps stack along the contraction dim per kh tap.
    w1 = padc(params["conv1_w"], Cp).reshape(3, 3 * Cin, Cp).astype(cdt)
    w2 = padc(padc(params["conv2_w"], Cp, axis=-1), Cp, axis=-2)
    w2 = w2.reshape(3, 3 * Cp, Cp).astype(cdt)
    cb2 = padc(params["conv2_b"].reshape(1, Cout).astype(f32), Cp)

    bh = _pick_band_rows(H, W, 4 * 3 * max(Cin, Cp),
                         vmem_budget=vmem_limit_bytes // 6)
    nb = H // bh

    cparams = pltpu.CompilerParams(
        dimension_semantics=("parallel", "parallel"),
        vmem_limit_bytes=vmem_limit_bytes)

    def band_spec(C):
        return pl.BlockSpec((1, bh, W, C), lambda n, b: (n, b, 0, 0))

    def halo_specs(C):
        # 1-row halos above/below the band (block size 1 along H => block idx == row).
        # Clamped at the image edge; the kernel zeroes them there (= zero H padding).
        top = pl.BlockSpec((1, 1, W, C),
                           lambda n, b: (n, jnp.maximum(b * bh - 1, 0), 0, 0))
        bot = pl.BlockSpec((1, 1, W, C),
                           lambda n, b: (n, jnp.minimum((b + 1) * bh, H - 1), 0, 0))
        return top, bot

    def row_spec(C):
        return pl.BlockSpec((1, 1, C), lambda n, b: (n, 0, 0))

    # ---------------- stage 1: GN1 + SiLU -> conv1 (+ bias + temb row) --------------
    concat1 = Cin < 128
    top1, bot1 = halo_specs(Cin)
    scratch1 = [pltpu.VMEM((bh + 2, W, 3 * Cin), cdt)] if concat1 else []
    h1 = pl.pallas_call(
        functools.partial(_stage1_kernel, bh=bh, W=W, concat_kw=concat1, cdt=cdt),
        out_shape=jax.ShapeDtypeStruct((N, H, W, Cp), f32),
        grid_spec=pltpu.PrefetchScalarGridSpec(
            num_scalar_prefetch=0,
            grid=(N, nb),
            in_specs=[band_spec(Cin), top1, bot1,
                      row_spec(Cin), row_spec(Cin), row_spec(Cp),
                      pl.BlockSpec((3, 3 * Cin, Cp), lambda n, b: (0, 0, 0))],
            out_specs=band_spec(Cp),
            scratch_shapes=scratch1),
        compiler_params=cparams,
    )(x, x, x,
      scale1.reshape(N, 1, Cin), shift1.reshape(N, 1, Cin), trow, w1)

    # ---- XLA pre-pass: GN2 stats on the conv1 output (true channels only) ----------
    h1_true = h1[..., :Cout] if Cp != Cout else h1
    scale2, shift2 = _gn_affine(h1_true, params["norm2_g"], params["norm2_b"], G, eps)
    scale2 = padc(scale2, Cp).reshape(N, 1, Cp)
    shift2 = padc(shift2, Cp).reshape(N, 1, Cp)

    # ---------------- stage 2: GN2 + SiLU -> conv2 -> shortcut + residual -----------
    concat2 = Cp < 128
    top2, bot2 = halo_specs(Cp)
    inputs = [h1, h1, h1, scale2, shift2, w2, cb2, x]
    in_specs = [band_spec(Cp), top2, bot2,
                row_spec(Cp), row_spec(Cp),
                pl.BlockSpec((3, 3 * Cp, Cp), lambda n, b: (0, 0, 0)),
                pl.BlockSpec((1, Cp), lambda n, b: (0, 0)),
                band_spec(Cin)]
    if has_nin:
        inputs += [padc(params["nin_w"], Cp).astype(cdt),
                   padc(params["nin_b"].reshape(1, Cout).astype(f32), Cp)]
        in_specs += [pl.BlockSpec((Cin, Cp), lambda n, b: (0, 0)),
                     pl.BlockSpec((1, Cp), lambda n, b: (0, 0))]
    scratch2 = [pltpu.VMEM((bh + 2, W, 3 * Cp), cdt)] if concat2 else []
    out = pl.pallas_call(
        functools.partial(_stage2_kernel, bh=bh, W=W, concat_kw=concat2,
                          has_nin=has_nin, cdt=cdt),
        out_shape=jax.ShapeDtypeStruct((N, H, W, Cp), x_nchw.dtype),
        grid_spec=pltpu.PrefetchScalarGridSpec(
            num_scalar_prefetch=0,
            grid=(N, nb),
            in_specs=in_specs,
            out_specs=band_spec(Cp),
            scratch_shapes=scratch2),
        compiler_params=cparams,
    )(*inputs)

    out = out[..., :Cout] if Cp != Cout else out
    return jnp.transpose(out, (0, 3, 1, 2))                   # back to NCHW


# ---------------------------------------------------------------------------
# Pure-JAX f32 reference for validation.
# ---------------------------------------------------------------------------
def _ref_gn_silu(x, g, b, num_groups=32, eps=1e-6):
    N, H, W, C = x.shape
    cg = C // num_groups
    xr = x.reshape(N, H, W, num_groups, cg)
    mean = xr.mean(axis=(1, 2, 4), keepdims=True)
    var = xr.var(axis=(1, 2, 4), keepdims=True)
    y = ((xr - mean) / jnp.sqrt(var + eps)).reshape(N, H, W, C)
    y = y * g.reshape(1, 1, 1, C) + b.reshape(1, 1, 1, C)
    return y * jax.nn.sigmoid(y)


def _ref_circ_conv(x, w, b):
    xp = jnp.concatenate([x[:, :, -1:, :], x, x[:, :, :1, :]], axis=2)   # circular W
    xp = jnp.pad(xp, ((0, 0), (1, 1), (0, 0), (0, 0)))                   # zero H
    y = lax.conv_general_dilated(xp, w, (1, 1), "VALID",
                                 dimension_numbers=("NHWC", "HWIO", "NHWC"))
    return y + b.reshape(1, 1, 1, -1)


def ref_forward(params, x_nchw, temb):
    x = jnp.transpose(x_nchw, (0, 2, 3, 1))
    h = _ref_gn_silu(x, params["norm1_g"], params["norm1_b"])
    h = _ref_circ_conv(h, params["conv1_w"], params["conv1_b"])
    t = temb * jax.nn.sigmoid(temb)
    h = h + (t @ params["temb_w"] + params["temb_b"])[:, None, None, :]
    h = _ref_gn_silu(h, params["norm2_g"], params["norm2_b"])
    h = _ref_circ_conv(h, params["conv2_w"], params["conv2_b"])
    if "nin_w" in params:
        xs = jnp.einsum("nhwc,cd->nhwd", x, params["nin_w"]) + params["nin_b"]
    else:
        xs = x
    return jnp.transpose(xs + h, (0, 3, 1, 2))


if __name__ == "__main__":
    key = jax.random.PRNGKey(0)
    ks = jax.random.split(key, 16)

    def make_params(Cin, Cout, Ct, keys):
        p = {
            "norm1_g": 1.0 + 0.1 * jax.random.normal(keys[0], (Cin,), jnp.float32),
            "norm1_b": 0.1 * jax.random.normal(keys[1], (Cin,), jnp.float32),
            "conv1_w": 0.05 * jax.random.normal(keys[2], (3, 3, Cin, Cout), jnp.float32),
            "conv1_b": 0.05 * jax.random.normal(keys[3], (Cout,), jnp.float32),
            "temb_w": 0.05 * jax.random.normal(keys[4], (Ct, Cout), jnp.float32),
            "temb_b": 0.05 * jax.random.normal(keys[5], (Cout,), jnp.float32),
            "norm2_g": 1.0 + 0.1 * jax.random.normal(keys[6], (Cout,), jnp.float32),
            "norm2_b": 0.1 * jax.random.normal(keys[7], (Cout,), jnp.float32),
            "conv2_w": 0.05 * jax.random.normal(keys[8], (3, 3, Cout, Cout), jnp.float32),
            "conv2_b": 0.05 * jax.random.normal(keys[9], (Cout,), jnp.float32),
        }
        if Cin != Cout:
            p["nin_w"] = 0.05 * jax.random.normal(keys[10], (Cin, Cout), jnp.float32)
            p["nin_b"] = 0.05 * jax.random.normal(keys[11], (Cout,), jnp.float32)
        return p

    N, H, W, Ct = 2, 16, 16, 128
    temb = jax.random.normal(ks[13], (N, Ct), jnp.float32)
    x32 = jax.random.normal(ks[12], (N, 32, H, W), jnp.float32)     # NCHW input
    x128 = jax.random.normal(ks[14], (N, 128, H, W), jnp.float32)

    fwd = jax.jit(resnet_block_forward)
    # bf16 matmul operands (f32 accumulation) -> looser tolerance than pure f32.
    tol = dict(atol=2e-2, rtol=2e-2)

    # Config 1: Cin != Cout -> 1x1 nin_shortcut, lane-padded Cout (64 -> 128).
    p1 = make_params(32, 64, Ct, ks[:12])
    o1 = jax.block_until_ready(fwd(p1, x32, temb))
    assert o1.shape == (N, 64, H, W)
    np.testing.assert_allclose(np.asarray(o1), np.asarray(ref_forward(p1, x32, temb)), **tol)

    # Config 2: Cin == Cout -> identity shortcut, lane-padded Cout (32 -> 128).
    p2 = make_params(32, 32, Ct, ks[:12])
    o2 = jax.block_until_ready(fwd(p2, x32, temb))
    assert o2.shape == (N, 32, H, W)
    np.testing.assert_allclose(np.asarray(o2), np.asarray(ref_forward(p2, x32, temb)), **tol)

    # Config 3: Cin == Cout == 128 -> identity shortcut, no lane pad, per-tap K=Ci convs.
    p3 = make_params(128, 128, Ct, ks[:12])
    o3 = jax.block_until_ready(fwd(p3, x128, temb))
    assert o3.shape == (N, 128, H, W)
    np.testing.assert_allclose(np.asarray(o3), np.asarray(ref_forward(p3, x128, temb)), **tol)

    print("KERNEL_OK")
</pallas_src>

<mosaic_0001>
module attributes {stable_mosaic.version = 11 : i64} {
  func.func @_stage1_kernel(%arg0: i32, %arg1: i32, %arg2: memref<1x8x16x32xf32, #tpu.memory_space<vmem>>, %arg3: memref<1x1x16x32xf32, #tpu.memory_space<vmem>>, %arg4: memref<1x1x16x32xf32, #tpu.memory_space<vmem>>, %arg5: memref<1x1x32xf32, #tpu.memory_space<vmem>>, %arg6: memref<1x1x32xf32, #tpu.memory_space<vmem>>, %arg7: memref<1x1x128xf32, #tpu.memory_space<vmem>>, %arg8: memref<3x96x128xbf16, #tpu.memory_space<vmem>>, %arg9: memref<1x8x16x128xf32, #tpu.memory_space<vmem>>, %arg10: memref<10x16x96xbf16, #tpu.memory_space<vmem>>) attributes {dimension_semantics = [#tpu.dimension_semantics<parallel>, #tpu.dimension_semantics<parallel>], iteration_bounds = array<i64: 2, 2>, scalar_prefetch = 0 : i64, scratch_operands = 1 : i64, tpu.core_type = #tpu.core_type<tc>, window_params = [{transform_indices = @transform_0, window_bounds = array<i64: 1, 8, 16, 32>}, {transform_indices = @transform_1, window_bounds = array<i64: 1, 1, 16, 32>}, {transform_indices = @transform_2, window_bounds = array<i64: 1, 1, 16, 32>}, {transform_indices = @transform_3, window_bounds = array<i64: 1, 1, 32>}, {transform_indices = @transform_4, window_bounds = array<i64: 1, 1, 32>}, {transform_indices = @transform_5, window_bounds = array<i64: 1, 1, 128>}, {pipeline_mode = #tpu.pipeline_mode<synchronous>, transform_indices = @transform_6, window_bounds = array<i64: 3, 96, 128>}, {transform_indices = @transform_7, window_bounds = array<i64: 1, 8, 16, 128>}]} {
    %c0 = arith.constant 0 : index
    %c0_0 = arith.constant 0 : index
    %c0_1 = arith.constant 0 : index
    %c0_2 = arith.constant 0 : index
    %0 = vector.load %arg3[%c0, %c0_0, %c0_1, %c0_2] : memref<1x1x16x32xf32, #tpu.memory_space<vmem>>, vector<1x1x16x32xf32>
    %1 = vector.shape_cast %0 : vector<1x1x16x32xf32> to vector<1x16x32xf32>
    %c0_3 = arith.constant 0 : index
    %c0_4 = arith.constant 0 : index
    %c0_5 = arith.constant 0 : index
    %c0_6 = arith.constant 0 : index
    %2 = vector.load %arg2[%c0_3, %c0_4, %c0_5, %c0_6] : memref<1x8x16x32xf32, #tpu.memory_space<vmem>>, vector<1x8x16x32xf32>
    %3 = vector.shape_cast %2 : vector<1x8x16x32xf32> to vector<8x16x32xf32>
    %c0_7 = arith.constant 0 : index
    %c0_8 = arith.constant 0 : index
    %c0_9 = arith.constant 0 : index
    %c0_10 = arith.constant 0 : index
    %4 = vector.load %arg4[%c0_7, %c0_8, %c0_9, %c0_10] : memref<1x1x16x32xf32, #tpu.memory_space<vmem>>, vector<1x1x16x32xf32>
    %5 = vector.shape_cast %4 : vector<1x1x16x32xf32> to vector<1x16x32xf32>
    %6 = tpu.concatenate %1, %3, %5 in 0 : vector<1x16x32xf32>, vector<8x16x32xf32>, vector<1x16x32xf32> -> vector<10x16x32xf32>
    %c0_11 = arith.constant 0 : index
    %c0_12 = arith.constant 0 : index
    %c0_13 = arith.constant 0 : index
    %7 = vector.load %arg5[%c0_11, %c0_12, %c0_13] : memref<1x1x32xf32, #tpu.memory_space<vmem>>, vector<1x1x32xf32>
    %8 = vector.shape_cast %7 : vector<1x1x32xf32> to vector<1x32xf32>
    %9 = vector.shape_cast %8 : vector<1x32xf32> to vector<1x1x32xf32>
    %10 = vector.broadcast %9 : vector<1x1x32xf32> to vector<10x16x32xf32>
    %11 = arith.mulf %6, %10 : vector<10x16x32xf32>
    %c0_14 = arith.constant 0 : index
    %c0_15 = arith.constant 0 : index
    %c0_16 = arith.constant 0 : index
    %12 = vector.load %arg6[%c0_14, %c0_15, %c0_16] : memref<1x1x32xf32, #tpu.memory_space<vmem>>, vector<1x1x32xf32>
    %13 = vector.shape_cast %12 : vector<1x1x32xf32> to vector<1x32xf32>
    %14 = vector.shape_cast %13 : vector<1x32xf32> to vector<1x1x32xf32>
    %15 = vector.broadcast %14 : vector<1x1x32xf32> to vector<10x16x32xf32>
    %16 = arith.addf %11, %15 : vector<10x16x32xf32>
    %17 = arith.negf %16 : vector<10x16x32xf32>
    %18 = math.exp %17 : vector<10x16x32xf32>
    %cst = arith.constant 1.000000e+00 : f32
    %19 = vector.broadcast %cst : f32 to vector<10x16x32xf32>
    %20 = arith.addf %19, %18 : vector<10x16x32xf32>
    %21 = arith.divf %19, %20 : vector<10x16x32xf32>
    %22 = arith.mulf %16, %21 : vector<10x16x32xf32>
    %23 = tpu.iota {dimensions = array<i32: 0>} : vector<10x1x1xi32>
    %c0_i32 = arith.constant 0 : i32
    %24 = arith.cmpi sgt, %arg1, %c0_i32 : i32
    %c0_i32_17 = arith.constant 0 : i32
    %25 = vector.broadcast %c0_i32_17 : i32 to vector<10x1x1xi32>
    %26 = arith.cmpi ne, %23, %25 : vector<10x1x1xi32>
    %27 = vector.broadcast %24 : i1 to vector<10x1x1xi1>
    %28 = arith.ori %27, %26 : vector<10x1x1xi1>
    %c1_i32 = arith.constant 1 : i32
    %29 = arith.cmpi slt, %arg1, %c1_i32 : i32
    %c9_i32 = arith.constant 9 : i32
    %30 = vector.broadcast %c9_i32 : i32 to vector<10x1x1xi32>
    %31 = arith.cmpi ne, %23, %30 : vector<10x1x1xi32>
    %32 = vector.broadcast %29 : i1 to vector<10x1x1xi1>
    %33 = arith.ori %32, %31 : vector<10x1x1xi1>
    %34 = arith.andi %28, %33 : vector<10x1x1xi1>
    %cst_18 = arith.constant 0.000000e+00 : f32
    %35 = vector.shape_cast %34 : vector<10x1x1xi1> to vector<10x1x1xi1>
    %36 = vector.broadcast %35 : vector<10x1x1xi1> to vector<10x16x32xi1>
    %37 = vector.broadcast %cst_18 : f32 to vector<10x16x32xf32>
    %38 = arith.select %36, %22, %37 : vector<10x16x32xi1>, vector<10x16x32xf32>
    %c1_i32_19 = arith.constant 1 : i32
    %39 = tpu.dynamic_rotate %38 by %c1_i32_19 dim 1 : vector<10x16x32xf32>, i32 -> vector<10x16x32xf32>
    %c15_i32 = arith.constant 15 : i32
    %40 = tpu.dynamic_rotate %38 by %c15_i32 dim 1 : vector<10x16x32xf32>, i32 -> vector<10x16x32xf32>
    %41 = arith.truncf %39 : vector<10x16x32xf32> to vector<10x16x32xbf16>
    %42 = arith.truncf %38 : vector<10x16x32xf32> to vector<10x16x32xbf16>
    %43 = arith.truncf %40 : vector<10x16x32xf32> to vector<10x16x32xbf16>
    %44 = tpu.concatenate %41, %42, %43 in 2 : vector<10x16x32xbf16>, vector<10x16x32xbf16>, vector<10x16x32xbf16> -> vector<10x16x96xbf16>
    %c0_20 = arith.constant 0 : index
    %c0_21 = arith.constant 0 : index
    %c0_22 = arith.constant 0 : index
    %45 = vector.load %arg10[%c0_20, %c0_21, %c0_22] : memref<10x16x96xbf16, #tpu.memory_space<vmem>>, vector<10x16x96xbf16>
    tpu.vector_store %arg10[%c0_20, %c0_21, %c0_22], %44 {strides = array<i32>} : memref<10x16x96xbf16, #tpu.memory_space<vmem>>, vector<10x16x96xbf16>,
    %c0_23 = arith.constant 0 : index
    %c0_24 = arith.constant 0 : index
    %c0_25 = arith.constant 0 : index
    %46 = vector.load %arg10[%c0_23, %c0_24, %c0_25] : memref<10x16x96xbf16, #tpu.memory_space<vmem>>, vector<8x16x96xbf16>
    %47 = vector.shape_cast %46 : vector<8x16x96xbf16> to vector<128x96xbf16>
    %c0_26 = arith.constant 0 : index
    %c0_27 = arith.constant 0 : index
    %c0_28 = arith.constant 0 : index
    %48 = vector.load %arg8[%c0_26, %c0_27, %c0_28] : memref<3x96x128xbf16, #tpu.memory_space<vmem>>, vector<1x96x128xbf16>
    %49 = vector.shape_cast %48 : vector<1x96x128xbf16> to vector<96x128xbf16>
    %cst_29 = arith.constant dense<0.000000e+00> : vector<128x128xf32>
    %50 = tpu.matmul %47, %49, %cst_29 {dimension_numbers = #tpu.dot_dimension_numbers<[1], [0], [0], [1], [0, 0, 1, 1], [], []>} : vector<128x96xbf16>, vector<96x128xbf16>, vector<128x128xf32> -> vector<128x128xf32>
    %c1 = arith.constant 1 : index
    %c0_30 = arith.constant 0 : index
    %c0_31 = arith.constant 0 : index
    %51 = vector.load %arg10[%c1, %c0_30, %c0_31] : memref<10x16x96xbf16, #tpu.memory_space<vmem>>, vector<8x16x96xbf16>
    %52 = vector.shape_cast %51 : vector<8x16x96xbf16> to vector<128x96xbf16>
    %c1_32 = arith.constant 1 : index
    %c0_33 = arith.constant 0 : index
    %c0_34 = arith.constant 0 : index
    %53 = vector.load %arg8[%c1_32, %c0_33, %c0_34] : memref<3x96x128xbf16, #tpu.memory_space<vmem>>, vector<1x96x128xbf16>
    %54 = vector.shape_cast %53 : vector<1x96x128xbf16> to vector<96x128xbf16>
    %cst_35 = arith.constant dense<0.000000e+00> : vector<128x128xf32>
    %55 = tpu.matmul %52, %54, %cst_35 {dimension_numbers = #tpu.dot_dimension_numbers<[1], [0], [0], [1], [0, 0, 1, 1], [], []>} : vector<128x96xbf16>, vector<96x128xbf16>, vector<128x128xf32> -> vector<128x128xf32>
    %56 = arith.addf %50, %55 : vector<128x128xf32>
    %c2 = arith.constant 2 : index
    %c0_36 = arith.constant 0 : index
    %c0_37 = arith.constant 0 : index
    %57 = vector.load %arg10[%c2, %c0_36, %c0_37] : memref<10x16x96xbf16, #tpu.memory_space<vmem>>, vector<8x16x96xbf16>
    %58 = vector.shape_cast %57 : vector<8x16x96xbf16> to vector<128x96xbf16>
    %c2_38 = arith.constant 2 : index
    %c0_39 = arith.constant 0 : index
    %c0_40 = arith.constant 0 : index
    %59 = vector.load %arg8[%c2_38, %c0_39, %c0_40] : memref<3x96x128xbf16, #tpu.memory_space<vmem>>, vector<1x96x128xbf16>
    %60 = vector.shape_cast %59 : vector<1x96x128xbf16> to vector<96x128xbf16>
    %cst_41 = arith.constant dense<0.000000e+00> : vector<128x128xf32>
    %61 = tpu.matmul %58, %60, %cst_41 {dimension_numbers = #tpu.dot_dimension_numbers<[1], [0], [0], [1], [0, 0, 1, 1], [], []>} : vector<128x96xbf16>, vector<96x128xbf16>, vector<128x128xf32> -> vector<128x128xf32>
    %62 = arith.addf %56, %61 : vector<128x128xf32>
    %c0_42 = arith.constant 0 : index
    %c0_43 = arith.constant 0 : index
    %c0_44 = arith.constant 0 : index
    %63 = vector.load %arg7[%c0_42, %c0_43, %c0_44] : memref<1x1x128xf32, #tpu.memory_space<vmem>>, vector<1x1x128xf32>
    %64 = vector.shape_cast %63 : vector<1x1x128xf32> to vector<1x128xf32>
    %65 = vector.broadcast %64 : vector<1x128xf32> to vector<128x128xf32>
    %66 = arith.addf %62, %65 : vector<128x128xf32>
    %67 = vector.shape_cast %66 : vector<128x128xf32> to vector<8x16x128xf32>
    %c0_45 = arith.constant 0 : index
    %c0_46 = arith.constant 0 : index
    %c0_47 = arith.constant 0 : index
    %c0_48 = arith.constant 0 : index
    %68 = vector.load %arg9[%c0_45, %c0_46, %c0_47, %c0_48] : memref<1x8x16x128xf32, #tpu.memory_space<vmem>>, vector<1x8x16x128xf32>
    %69 = vector.shape_cast %68 : vector<1x8x16x128xf32> to vector<8x16x128xf32>
    %70 = vector.shape_cast %67 : vector<8x16x128xf32> to vector<1x8x16x128xf32>
    tpu.vector_store %arg9[%c0_45, %c0_46, %c0_47, %c0_48], %70 {strides = array<i32>} : memref<1x8x16x128xf32, #tpu.memory_space<vmem>>, vector<1x8x16x128xf32>,
    return
  }
  func.func @transform_0(%arg0: i32, %arg1: i32) -> (i32, i32, i32, i32) {
    %c0_i32 = arith.constant 0 : i32
    %c0_i32_0 = arith.constant 0 : i32
    %c0_i32_1 = arith.constant 0 : i32
    return %arg0, %arg1, %c0_i32, %c0_i32_0 : i32, i32, i32, i32
  }
  func.func @transform_1(%arg0: i32, %arg1: i32) -> (i32, i32, i32, i32) {
    %c8_i32 = arith.constant 8 : i32
    %0 = arith.muli %arg1, %c8_i32 : i32
    %c1_i32 = arith.constant 1 : i32
    %1 = arith.subi %0, %c1_i32 : i32
    %c0_i32 = arith.constant 0 : i32
    %2 = arith.maxsi %1, %c0_i32 : i32
    %c0_i32_0 = arith.constant 0 : i32
    %c0_i32_1 = arith.constant 0 : i32
    %c0_i32_2 = arith.constant 0 : i32
    return %arg0, %2, %c0_i32_0, %c0_i32_1 : i32, i32, i32, i32
  }
  func.func @transform_2(%arg0: i32, %arg1: i32) -> (i32, i32, i32, i32) {
    %c1_i32 = arith.constant 1 : i32
    %0 = arith.addi %arg1, %c1_i32 : i32
    %c8_i32 = arith.constant 8 : i32
    %1 = arith.muli %0, %c8_i32 : i32
    %c15_i32 = arith.constant 15 : i32
    %2 = arith.minsi %1, %c15_i32 : i32
    %c0_i32 = arith.constant 0 : i32
    %c0_i32_0 = arith.constant 0 : i32
    %c0_i32_1 = arith.constant 0 : i32
    return %arg0, %2, %c0_i32, %c0_i32_0 : i32, i32, i32, i32
  }
  func.func @transform_3(%arg0: i32, %arg1: i32) -> (i32, i32, i32) {
    %c0_i32 = arith.constant 0 : i32
    %c0_i32_0 = arith.constant 0 : i32
    %c0_i32_1 = arith.constant 0 : i32
    return %arg0, %c0_i32, %c0_i32_0 : i32, i32, i32
  }
  func.func @transform_4(%arg0: i32, %arg1: i32) -> (i32, i32, i32) {
    %c0_i32 = arith.constant 0 : i32
    %c0_i32_0 = arith.constant 0 : i32
    %c0_i32_1 = arith.constant 0 : i32
    return %arg0, %c0_i32, %c0_i32_0 : i32, i32, i32
  }
  func.func @transform_5(%arg0: i32, %arg1: i32) -> (i32, i32, i32) {
    %c0_i32 = arith.constant 0 : i32
    %c0_i32_0 = arith.constant 0 : i32
    %c0_i32_1 = arith.constant 0 : i32
    return %arg0, %c0_i32, %c0_i32_0 : i32, i32, i32
  }
  func.func @transform_6(%arg0: i32, %arg1: i32) -> (i32, i32, i32) {
    %c0_i32 = arith.constant 0 : i32
    %c0_i32_0 = arith.constant 0 : i32
    %c0_i32_1 = arith.constant 0 : i32
    %c0_i32_2 = arith.constant 0 : i32
    return %c0_i32, %c0_i32_0, %c0_i32_1 : i32, i32, i32
  }
  func.func @transform_7(%arg0: i32, %arg1: i32) -> (i32, i32, i32, i32) {
    %c0_i32 = arith.constant 0 : i32
    %c0_i32_0 = arith.constant 0 : i32
    %c0_i32_1 = arith.constant 0 : i32
    return %arg0, %arg1, %c0_i32, %c0_i32_0 : i32, i32, i32, i32
  }
}

module attributes {stable_mosaic.version = 11 : i64} {
  func.func @_stage2_kernel(%arg0: i32, %arg1: i32, %arg2: memref<1x8x16x128xf32, #tpu.memory_space<vmem>>, %arg3: memref<1x1x16x128xf32, #tpu.memory_space<vmem>>, %arg4: memref<1x1x16x128xf32, #tpu.memory_space<vmem>>, %arg5: memref<1x1x128xf32, #tpu.memory_space<vmem>>, %arg6: memref<1x1x128xf32, #tpu.memory_space<vmem>>, %arg7: memref<3x384x128xbf16, #tpu.memory_space<vmem>>, %arg8: memref<1x128xf32, #tpu.memory_space<vmem>>, %arg9: memref<1x8x16x32xf32, #tpu.memory_space<vmem>>, %arg10: memref<32x128xbf16, #tpu.memory_space<vmem>>, %arg11: memref<1x128xf32, #tpu.memory_space<vmem>>, %arg12: memref<1x8x16x128xf32, #tpu.memory_space<vmem>>) attributes {dimension_semantics = [#tpu.dimension_semantics<parallel>, #tpu.dimension_semantics<parallel>], iteration_bounds = array<i64: 2, 2>, scalar_prefetch = 0 : i64, scratch_operands = 0 : i64, tpu.core_type = #tpu.core_type<tc>, window_params = [{transform_indices = @transform_0, window_bounds = array<i64: 1, 8, 16, 128>}, {transform_indices = @transform_1, window_bounds = array<i64: 1, 1, 16, 128>}, {transform_indices = @transform_2, window_bounds = array<i64: 1, 1, 16, 128>}, {transform_indices = @transform_3, window_bounds = array<i64: 1, 1, 128>}, {transform_indices = @transform_4, window_bounds = array<i64: 1, 1, 128>}, {pipeline_mode = #tpu.pipeline_mode<synchronous>, transform_indices = @transform_5, window_bounds = array<i64: 3, 384, 128>}, {pipeline_mode = #tpu.pipeline_mode<synchronous>, transform_indices = @transform_6, window_bounds = array<i64: 1, 128>}, {transform_indices = @transform_7, window_bounds = array<i64: 1, 8, 16, 32>}, {pipeline_mode = #tpu.pipeline_mode<synchronous>, transform_indices = @transform_8, window_bounds = array<i64: 32, 128>}, {pipeline_mode = #tpu.pipeline_mode<synchronous>, transform_indices = @transform_9, window_bounds = array<i64: 1, 128>}, {transform_indices = @transform_10, window_bounds = array<i64: 1, 8, 16, 128>}]} {
    %c0 = arith.constant 0 : index
    %c0_0 = arith.constant 0 : index
    %c0_1 = arith.constant 0 : index
    %c0_2 = arith.constant 0 : index
    %0 = vector.load %arg3[%c0, %c0_0, %c0_1, %c0_2] : memref<1x1x16x128xf32, #tpu.memory_space<vmem>>, vector<1x1x16x128xf32>
    %1 = vector.shape_cast %0 : vector<1x1x16x128xf32> to vector<1x16x128xf32>
    %c0_3 = arith.constant 0 : index
    %c0_4 = arith.constant 0 : index
    %c0_5 = arith.constant 0 : index
    %c0_6 = arith.constant 0 : index
    %2 = vector.load %arg2[%c0_3, %c0_4, %c0_5, %c0_6] : memref<1x8x16x128xf32, #tpu.memory_space<vmem>>, vector<1x8x16x128xf32>
    %3 = vector.shape_cast %2 : vector<1x8x16x128xf32> to vector<8x16x128xf32>
    %c0_7 = arith.constant 0 : index
    %c0_8 = arith.constant 0 : index
    %c0_9 = arith.constant 0 : index
    %c0_10 = arith.constant 0 : index
    %4 = vector.load %arg4[%c0_7, %c0_8, %c0_9, %c0_10] : memref<1x1x16x128xf32, #tpu.memory_space<vmem>>, vector<1x1x16x128xf32>
    %5 = vector.shape_cast %4 : vector<1x1x16x128xf32> to vector<1x16x128xf32>
    %6 = tpu.concatenate %1, %3, %5 in 0 : vector<1x16x128xf32>, vector<8x16x128xf32>, vector<1x16x128xf32> -> vector<10x16x128xf32>
    %c0_11 = arith.constant 0 : index
    %c0_12 = arith.constant 0 : index
    %c0_13 = arith.constant 0 : index
    %7 = vector.load %arg5[%c0_11, %c0_12, %c0_13] : memref<1x1x128xf32, #tpu.memory_space<vmem>>, vector<1x1x128xf32>
    %8 = vector.shape_cast %7 : vector<1x1x128xf32> to vector<1x128xf32>
    %9 = vector.shape_cast %8 : vector<1x128xf32> to vector<1x1x128xf32>
    %10 = vector.broadcast %9 : vector<1x1x128xf32> to vector<10x16x128xf32>
    %11 = arith.mulf %6, %10 : vector<10x16x128xf32>
    %c0_14 = arith.constant 0 : index
    %c0_15 = arith.constant 0 : index
    %c0_16 = arith.constant 0 : index
    %12 = vector.load %arg6[%c0_14, %c0_15, %c0_16] : memref<1x1x128xf32, #tpu.memory_space<vmem>>, vector<1x1x128xf32>
    %13 = vector.shape_cast %12 : vector<1x1x128xf32> to vector<1x128xf32>
    %14 = vector.shape_cast %13 : vector<1x128xf32> to vector<1x1x128xf32>
    %15 = vector.broadcast %14 : vector<1x1x128xf32> to vector<10x16x128xf32>
    %16 = arith.addf %11, %15 : vector<10x16x128xf32>
    %17 = arith.negf %16 : vector<10x16x128xf32>
    %18 = math.exp %17 : vector<10x16x128xf32>
    %cst = arith.constant 1.000000e+00 : f32
    %19 = vector.broadcast %cst : f32 to vector<10x16x128xf32>
    %20 = arith.addf %19, %18 : vector<10x16x128xf32>
    %21 = arith.divf %19, %20 : vector<10x16x128xf32>
    %22 = arith.mulf %16, %21 : vector<10x16x128xf32>
    %23 = tpu.iota {dimensions = array<i32: 0>} : vector<10x1x1xi32>
    %c0_i32 = arith.constant 0 : i32
    %24 = arith.cmpi sgt, %arg1, %c0_i32 : i32
    %c0_i32_17 = arith.constant 0 : i32
    %25 = vector.broadcast %c0_i32_17 : i32 to vector<10x1x1xi32>
    %26 = arith.cmpi ne, %23, %25 : vector<10x1x1xi32>
    %27 = vector.broadcast %24 : i1 to vector<10x1x1xi1>
    %28 = arith.ori %27, %26 : vector<10x1x1xi1>
    %c1_i32 = arith.constant 1 : i32
    %29 = arith.cmpi slt, %arg1, %c1_i32 : i32
    %c9_i32 = arith.constant 9 : i32
    %30 = vector.broadcast %c9_i32 : i32 to vector<10x1x1xi32>
    %31 = arith.cmpi ne, %23, %30 : vector<10x1x1xi32>
    %32 = vector.broadcast %29 : i1 to vector<10x1x1xi1>
    %33 = arith.ori %32, %31 : vector<10x1x1xi1>
    %34 = arith.andi %28, %33 : vector<10x1x1xi1>
    %cst_18 = arith.constant 0.000000e+00 : f32
    %35 = vector.shape_cast %34 : vector<10x1x1xi1> to vector<10x1x1xi1>
    %36 = vector.broadcast %35 : vector<10x1x1xi1> to vector<10x16x128xi1>
    %37 = vector.broadcast %cst_18 : f32 to vector<10x16x128xf32>
    %38 = arith.select %36, %22, %37 : vector<10x16x128xi1>, vector<10x16x128xf32>
    %c1_i32_19 = arith.constant 1 : i32
    %39 = tpu.dynamic_rotate %38 by %c1_i32_19 dim 1 : vector<10x16x128xf32>, i32 -> vector<10x16x128xf32>
    %c15_i32 = arith.constant 15 : i32
    %40 = tpu.dynamic_rotate %38 by %c15_i32 dim 1 : vector<10x16x128xf32>, i32 -> vector<10x16x128xf32>
    %41 = arith.truncf %39 : vector<10x16x128xf32> to vector<10x16x128xbf16>
    %42 = arith.truncf %38 : vector<10x16x128xf32> to vector<10x16x128xbf16>
    %43 = arith.truncf %40 : vector<10x16x128xf32> to vector<10x16x128xbf16>
    %44 = vector.extract_strided_slice %41 {offsets = [0, 0, 0], sizes = [8, 16, 128], strides = [1, 1, 1]} : vector<10x16x128xbf16> to vector<8x16x128xbf16>
    %45 = vector.shape_cast %44 : vector<8x16x128xbf16> to vector<128x128xbf16>
    %c0_20 = arith.constant 0 : index
    %c0_21 = arith.constant 0 : index
    %c0_22 = arith.constant 0 : index
    %46 = vector.load %arg7[%c0_20, %c0_21, %c0_22] : memref<3x384x128xbf16, #tpu.memory_space<vmem>>, vector<1x128x128xbf16>
    %47 = vector.shape_cast %46 : vector<1x128x128xbf16> to vector<128x128xbf16>
    %cst_23 = arith.constant dense<0.000000e+00> : vector<128x128xf32>
    %48 = tpu.matmul %45, %47, %cst_23 {dimension_numbers = #tpu.dot_dimension_numbers<[1], [0], [0], [1], [0, 0, 1, 1], [], []>} : vector<128x128xbf16>, vector<128x128xbf16>, vector<128x128xf32> -> vector<128x128xf32>
    %49 = vector.extract_strided_slice %42 {offsets = [0, 0, 0], sizes = [8, 16, 128], strides = [1, 1, 1]} : vector<10x16x128xbf16> to vector<8x16x128xbf16>
    %50 = vector.shape_cast %49 : vector<8x16x128xbf16> to vector<128x128xbf16>
    %c0_24 = arith.constant 0 : index
    %c128 = arith.constant 128 : index
    %c0_25 = arith.constant 0 : index
    %51 = vector.load %arg7[%c0_24, %c128, %c0_25] : memref<3x384x128xbf16, #tpu.memory_space<vmem>>, vector<1x128x128xbf16>
    %52 = vector.shape_cast %51 : vector<1x128x128xbf16> to vector<128x128xbf16>
    %cst_26 = arith.constant dense<0.000000e+00> : vector<128x128xf32>
    %53 = tpu.matmul %50, %52, %cst_26 {dimension_numbers = #tpu.dot_dimension_numbers<[1], [0], [0], [1], [0, 0, 1, 1], [], []>} : vector<128x128xbf16>, vector<128x128xbf16>, vector<128x128xf32> -> vector<128x128xf32>
    %54 = arith.addf %48, %53 : vector<128x128xf32>
    %55 = vector.extract_strided_slice %43 {offsets = [0, 0, 0], sizes = [8, 16, 128], strides = [1, 1, 1]} : vector<10x16x128xbf16> to vector<8x16x128xbf16>
    %56 = vector.shape_cast %55 : vector<8x16x128xbf16> to vector<128x128xbf16>
    %c0_27 = arith.constant 0 : index
    %c256 = arith.constant 256 : index
    %c0_28 = arith.constant 0 : index
    %57 = vector.load %arg7[%c0_27, %c256, %c0_28] : memref<3x384x128xbf16, #tpu.memory_space<vmem>>, vector<1x128x128xbf16>
    %58 = vector.shape_cast %57 : vector<1x128x128xbf16> to vector<128x128xbf16>
    %cst_29 = arith.constant dense<0.000000e+00> : vector<128x128xf32>
    %59 = tpu.matmul %56, %58, %cst_29 {dimension_numbers = #tpu.dot_dimension_numbers<[1], [0], [0], [1], [0, 0, 1, 1], [], []>} : vector<128x128xbf16>, vector<128x128xbf16>, vector<128x128xf32> -> vector<128x128xf32>
    %60 = arith.addf %54, %59 : vector<128x128xf32>
    %61 = vector.extract_strided_slice %41 {offsets = [1, 0, 0], sizes = [8, 16, 128], strides = [1, 1, 1]} : vector<10x16x128xbf16> to vector<8x16x128xbf16>
    %62 = vector.shape_cast %61 : vector<8x16x128xbf16> to vector<128x128xbf16>
    %c1 = arith.constant 1 : index
    %c0_30 = arith.constant 0 : index
    %c0_31 = arith.constant 0 : index
    %63 = vector.load %arg7[%c1, %c0_30, %c0_31] : memref<3x384x128xbf16, #tpu.memory_space<vmem>>, vector<1x128x128xbf16>
    %64 = vector.shape_cast %63 : vector<1x128x128xbf16> to vector<128x128xbf16>
    %cst_32 = arith.constant dense<0.000000e+00> : vector<128x128xf32>
    %65 = tpu.matmul %62, %64, %cst_32 {dimension_numbers = #tpu.dot_dimension_numbers<[1], [0], [0], [1], [0, 0, 1, 1], [], []>} : vector<128x128xbf16>, vector<128x128xbf16>, vector<128x128xf32> -> vector<128x128xf32>
    %66 = arith.addf %60, %65 : vector<128x128xf32>
    %67 = vector.extract_strided_slice %42 {offsets = [1, 0, 0], sizes = [8, 16, 128], strides = [1, 1, 1]} : vector<10x16x128xbf16> to vector<8x16x128xbf16>
    %68 = vector.shape_cast %67 : vector<8x16x128xbf16> to vector<128x128xbf16>
    %c1_33 = arith.constant 1 : index
    %c128_34 = arith.constant 128 : index
    %c0_35 = arith.constant 0 : index
    %69 = vector.load %arg7[%c1_33, %c128_34, %c0_35] : memref<3x384x128xbf16, #tpu.memory_space<vmem>>, vector<1x128x128xbf16>
    %70 = vector.shape_cast %69 : vector<1x128x128xbf16> to vector<128x128xbf16>
    %cst_36 = arith.constant dense<0.000000e+00> : vector<128x128xf32>
    %71 = tpu.matmul %68, %70, %cst_36 {dimension_numbers = #tpu.dot_dimension_numbers<[1], [0], [0], [1], [0, 0, 1, 1], [], []>} : vector<128x128xbf16>, vector<128x128xbf16>, vector<128x128xf32> -> vector<128x128xf32>
    %72 = arith.addf %66, %71 : vector<128x128xf32>
    %73 = vector.extract_strided_slice %43 {offsets = [1, 0, 0], sizes = [8, 16, 128], strides = [1, 1, 1]} : vector<10x16x128xbf16> to vector<8x16x128xbf16>
    %74 = vector.shape_cast %73 : vector<8x16x128xbf16> to vector<128x128xbf16>
    %c1_37 = arith.constant 1 : index
    %c256_38 = arith.constant 256 : index
    %c0_39 = arith.constant 0 : index
    %75 = vector.load %arg7[%c1_37, %c256_38, %c0_39] : memref<3x384x128xbf16, #tpu.memory_space<vmem>>, vector<1x128x128xbf16>
    %76 = vector.shape_cast %75 : vector<1x128x128xbf16> to vector<128x128xbf16>
    %cst_40 = arith.constant dense<0.000000e+00> : vector<128x128xf32>
    %77 = tpu.matmul %74, %76, %cst_40 {dimension_numbers = #tpu.dot_dimension_numbers<[1], [0], [0], [1], [0, 0, 1, 1], [], []>} : vector<128x128xbf16>, vector<128x128xbf16>, vector<128x128xf32> -> vector<128x128xf32>
    %78 = arith.addf %72, %77 : vector<128x128xf32>
    %79 = vector.extract_strided_slice %41 {offsets = [2, 0, 0], sizes = [8, 16, 128], strides = [1, 1, 1]} : vector<10x16x128xbf16> to vector<8x16x128xbf16>
    %80 = vector.shape_cast %79 : vector<8x16x128xbf16> to vector<128x128xbf16>
    %c2 = arith.constant 2 : index
    %c0_41 = arith.constant 0 : index
    %c0_42 = arith.constant 0 : index
    %81 = vector.load %arg7[%c2, %c0_41, %c0_42] : memref<3x384x128xbf16, #tpu.memory_space<vmem>>, vector<1x128x128xbf16>
    %82 = vector.shape_cast %81 : vector<1x128x128xbf16> to vector<128x128xbf16>
    %cst_43 = arith.constant dense<0.000000e+00> : vector<128x128xf32>
    %83 = tpu.matmul %80, %82, %cst_43 {dimension_numbers = #tpu.dot_dimension_numbers<[1], [0], [0], [1], [0, 0, 1, 1], [], []>} : vector<128x128xbf16>, vector<128x128xbf16>, vector<128x128xf32> -> vector<128x128xf32>
    %84 = arith.addf %78, %83 : vector<128x128xf32>
    %85 = vector.extract_strided_slice %42 {offsets = [2, 0, 0], sizes = [8, 16, 128], strides = [1, 1, 1]} : vector<10x16x128xbf16> to vector<8x16x128xbf16>
    %86 = vector.shape_cast %85 : vector<8x16x128xbf16> to vector<128x128xbf16>
    %c2_44 = arith.constant 2 : index
    %c128_45 = arith.constant 128 : index
    %c0_46 = arith.constant 0 : index
    %87 = vector.load %arg7[%c2_44, %c128_45, %c0_46] : memref<3x384x128xbf16, #tpu.memory_space<vmem>>, vector<1x128x128xbf16>
    %88 = vector.shape_cast %87 : vector<1x128x128xbf16> to vector<128x128xbf16>
    %cst_47 = arith.constant dense<0.000000e+00> : vector<128x128xf32>
    %89 = tpu.matmul %86, %88, %cst_47 {dimension_numbers = #tpu.dot_dimension_numbers<[1], [0], [0], [1], [0, 0, 1, 1], [], []>} : vector<128x128xbf16>, vector<128x128xbf16>, vector<128x128xf32> -> vector<128x128xf32>
    %90 = arith.addf %84, %89 : vector<128x128xf32>
    %91 = vector.extract_strided_slice %43 {offsets = [2, 0, 0], sizes = [8, 16, 128], strides = [1, 1, 1]} : vector<10x16x128xbf16> to vector<8x16x128xbf16>
    %92 = vector.shape_cast %91 : vector<8x16x128xbf16> to vector<128x128xbf16>
    %c2_48 = arith.constant 2 : index
    %c256_49 = arith.constant 256 : index
    %c0_50 = arith.constant 0 : index
    %93 = vector.load %arg7[%c2_48, %c256_49, %c0_50] : memref<3x384x128xbf16, #tpu.memory_space<vmem>>, vector<1x128x128xbf16>
    %94 = vector.shape_cast %93 : vector<1x128x128xbf16> to vector<128x128xbf16>
    %cst_51 = arith.constant dense<0.000000e+00> : vector<128x128xf32>
    %95 = tpu.matmul %92, %94, %cst_51 {dimension_numbers = #tpu.dot_dimension_numbers<[1], [0], [0], [1], [0, 0, 1, 1], [], []>} : vector<128x128xbf16>, vector<128x128xbf16>, vector<128x128xf32> -> vector<128x128xf32>
    %96 = arith.addf %90, %95 : vector<128x128xf32>
    %c0_52 = arith.constant 0 : index
    %c0_53 = arith.constant 0 : index
    %97 = vector.load %arg8[%c0_52, %c0_53] : memref<1x128xf32, #tpu.memory_space<vmem>>, vector<1x128xf32>
    %98 = vector.broadcast %97 : vector<1x128xf32> to vector<128x128xf32>
    %99 = arith.addf %96, %98 : vector<128x128xf32>
    %c0_54 = arith.constant 0 : index
    %c0_55 = arith.constant 0 : index
    %c0_56 = arith.constant 0 : index
    %c0_57 = arith.constant 0 : index
    %100 = vector.load %arg9[%c0_54, %c0_55, %c0_56, %c0_57] : memref<1x8x16x32xf32, #tpu.memory_space<vmem>>, vector<1x8x16x32xf32>
    %101 = vector.shape_cast %100 : vector<1x8x16x32xf32> to vector<8x16x32xf32>
    %102 = vector.shape_cast %101 : vector<8x16x32xf32> to vector<128x32xf32>
    %103 = arith.truncf %102 : vector<128x32xf32> to vector<128x32xbf16>
    %c0_58 = arith.constant 0 : index
    %c0_59 = arith.constant 0 : index
    %104 = vector.load %arg10[%c0_58, %c0_59] : memref<32x128xbf16, #tpu.memory_space<vmem>>, vector<32x128xbf16>
    %cst_60 = arith.constant dense<0.000000e+00> : vector<128x128xf32>
    %105 = tpu.matmul %103, %104, %cst_60 {dimension_numbers = #tpu.dot_dimension_numbers<[1], [0], [0], [1], [0, 0, 1, 1], [], []>} : vector<128x32xbf16>, vector<32x128xbf16>, vector<128x128xf32> -> vector<128x128xf32>
    %c0_61 = arith.constant 0 : index
    %c0_62 = arith.constant 0 : index
    %106 = vector.load %arg11[%c0_61, %c0_62] : memref<1x128xf32, #tpu.memory_space<vmem>>, vector<1x128xf32>
    %107 = vector.broadcast %106 : vector<1x128xf32> to vector<128x128xf32>
    %108 = arith.addf %105, %107 : vector<128x128xf32>
    %109 = arith.addf %108, %99 : vector<128x128xf32>
    %110 = vector.shape_cast %109 : vector<128x128xf32> to vector<8x16x128xf32>
    %c0_63 = arith.constant 0 : index
    %c0_64 = arith.constant 0 : index
    %c0_65 = arith.constant 0 : index
    %c0_66 = arith.constant 0 : index
    %111 = vector.load %arg12[%c0_63, %c0_64, %c0_65, %c0_66] : memref<1x8x16x128xf32, #tpu.memory_space<vmem>>, vector<1x8x16x128xf32>
    %112 = vector.shape_cast %111 : vector<1x8x16x128xf32> to vector<8x16x128xf32>
    %113 = vector.shape_cast %110 : vector<8x16x128xf32> to vector<1x8x16x128xf32>
    tpu.vector_store %arg12[%c0_63, %c0_64, %c0_65, %c0_66], %113 {strides = array<i32>} : memref<1x8x16x128xf32, #tpu.memory_space<vmem>>, vector<1x8x16x128xf32>,
    return
  }
  func.func @transform_0(%arg0: i32, %arg1: i32) -> (i32, i32, i32, i32) {
    %c0_i32 = arith.constant 0 : i32
    %c0_i32_0 = arith.constant 0 : i32
    %c0_i32_1 = arith.constant 0 : i32
    return %arg0, %arg1, %c0_i32, %c0_i32_0 : i32, i32, i32, i32
  }
  func.func @transform_1(%arg0: i32, %arg1: i32) -> (i32, i32, i32, i32) {
    %c8_i32 = arith.constant 8 : i32
    %0 = arith.muli %arg1, %c8_i32 : i32
    %c1_i32 = arith.constant 1 : i32
    %1 = arith.subi %0, %c1_i32 : i32
    %c0_i32 = arith.constant 0 : i32
    %2 = arith.maxsi %1, %c0_i32 : i32
    %c0_i32_0 = arith.constant 0 : i32
    %c0_i32_1 = arith.constant 0 : i32
    %c0_i32_2 = arith.constant 0 : i32
    return %arg0, %2, %c0_i32_0, %c0_i32_1 : i32, i32, i32, i32
  }
  func.func @transform_2(%arg0: i32, %arg1: i32) -> (i32, i32, i32, i32) {
    %c1_i32 = arith.constant 1 : i32
    %0 = arith.addi %arg1, %c1_i32 : i32
    %c8_i32 = arith.constant 8 : i32
    %1 = arith.muli %0, %c8_i32 : i32
    %c15_i32 = arith.constant 15 : i32
    %2 = arith.minsi %1, %c15_i32 : i32
    %c0_i32 = arith.constant 0 : i32
    %c0_i32_0 = arith.constant 0 : i32
    %c0_i32_1 = arith.constant 0 : i32
    return %arg0, %2, %c0_i32, %c0_i32_0 : i32, i32, i32, i32
  }
  func.func @transform_3(%arg0: i32, %arg1: i32) -> (i32, i32, i32) {
    %c0_i32 = arith.constant 0 : i32
    %c0_i32_0 = arith.constant 0 : i32
    %c0_i32_1 = arith.constant 0 : i32
    return %arg0, %c0_i32, %c0_i32_0 : i32, i32, i32
  }
  func.func @transform_4(%arg0: i32, %arg1: i32) -> (i32, i32, i32) {
    %c0_i32 = arith.constant 0 : i32
    %c0_i32_0 = arith.constant 0 : i32
    %c0_i32_1 = arith.constant 0 : i32
    return %arg0, %c0_i32, %c0_i32_0 : i32, i32, i32
  }
  func.func @transform_5(%arg0: i32, %arg1: i32) -> (i32, i32, i32) {
    %c0_i32 = arith.constant 0 : i32
    %c0_i32_0 = arith.constant 0 : i32
    %c0_i32_1 = arith.constant 0 : i32
    %c0_i32_2 = arith.constant 0 : i32
    return %c0_i32, %c0_i32_0, %c0_i32_1 : i32, i32, i32
  }
  func.func @transform_6(%arg0: i32, %arg1: i32) -> (i32, i32) {
    %c0_i32 = arith.constant 0 : i32
    %c0_i32_0 = arith.constant 0 : i32
    %c0_i32_1 = arith.constant 0 : i32
    return %c0_i32, %c0_i32_0 : i32, i32
  }
  func.func @transform_7(%arg0: i32, %arg1: i32) -> (i32, i32, i32, i32) {
    %c0_i32 = arith.constant 0 : i32
    %c0_i32_0 = arith.constant 0 : i32
    %c0_i32_1 = arith.constant 0 : i32
    return %arg0, %arg1, %c0_i32, %c0_i32_0 : i32, i32, i32, i32
  }
  func.func @transform_8(%arg0: i32, %arg1: i32) -> (i32, i32) {
    %c0_i32 = arith.constant 0 : i32
    %c0_i32_0 = arith.constant 0 : i32
    %c0_i32_1 = arith.constant 0 : i32
    return %c0_i32, %c0_i32_0 : i32, i32
  }
  func.func @transform_9(%arg0: i32, %arg1: i32) -> (i32, i32) {
    %c0_i32 = arith.constant 0 : i32
    %c0_i32_0 = arith.constant 0 : i32
    %c0_i32_1 = arith.constant 0 : i32
    return %c0_i32, %c0_i32_0 : i32, i32
  }
  func.func @transform_10(%arg0: i32, %arg1: i32) -> (i32, i32, i32, i32) {
    %c0_i32 = arith.constant 0 : i32
    %c0_i32_0 = arith.constant 0 : i32
    %c0_i32_1 = arith.constant 0 : i32
    return %arg0, %arg1, %c0_i32, %c0_i32_0 : i32, i32, i32, i32
  }
}

</mosaic_0001>

<bundles_post_ra>
// kernel: resnet_block_forward.2
= control target key start
LH: loop header
LB: loop body
LE: loop exit
PB: predicated region body
PF: predicated region fallthrough
CT: control target
= control target key end

     0   :  { %s2774_s24 = smov 0   ;;  %s2776_s25 = smov 0   ;;  %s3907_s0 = inlined_call_operand.vmem [shape: f32[2,16,16,32], index: 0, kind: input, shape index: {}, may-alias: {0,1,2}]   ;;  %s3908_s1 = inlined_call_operand.vmem [shape: f32[2,16,16,32], index: 1, kind: input, shape index: {}, may-alias: {0,1,2}]   ;;  %s3909_s2 = inlined_call_operand.vmem [shape: f32[2,16,16,32], index: 2, kind: input, shape index: {}, may-alias: {0,1,2}]   ;;  %s3910_s3 = inlined_call_operand.vmem [shape: f32[2,1,32], index: 3, kind: input, shape index: {}]   ;;  %s3911_s4 = inlined_call_operand.vmem [shape: f32[2,1,32], index: 4, kind: input, shape index: {}]   ;;  %s3912_s5 = inlined_call_operand.vmem [shape: f32[2,1,128], index: 5, kind: input, shape index: {}]   ;;  %s3913_s6 = inlined_call_operand.vmem [shape: bf16[3,96,128], index: 6, kind: input, shape index: {}]   ;;  %s3914_s7 = inlined_call_operand.vmem [shape: f32[2,16,16,128], index: 7, kind: output, shape index: {}]  }
   0x1   :  { %s2778_s26 = smov 0   ;;  %s2780_s27 = smov 0  }
   0x2   :  { %s2782_s28 = smov 0  }
   0x3 LB: > { %s26_s29 = sadd.s32 1, %s2722_s26  ;;  %s29_s30 = sadd.s32 1, %s2726_s27  ;;  %s2730_s28 = sphi %s2782_s28, %s17_s28   ;;  %s2726_s27 = sphi %s2780_s27, %s3991_s27   ;;  %s2722_s26 = sphi %s2778_s26, %s3990_s26   ;;  %s2718_s25 = sphi %s2776_s25, %s3989_s25   ;;  %s2714_s24 = sphi %s2774_s24, %s3988_s24  }
   0x4   : > { %p27_p0 = scmp.ge.s32.totalorder %s26_s29, 2  ;;  %p2233_p1 = scmp.ge.s32.totalorder %s2730_s28, 1 }
   0x5   : > { %p347_p2 = scmp.lt.s32.totalorder %s2730_s28, 5 }
   0x6   : > { %s3993_s29 = smov (%p27_p0, %s26_s29), 0  ;;  %s3995_s30 = smov (!%p27_p0, %s29_s30), %s2726_s27 }
   0x7   : > { %p348_p3 = pnand %p2233_p1, %p347_p2  ;;  %p31_p4 = scmp.ge.s32.totalorder %s3995_s30, 2 }
   0x8   : > { %s2807_s8 = sshll.u32 (!%p348_p3), %s2714_s24, 3  ;;  %p425_p5 = scmp.lt.s32.totalorder (!%p348_p3), %s2718_s25, 1 }
   0x9   : > { %s3997_s30 = smov (%p31_p4, %s3995_s30), 0  ;;  %351 = sbr.rel (%p348_p3) target bundleno = 463 (0x1cf), region = 48 }
   0xa   : > { %p427_p6 = scmp.lt.s32.totalorder (!%p348_p3), %s2807_s8, 15  ;;  %s2239_s12 = sadd.s32 (!%p348_p3), 4294967295, %s2807_s8 }
   0xb   : > { %p437_p7 = scmp.gt.s32.totalorder (!%p348_p3), %s2239_s12, 0  ;;  %p2240_p8 = scmp.lt.s32.totalorder (!%p348_p3), %s2239_s12, 15 }
   0xc   : > { %p958_p10 = scmp.gt.s32.totalorder (!%p348_p3), %s2714_s24, 0  ;;  %p962_p11 = scmp.lt.s32.totalorder (!%p348_p3), %s2714_s24, 1 }
   0xe   : > { %s3999_s25 = smov (!%p425_p5, %s2718_s25), 1  ;;  %v1010_v50 = vlaneseq }
   0xf   : > { %s428_s9 = scalar_select %p427_p6, %s2807_s8, 15 }
  0x10   : > { %s2814_s10 = sshll.u32 %s3999_s25, 5  ;;  %s2820_s13 = scalar_lea.vmem %s3910_s3, %s3999_s25  ;;  %v2954_v63 = vshrl.u32 %v1010_v50, 7 }
  0x11   : > { %s2235_s14 = sshll.u32 %s428_s9, 1  ;;  %s2826_s17 = scalar_lea.vmem %s3911_s4, %s3999_s25  ;;  %v2836_v0 = vld [vmem:[%s2820_s13] ss:$0 sm:$0xff] }
  0x12   : > { %s2829_s18 = sadd.s32 %s2814_s10, %s2235_s14  ;;  %s477_s21 = scalar_lea.vmem %s3912_s5, %s3999_s25  ;;  %v2847_v1 = vld [vmem:[%s2826_s17] ss:$0 sm:$0xff]  ;;  %vm1053_vm9 = vcmp.lt.s32.totalorder %v2954_v63, 7 }
  0x13   : > { %s2237_s22 = sshll.u32 %s2829_s18, 3  ;;  %s2504_s14 = sadd.s32 8, %s2807_s8 }
  0x14   : > { %s2844_s11 = scalar_lea.vmem %s3907_s0, %s2237_s22  ;;  %p2890_p9 = scmp.lt.s32.totalorder %s2504_s14, 15 }
  0x15   : > { %v494_v2 = vld [vmem:[%s2844_s11 + $0x10] sm:$0xff]  ;;  %v495_v3 = vld [vmem:[%s2844_s11 + $0x18] sm:$0xff]  ;;  %v504_v4 = vld [vmem:[%s2844_s11 + $0x60] sm:$0xff]  ;;  %s438_s15 = scalar_select %p437_p7, %s2239_s12, 0 }
  0x16   : > { %v518_v5 = vmul.f32 %v2836_v0, %v494_v2  ;;  %v519_v6 = vmul.f32 %v2836_v0, %v495_v3  ;;  %v505_v7 = vld [vmem:[%s2844_s11 + $0x68] sm:$0xff]  ;;  %v528_v8 = vmul.f32 %v2836_v0, %v504_v4  ;;  %v492_v9 = vld [vmem:[%s2844_s11] sm:$0xff]  ;;  %v506_v17 = vld [vmem:[%s2844_s11 + $0x70] sm:$0xff]  ;;  %s4003_s14 = smov (!%p2890_p9, %s2504_s14), 15  ;;  %s3852_s24 = scalar_lea.vmem %s3914_s7, %s2237_s22 }
  0x17   : > { %v493_v10 = vld [vmem:[%s2844_s11 + $0x8] sm:$0xff]  ;;  %v529_v11 = vmul.f32 %v2836_v0, %v505_v7  ;;  %v516_v12 = vmul.f32 %v2836_v0, %v492_v9  ;;  %v507_v18 = vld [vmem:[%s2844_s11 + $0x78] sm:$0xff]  ;;  %s4001_s15 = smov (!%p2240_p8, %s438_s15), 15  ;;  %v530_v22 = vmul.f32 %v2836_v0, %v506_v17  ;;  %v496_v29 = vld [vmem:[%s2844_s11 + $0x20] sm:$0xff]  ;;  %s4005_s14 = smov (!%p2890_p9, %s4003_s14), 15 }
  0x18   : > { %v517_v13 = vmul.f32 %v2836_v0, %v493_v10  ;;  %v2864_v14 = vadd.f32 %v2847_v1, %v518_v5  ;;  %v2867_v15 = vadd.f32 %v2847_v1, %v519_v6  ;;  %v2870_v16 = vadd.f32 %v2847_v1, %v528_v8  ;;  %s2245_s19 = sshll.u32 %s4001_s15, 1  ;;  %v497_v45 = vld [vmem:[%s2844_s11 + $0x28] sm:$0xff]  ;;  %s2933_s8 = sshll.u32 %s4005_s14, 1 }
  0x19   : > { %v2875_v19 = vadd.f32 %v2847_v1, %v529_v11  ;;  %v2879_v20 = vadd.f32 %v2847_v1, %v516_v12  ;;  %v531_v25 = vmul.f32 %v2836_v0, %v507_v18  ;;  %v2897_v28 = vadd.f32 %v2847_v1, %v530_v22  ;;  %s445_s20 = sadd.s32 %s2245_s19, %s2814_s10  ;;  %s462_s16 = sadd.s32 %s2933_s8, %s2814_s10 }
  0x1a   : > { %v2882_v21 = vadd.f32 %v2847_v1, %v517_v13  ;;  %v2263_v23 = vmul.f32 -1.442695, %v2864_v14  ;;  %v2264_v24 = vmul.f32 -1.442695, %v2867_v15  ;;  %v2273_v26 = vmul.f32 -1.442695, %v2870_v16 }
  0x1b   : > { %v2274_v27 = vmul.f32 -1.442695, %v2875_v19  ;;  %v2261_v30 = vmul.f32 -1.442695, %v2879_v20  ;;  %v2903_v31 = vadd.f32 %v2847_v1, %v531_v25  ;;  %s2247_s23 = sshll.u32 %s445_s20, 3  ;;  %v520_v33 = vmul.f32 %v2836_v0, %v496_v29  ;;  %s2732_s19 = smov 32  }
  0x1c   : > { %2610 = vpow2.f32 %v2263_v23  ;;  %v2262_v32 = vmul.f32 -1.442695, %v2882_v21  ;;  %s447_s15 = scalar_lea.vmem %s3908_s1, %s2247_s23  ;;  %v2275_v34 = vmul.f32 -1.442695, %v2897_v28  ;;  %v521_v53 = vmul.f32 %v2836_v0, %v497_v45  ;;  %s2733_s20 = smov 64  }
  0x1d   : > { %2612 = vpow2.f32 %v2264_v24  ;;  %v490_v35 = vld [vmem:[%s447_s15] sm:$0xff]  ;;  %v491_v36 = vld [vmem:[%s447_s15 + $0x8] sm:$0xff]  ;;  %v2276_v37 = vmul.f32 -1.442695, %v2903_v31  ;;  %v2913_v38 = vadd.f32 %v2847_v1, %v520_v33  ;;  %s2972_s14 = scalar_select %p958_p10, 1, 0 }
  0x1e   : > { %2614 = vpow2.f32 %v2273_v26  ;;  %v514_v39 = vmul.f32 %v2836_v0, %v490_v35  ;;  %v515_v40 = vmul.f32 %v2836_v0, %v491_v36  ;;  %v2962_v4 = vadd.f32 %v2847_v1, %v521_v53  ;;  %s963_s15 = scalar_select %p962_p11, 1, 0 }
  0x1f   : > { %2616 = vpow2.f32 %v2274_v27  ;;  %v2265_v41 = vmul.f32 -1.442695, %v2913_v38 }
  0x20   : > { %2618 = vpow2.f32 %v2261_v30  ;;  %v2925_v43 = vadd.f32 %v2847_v1, %v514_v39  ;;  %v2928_v44 = vadd.f32 %v2847_v1, %v515_v40  ;;  %v960_v30 = vstv %s2972_s14 }
  0x21   : > { %2620 = vpow2.f32 %v2262_v32 }
  0x22   : > { %v2611_v42 = vpop.eup %2610  ;;  %2622 = vpow2.f32 %v2275_v34  ;;  %v2259_v51 = vmul.f32 -1.442695, %v2925_v43  ;;  %v2260_v55 = vmul.f32 -1.442695, %v2928_v44 }
  0x23   : > { %v2613_v46 = vpop.eup %2612  ;;  %v2931_v47 = vadd.f32 1.0, %v2611_v42  ;;  %2624 = vpow2.f32 %v2276_v37 }
  0x24   : > { %v2615_v48 = vpop.eup %2614  ;;  %v2935_v49 = vadd.f32 1.0, %v2613_v46  ;;  %2626 = vpow2.f32 %v2265_v41 }
  0x25   : > { %v2617_v52 = vpop.eup %2616  ;;  %2628 = vrcp.f32 %v2931_v47  ;;  %v707_v57 = vand.u32 2147483647, %v2931_v47  ;;  %v709_v58 = vand.u32 2147483648, %v2931_v47  ;;  %v2947_v59 = vadd.f32 1.0, %v2615_v48 }
  0x26   : > { %v2619_v54 = vpop.eup %2618  ;;  %2630 = vrcp.f32 %v2935_v49  ;;  %v2949_v60 = vadd.f32 1.0, %v2617_v52  ;;  %v722_v62 = vand.u32 2147483647, %v2935_v49  ;;  %vm703_vm0 = vweird.f32 %v2931_v47 }
  0x27   : > { %v2621_v56 = vpop.eup %2620  ;;  %2632 = vpow2.f32 %v2259_v51  ;;  %v724_v3 = vand.u32 2147483648, %v2935_v49  ;;  %vm718_vm1 = vweird.f32 %v2935_v49  ;;  %v857_v6 = vand.u32 2147483647, %v2947_v59 }
  0x28   : > { %v2951_v61 = vpop.eup %2622  ;;  %2634 = vrcp.f32 %v2947_v59  ;;  %v859_v7 = vand.u32 2147483648, %v2947_v59  ;;  %vm2974_vm2 = vcmp.eq.f32.partialorder %v707_v57, 8.507059e+37  ;;  %v710_v10 = vor.u32 1.1754944e-38, %v709_v58 }
  0x29   : > { %v2956_v2 = vpop.eup %2624  ;;  %2636 = vrcp.f32 %v2949_v60  ;;  %v874_v11 = vand.u32 2147483648, %v2949_v60  ;;  %vm2980_vm3 = vcmp.eq.f32.partialorder %v722_v62, 8.507059e+37  ;;  %v872_v18 = vand.u32 2147483647, %v2949_v60 }
  0x2a   : > { %v2964_v5 = vpop.eup %2626  ;;  %2638 = vpow2.f32 %v2260_v55  ;;  %v2985_v22 = vadd.f32 1.0, %v2619_v54  ;;  %v725_v24 = vor.u32 1.1754944e-38, %v724_v3  ;;  %vm853_vm4 = vweird.f32 %v2947_v59 }
  0x2b   : > { %v2629_v8 = vpop.eup %2628  ;;  %vm868_vm5 = vweird.f32 %v2949_v60  ;;  %vm2990_vm7 = vcmp.eq.f32.partialorder %v857_v6, 8.507059e+37  ;;  %v860_v29 = vor.u32 1.1754944e-38, %v859_v7  ;;  %v2995_v34 = vor.u32 1.1754944e-38, %v874_v11 }
  0x2c   : > { %v2631_v12 = vpop.eup %2630  ;;  %v699_v13 = vmul.f32 %v2629_v8, %v2931_v47  ;;  %vm704_vm6 = vweird.f32 %v2629_v8  ;;  %vm3001_vm10 = vcmp.eq.f32.partialorder %v872_v18, 8.507059e+37  ;;  %v3005_v41 = vadd.f32 1.0, %v2621_v56 }
  0x2d   : > { %v714_v23 = vmul.f32 %v2631_v12, %v2935_v49  ;;  %v2633_v25 = vpop.eup %2632  ;;  %vm719_vm8 = vweird.f32 %v2631_v12  ;;  %2640 = vrcp.f32 %v2985_v22  ;;  %vm3011_vm11 = vmor %vm703_vm0, %vm704_vm6  ;;  %v677_v50 = vand.u32 2147483647, %v2985_v22 }
  0x2e   : > { %v700_v26 = vsub.f32 1.0, %v699_v13  ;;  %v2635_v32 = vpop.eup %2634  ;;  %v2997_v35 = vadd.f32 1.0, %v2633_v25  ;;  %vm3021_vm12 = vmor %vm718_vm1, %vm719_vm8  ;;  %v679_v57 = vand.u32 2147483648, %v2985_v22 }
  0x2f   : > { %v715_v33 = vsub.f32 1.0, %v714_v23  ;;  %v2637_v36 = vpop.eup %2636  ;;  %v849_v39 = vmul.f32 %v2635_v32, %v2947_v59  ;;  %vm854_vm13 = vweird.f32 %v2635_v32 }
  0x30   : > { %v701_v37 = vmul.f32 %v2629_v8, %v700_v26  ;;  %v2639_v42 = vpop.eup %2638  ;;  %v864_v48 = vmul.f32 %v2637_v36, %v2949_v60  ;;  %2642 = vrcp.f32 %v2997_v35  ;;  %v649_v56 = vand.u32 2147483648, %v2997_v35  ;;  %vm3038_vm15 = vmor %vm853_vm4, %vm854_vm13 }
  0x31   : > { %v716_v46 = vmul.f32 %v2631_v12, %v715_v33  ;;  %v850_v47 = vsub.f32 1.0, %v849_v39  ;;  %v3025_v53 = vadd.f32 1.0, %v2639_v42  ;;  %vm869_vm14 = vweird.f32 %v2637_v36 }
  0x32   : > { %v702_v51 = vadd.f32 %v2629_v8, %v701_v37  ;;  %v865_v55 = vsub.f32 1.0, %v864_v48  ;;  %2644 = vrcp.f32 %v3005_v41  ;;  %v647_v11 = vand.u32 2147483647, %v2997_v35  ;;  %vm3059_vm0 = vmor %vm868_vm5, %vm869_vm14 }
  0x33   : > { %v717_v54 = vadd.f32 %v2631_v12, %v716_v46  ;;  %v851_v62 = vmul.f32 %v2635_v32, %v850_v47  ;;  %2646 = vrcp.f32 %v3025_v53  ;;  %vm643_vm1 = vweird.f32 %v2997_v35 }
  0x34   : > { %v706_v58 = vsel %vm3011_vm11, %v2629_v8, %v702_v51  ;;  %v866_v7 = vmul.f32 %v2637_v36, %v865_v55  ;;  %v3043_v8 = vpop.eup %2640  ;;  %v662_v25 = vand.u32 2147483647, %v3025_v53  ;;  %v664_v39 = vand.u32 2147483648, %v3025_v53 }
  0x35   : > { %v711_v49 = vsel %vm2974_vm2, %v710_v10, %v706_v58  ;;  %v721_v3 = vsel %vm3021_vm12, %v2631_v12, %v717_v54  ;;  %v852_v10 = vadd.f32 %v2635_v32, %v851_v62  ;;  %vm3077_vm2 = vcmp.eq.f32.partialorder %v647_v11, 8.507059e+37 }
  0x36   : > { %v726_v13 = vsel %vm2980_vm3, %v725_v24, %v721_v3  ;;  %v3048_v9 = vmul.f32 %v711_v49, %v2864_v14  ;;  %v3051_v12 = vpop.eup %2642  ;;  %v867_v18 = vadd.f32 %v2637_v36, %v866_v7  ;;  %v3064_v14 = vor.u32 1.1754944e-38, %v649_v56 }
  0x37   : > { %v3054_v59 = vmul.f32 %v726_v13, %v2867_v15  ;;  %v856_v15 = vsel %vm3038_vm15, %v2635_v32, %v852_v10  ;;  %vm658_vm3 = vweird.f32 %v3025_v53  ;;  %v639_v27 = vmul.f32 %v3051_v12, %v2997_v35 }
  0x38   : > { %v1098_v17 = vpack.c.bf16 %v3048_v9, %v3048_v9  ;;  %v1035_v24 = vrot.slane %v3048_v9, 1  ;;  %v861_v33 = vsel %vm2990_vm7, %v860_v29, %v856_v15  ;;  %v3083_v32 = vpop.eup %2644  ;;  %v871_v45 = vsel %vm3059_vm0, %v2637_v36, %v867_v18 }
  0x39   : > { %v1099_v60 = vpack.c.bf16 %v3054_v59, %v3054_v59  ;;  %v1045_v26 = vrot.slane %v3054_v59, 1  ;;  %v3088_v46 = vmul.f32 %v861_v33, %v2870_v16  ;;  %v876_v52 = vsel %vm3001_vm10, %v2995_v34, %v871_v45  ;;  %v2647_v47 = vpop.eup %2646 }
  0x3a   : > { %v1208_v42 = vunpack.c.l.b16 %v1098_v17  ;;  %v3100_v16 = vmul.f32 %v876_v52, %v2875_v19  ;;  %vm3106_vm4 = vcmp.eq.s32.totalorder %v960_v30, 1  ;;  %vm673_vm5 = vweird.f32 %v2985_v22 }
  0x3b   : > { %v1209_v29 = vunpack.c.l.b16 %v1099_v60  ;;  %v1056_v48 = vsel %vm1053_vm9, %v1035_v24, %v1045_v26  ;;  %v1066_v51 = vsel %vm1053_vm9, %v1045_v26, %v1035_v24  ;;  %v1108_v55 = vpack.c.bf16 %v3088_v46, %v3088_v46 }
  0x3c   : > { %v1118_v54 = vpack.c.bf16 %v1056_v48, %v1056_v48  ;;  %v1119_v36 = vpack.c.bf16 %v1066_v51, %v1066_v51  ;;  %v1040_v40 = vrot.slane %v3088_v46, 1  ;;  %v640_v34 = vsub.f32 1.0, %v639_v27 }
  0x3d   : > { %v1226_v58 = vpack.c.b16 %v1209_v29, %v1208_v42  ;;  %vm644_vm6 = vweird.f32 %v3051_v12  ;;  %v1109_v19 = vpack.c.bf16 %v3100_v16, %v3100_v16  ;;  %v1218_v3 = vunpack.c.l.b16 %v1108_v55 }
  0x3e   : > { %v1278_v62 = vunpack.c.l.b16 %v1118_v54  ;;  %v1279_v49 = vunpack.c.l.b16 %v1119_v36  ;;  %v1050_v30 = vrot.slane %v3100_v16, 1  ;;  %v641_v6 = vmul.f32 %v3051_v12, %v640_v34  ;;  %vm3121_vm8 = vmor %vm643_vm1, %vm644_vm6 }
  0x3f   : > { %1238 = vrot.lane.b32.xlu0 %v1226_v58, %s2732_s19  ;;  %v654_v7 = vmul.f32 %v2647_v47, %v3025_v53  ;;  %vm659_vm7 = vweird.f32 %v2647_v47  ;;  %v1219_v13 = vunpack.c.l.b16 %v1109_v19  ;;  %vm3125_vm10 = vcmp.eq.f32.partialorder %v662_v25, 8.507059e+37 }
  0x40   : > { %v1296_v11 = vpack.c.b16 %v1279_v49, %v1278_v62  ;;  %v665_v23 = vor.u32 1.1754944e-38, %v664_v39  ;;  %v1061_v17 = vsel %vm1053_vm9, %v1040_v40, %v1050_v30  ;;  %v1071_v24 = vsel %vm1053_vm9, %v1050_v30, %v1040_v40  ;;  %vm3149_vm12 = vmor %vm658_vm3, %vm659_vm7 }
  0x41   : > { %v642_v15 = vadd.f32 %v3051_v12, %v641_v6  ;;  %v655_v60 = vsub.f32 1.0, %v654_v7  ;;  %v1231_v35 = vpack.c.b16 %v1219_v13, %v1218_v3  ;;  %v1128_v26 = vpack.c.bf16 %v1061_v17, %v1061_v17 }
  0x42   : > { %1308 = vrot.lane.b32.xlu1 %v1296_v11, %s2733_s20  ;;  %v1129_v33 = vpack.c.bf16 %v1071_v24, %v1071_v24  ;;  %v669_v25 = vmul.f32 %v3043_v8, %v2985_v22  ;;  %vm674_vm11 = vweird.f32 %v3043_v8  ;;  %v680_v45 = vor.u32 1.1754944e-38, %v679_v57  ;;  %v498_v22 = vld [vmem:[%s2844_s11 + $0x30] sm:$0xff] }
  0x43   : > { %v646_v39 = vsel %vm3121_vm8, %v3051_v12, %v642_v15  ;;  %v656_v42 = vmul.f32 %v2647_v47, %v655_v60  ;;  %v1288_v27 = vunpack.c.l.b16 %v1128_v26  ;;  %v684_v57 = vmul.f32 %v3083_v32, %v3005_v41  ;;  %vm3171_vm15 = vmor %vm673_vm5, %vm674_vm11 }
  0x44   : > { %v1289_v29 = vunpack.c.l.b16 %v1129_v33  ;;  %v651_v48 = vsel %vm3077_vm2, %v3064_v14, %v646_v39  ;;  %v670_v12 = vsub.f32 1.0, %v669_v25  ;;  %vm688_vm13 = vweird.f32 %v3005_v41 }
  0x45   : > { %v657_v52 = vadd.f32 %v2647_v47, %v656_v42  ;;  %v938_v54 = vmul.f32 %v651_v48, %v2925_v43  ;;  %vm689_vm14 = vweird.f32 %v3083_v32  ;;  %v692_v53 = vand.u32 2147483647, %v3005_v41 }
  0x46   : > { %v1301_v36 = vpack.c.b16 %v1289_v29, %v1288_v27  ;;  %v671_v37 = vmul.f32 %v3043_v8, %v670_v12  ;;  %v685_v58 = vsub.f32 1.0, %v684_v57  ;;  %v694_v40 = vand.u32 2147483648, %v3005_v41  ;;  %vm3194_vm1 = vmor %vm688_vm13, %vm689_vm14 }
  0x47   : > { %1248 = vrot.lane.b32.xlu0 %v1231_v35, %s2732_s19  ;;  %v661_v14 = vsel %vm3149_vm12, %v2647_v47, %v657_v52  ;;  %v3165_v43 = vsel %vm3106_vm4, %v938_v54, 0.0  ;;  %vm678_vm0 = vcmp.eq.f32.partialorder %v677_v50, 8.507059e+37  ;;  %v2266_v62 = vmul.f32 -1.442695, %v2962_v4 }
  0x48   : > { %v666_v34 = vsel %vm3125_vm10, %v665_v23, %v661_v14  ;;  %v672_v47 = vadd.f32 %v3043_v8, %v671_v37  ;;  %v1033_v19 = vrot.slane %v3165_v43, 1  ;;  %v686_v3 = vmul.f32 %v3083_v32, %v685_v58 }
  0x49   : > { %v939_v49 = vmul.f32 %v666_v34, %v2928_v44  ;;  %v634_v30 = vadd.f32 1.0, %v2951_v61  ;;  %vm3198_vm2 = vcmp.eq.f32.partialorder %v692_v53, 8.507059e+37  ;;  %v695_v50 = vor.u32 1.1754944e-38, %v694_v40 }
  0x4a   : > { %1318 = vrot.lane.b32.xlu1 %v1301_v36, %s2733_s20  ;;  %v676_v6 = vsel %vm3171_vm15, %v3043_v8, %v672_v47  ;;  %v3203_v61 = vadd.f32 1.0, %v2956_v2  ;;  %v687_v11 = vadd.f32 %v3083_v32, %v686_v3  ;;  %v3219_v56 = vadd.f32 1.0, %v2964_v5 }
  0x4b   : > { %v3207_v7 = vsel %vm3106_vm4, %v939_v49, 0.0  ;;  %v681_v8 = vsel %vm678_vm0, %v680_v45, %v676_v6  ;;  %2648 = vrcp.f32 %v634_v30  ;;  %v887_v10 = vand.u32 2147483647, %v634_v30 }
  0x4c   : > { %v1043_v41 = vrot.slane %v3207_v7, 1  ;;  %v3212_v13 = vmul.f32 %v681_v8, %v2879_v20  ;;  %2650 = vpow2.f32 %v2266_v62  ;;  %v691_v2 = vsel %vm3194_vm1, %v3083_v32, %v687_v11  ;;  %v499_v11 = vld [vmem:[%s2844_s11 + $0x38] sm:$0xff]  ;;  %v500_v62 = vld [vmem:[%s2844_s11 + $0x40] sm:$0xff] }
  0x4d   : > { %2652 = vrcp.f32 %v3203_v61  ;;  %v696_v20 = vsel %vm3198_vm2, %v695_v50, %v691_v2  ;;  %vm883_vm3 = vweird.f32 %v634_v30  ;;  %vm3231_vm4 = vcmp.eq.f32.partialorder %v887_v10, 8.507059e+37 }
  0x4e   : > { %v1054_v18 = vsel %vm1053_vm9, %v1033_v19, %v1043_v41  ;;  %v1064_v23 = vsel %vm1053_vm9, %v1043_v41, %v1033_v19  ;;  %v3228_v15 = vmul.f32 %v696_v20, %v2882_v21  ;;  %v1034_v32 = vrot.slane %v3212_v13, 1  ;;  %v501_v41 = vld [vmem:[%s2844_s11 + $0x48] sm:$0xff] }
  0x4f   : > { %v1114_v17 = vpack.c.bf16 %v1054_v18, %v1054_v18  ;;  %v1115_v24 = vpack.c.bf16 %v1064_v23, %v1064_v23  ;;  %v889_v60 = vand.u32 2147483648, %v634_v30  ;;  %vm898_vm5 = vweird.f32 %v3203_v61  ;;  %v502_v18 = vld [vmem:[%s2844_s11 + $0x50] sm:$0xff] }
  0x50   : > { %v1096_v35 = vpack.c.bf16 %v3212_v13, %v3212_v13  ;;  %v1044_v39 = vrot.slane %v3228_v15, 1  ;;  %v1097_v21 = vpack.c.bf16 %v3228_v15, %v3228_v15  ;;  %v902_v27 = vand.u32 2147483647, %v3203_v61 }
  0x51   : > { %v2649_v26 = vpop.eup %2648  ;;  %v1274_v33 = vunpack.c.l.b16 %v1114_v17  ;;  %v1275_v25 = vunpack.c.l.b16 %v1115_v24  ;;  %v904_v29 = vand.u32 2147483648, %v3203_v61  ;;  %2654 = vrcp.f32 %v3219_v56 }
  0x52   : > { %v2651_v42 = vpop.eup %2650  ;;  %v879_v45 = vmul.f32 %v2649_v26, %v634_v30  ;;  %vm884_vm6 = vweird.f32 %v2649_v26  ;;  %v1055_v12 = vsel %vm1053_vm9, %v1034_v32, %v1044_v39  ;;  %v1065_v52 = vsel %vm1053_vm9, %v1044_v39, %v1034_v32 }
  0x53   : > { %v2653_v48 = vpop.eup %2652  ;;  %v1294_v51 = vpack.c.b16 %v1275_v25, %v1274_v33  ;;  %v1206_v54 = vunpack.c.l.b16 %v1096_v35  ;;  %v1116_v57 = vpack.c.bf16 %v1055_v12, %v1055_v12  ;;  %v1117_v36 = vpack.c.bf16 %v1065_v52, %v1065_v52  ;;  %vm3254_vm8 = vmor %vm883_vm3, %vm884_vm6  ;;  %v503_v52 = vld [vmem:[%s2844_s11 + $0x58] sm:$0xff]  ;;  %s2254_s11 = sshll.u32 %s462_s16, 3 }
  0x54   : > { %v880_v37 = vsub.f32 1.0, %v879_v45  ;;  %v894_v53 = vmul.f32 %v2653_v48, %v3203_v61  ;;  %vm899_vm7 = vweird.f32 %v2653_v48  ;;  %v1207_v14 = vunpack.c.l.b16 %v1097_v21  ;;  %s3439_s9 = scalar_lea.vmem %s3909_s2, %s2254_s11 }
  0x55   : > { %1304 = vrot.lane.b32.xlu0 %v1294_v51, %s2733_s20  ;;  %v3249_v55 = vadd.f32 1.0, %v2651_v42  ;;  %v1276_v58 = vunpack.c.l.b16 %v1116_v57  ;;  %v1277_v40 = vunpack.c.l.b16 %v1117_v36  ;;  %v890_v49 = vor.u32 1.1754944e-38, %v889_v60  ;;  %vm3266_vm10 = vmor %vm898_vm5, %vm899_vm7 }
  0x56   : > { %v881_v34 = vmul.f32 %v2649_v26, %v880_v37  ;;  %v895_v47 = vsub.f32 1.0, %v894_v53  ;;  %v1225_v19 = vpack.c.b16 %v1207_v14, %v1206_v54  ;;  %v737_v3 = vand.u32 2147483647, %v3219_v56 }
  0x57   : > { %v739_v6 = vand.u32 2147483648, %v3219_v56  ;;  %v1295_v44 = vpack.c.b16 %v1277_v40, %v1276_v58  ;;  %2656 = vrcp.f32 %v3249_v55  ;;  %vm3270_vm11 = vcmp.eq.f32.partialorder %v902_v27, 8.507059e+37  ;;  %v2655_v32 = vpop.eup %2654 }
  0x58   : > { %v882_v50 = vadd.f32 %v2649_v26, %v881_v34  ;;  %v896_v8 = vmul.f32 %v2653_v48, %v895_v47  ;;  %v905_v10 = vor.u32 1.1754944e-38, %v904_v29  ;;  %1236 = vrot.lane.b32.xlu2 %v1225_v19, %s2732_s19  ;;  %vm733_vm12 = vweird.f32 %v3219_v56 }
  0x59   : > { %v752_v2 = vand.u32 2147483647, %v3249_v55  ;;  %1306 = vrot.lane.b32.xlu1 %v1295_v44, %s2733_s20  ;;  %vm3281_vm13 = vcmp.eq.f32.partialorder %v737_v3, 8.507059e+37  ;;  %v740_v17 = vor.u32 1.1754944e-38, %v739_v6  ;;  %v522_v24 = vmul.f32 %v2836_v0, %v498_v22 }
  0x5a   : > { %v886_v61 = vsel %vm3254_vm8, %v2649_v26, %v882_v50  ;;  %v897_v23 = vadd.f32 %v2653_v48, %v896_v8  ;;  %vm748_vm14 = vweird.f32 %v3249_v55  ;;  %v754_v35 = vand.u32 2147483648, %v3249_v55 }
  0x5b   : > { %v891_v60 = vsel %vm3231_vm4, %v890_v49, %v886_v61  ;;  %v523_v33 = vmul.f32 %v2836_v0, %v499_v11  ;;  %v729_v39 = vmul.f32 %v2655_v32, %v3219_v56  ;;  %v526_v21 = vmul.f32 %v2836_v0, %v502_v18 }
  0x5c   : > { %v901_v26 = vsel %vm3266_vm10, %v2653_v48, %v897_v23  ;;  %v3294_v25 = vmul.f32 %v891_v60, %v2897_v28  ;;  %vm734_vm15 = vweird.f32 %v2655_v32  ;;  %vm3300_vm0 = vcmp.eq.f32.partialorder %v752_v2, 8.507059e+37 }
  0x5d   : > { %v906_v5 = vsel %vm3270_vm11, %v905_v10, %v901_v26  ;;  %v3305_v45 = vadd.f32 %v2847_v1, %v522_v24  ;;  %v3308_v27 = vadd.f32 %v2847_v1, %v523_v33  ;;  %v2657_v28 = vpop.eup %2656  ;;  %v730_v51 = vsub.f32 1.0, %v729_v39  ;;  %vm3328_vm2 = vmor %vm733_vm12, %vm734_vm15 }
  0x5e   : > { %v3311_v29 = vmul.f32 %v906_v5, %v2903_v31  ;;  %v1110_v48 = vpack.c.bf16 %v3294_v25, %v3294_v25  ;;  %v1094_v12 = vpack.c.bf16 %v3165_v43, %v3165_v43  ;;  %v744_v54 = vmul.f32 %v2657_v28, %v3249_v55 }
  0x5f   : > { %vm749_vm1 = vweird.f32 %v2657_v28  ;;  %v2267_v57 = vmul.f32 -1.442695, %v3305_v45  ;;  %v2268_v36 = vmul.f32 -1.442695, %v3308_v27  ;;  %v731_v53 = vmul.f32 %v2655_v32, %v730_v51 }
  0x60   : > { %v1111_v31 = vpack.c.bf16 %v3311_v29, %v3311_v29  ;;  %v1220_v37 = vunpack.c.l.b16 %v1110_v48  ;;  %v1095_v14 = vpack.c.bf16 %v3207_v7, %v3207_v7  ;;  %v745_v40 = vsub.f32 1.0, %v744_v54  ;;  %vm3345_vm3 = vmor %vm748_vm14, %vm749_vm1 }
  0x61   : > { %2658 = vpow2.f32 %v2267_v57  ;;  %v1204_v34 = vunpack.c.l.b16 %v1094_v12  ;;  %v527_v47 = vmul.f32 %v2836_v0, %v503_v52  ;;  %v732_v19 = vadd.f32 %v2655_v32, %v731_v53 }
  0x62   : > { %v1221_v49 = vunpack.c.l.b16 %v1111_v31  ;;  %2660 = vpow2.f32 %v2268_v36  ;;  %v1205_v3 = vunpack.c.l.b16 %v1095_v14  ;;  %v746_v6 = vmul.f32 %v2657_v28, %v745_v40 }
  0x63   : > { %v755_v22 = vor.u32 1.1754944e-38, %v754_v35  ;;  %v3335_v44 = vadd.f32 %v2847_v1, %v526_v21  ;;  %v3338_v56 = vadd.f32 %v2847_v1, %v527_v47  ;;  %v736_v8 = vsel %vm3328_vm2, %v2655_v32, %v732_v19 }
  0x64   : > { %v1232_v50 = vpack.c.b16 %v1221_v49, %v1220_v37  ;;  %v1224_v30 = vpack.c.b16 %v1205_v3, %v1204_v34  ;;  %v524_v10 = vmul.f32 %v2836_v0, %v500_v62  ;;  %v741_v2 = vsel %vm3281_vm13, %v740_v17, %v736_v8 }
  0x65   : > { %v747_v18 = vadd.f32 %v2657_v28, %v746_v6  ;;  %v2271_v61 = vmul.f32 -1.442695, %v3335_v44  ;;  %v2272_v23 = vmul.f32 -1.442695, %v3338_v56  ;;  %v3357_v55 = vmul.f32 %v741_v2, %v2913_v38 }
  0x66   : > { %1250 = vrot.lane.b32.xlu0 %v1232_v50, %s2732_s19  ;;  %1234 = vrot.lane.b32.xlu2 %v1224_v30, %s2732_s19  ;;  %v525_v20 = vmul.f32 %v2836_v0, %v501_v41  ;;  %v3366_v33 = vadd.f32 %v2847_v1, %v524_v10  ;;  %v1041_v50 = vrot.slane %v3294_v25, 1  ;;  %v1051_v8 = vrot.slane %v3311_v29, 1 }
  0x67   : > { %v2659_v24 = vpop.eup %2658  ;;  %v751_v32 = vsel %vm3345_vm3, %v2657_v28, %v747_v18  ;;  %2662 = vpow2.f32 %v2271_v61  ;;  %v1036_v26 = vrot.slane %v3357_v55, 1  ;;  %v1100_v21 = vpack.c.bf16 %v3357_v55, %v3357_v55 }
  0x68   : > { %v2661_v17 = vpop.eup %2660  ;;  %v756_v60 = vsel %vm3300_vm0, %v755_v22, %v751_v32  ;;  %v626_v35 = vadd.f32 1.0, %v2659_v24  ;;  %2664 = vpow2.f32 %v2272_v23  ;;  %v3378_v51 = vadd.f32 %v2847_v1, %v525_v20 }
  0x69   : > { %v3369_v38 = vmul.f32 %v756_v60, %v2962_v4  ;;  %v627_v39 = vadd.f32 1.0, %v2661_v17  ;;  %v2269_v4 = vmul.f32 -1.442695, %v3366_v33  ;;  %v1210_v34 = vunpack.c.l.b16 %v1100_v21 }
  0x6a   : > { %2666 = vrcp.f32 %v626_v35  ;;  %v767_v28 = vand.u32 2147483647, %v626_v35  ;;  %v769_v42 = vand.u32 2147483648, %v626_v35  ;;  %vm763_vm4 = vweird.f32 %v626_v35 }
  0x6b   : > { %v1046_v5 = vrot.slane %v3369_v38, 1  ;;  %2668 = vrcp.f32 %v627_v39  ;;  %v1101_v48 = vpack.c.bf16 %v3369_v38, %v3369_v38  ;;  %vm778_vm5 = vweird.f32 %v627_v39 }
  0x6c   : > { %v782_v37 = vand.u32 2147483647, %v627_v39  ;;  %vm3387_vm6 = vcmp.eq.f32.partialorder %v767_v28, 8.507059e+37  ;;  %v770_v14 = vor.u32 1.1754944e-38, %v769_v42  ;;  %v784_v58 = vand.u32 2147483648, %v627_v39 }
  0x6d   : > { %v2663_v12 = vpop.eup %2662  ;;  %v1057_v52 = vsel %vm1053_vm9, %v1036_v26, %v1046_v5  ;;  %v1067_v54 = vsel %vm1053_vm9, %v1046_v5, %v1036_v26  ;;  %v1211_v19 = vunpack.c.l.b16 %v1101_v48  ;;  %v1062_v20 = vsel %vm1053_vm9, %v1041_v50, %v1051_v8 }
  0x6e   : > { %v2665_v57 = vpop.eup %2664  ;;  %v1120_v36 = vpack.c.bf16 %v1057_v52, %v1057_v52  ;;  %v1121_v31 = vpack.c.bf16 %v1067_v54, %v1067_v54  ;;  %v3385_v53 = vadd.f32 1.0, %v2663_v12  ;;  %vm3397_vm7 = vcmp.eq.f32.partialorder %v782_v37, 8.507059e+37 }
  0x6f   : > { %v3391_v40 = vadd.f32 1.0, %v2665_v57  ;;  %v785_v2 = vor.u32 1.1754944e-38, %v784_v58  ;;  %v1227_v23 = vpack.c.b16 %v1211_v19, %v1210_v34  ;;  %v1072_v17 = vsel %vm1053_vm9, %v1051_v8, %v1041_v50 }
  0x70   : > { %v2667_v47 = vpop.eup %2666  ;;  %v1280_v62 = vunpack.c.l.b16 %v1120_v36  ;;  %v1281_v49 = vunpack.c.l.b16 %v1121_v31  ;;  %2670 = vrcp.f32 %v3385_v53  ;;  %v827_v22 = vand.u32 2147483647, %v3385_v53 }
  0x71   : > { %v2669_v3 = vpop.eup %2668  ;;  %v759_v6 = vmul.f32 %v2667_v47, %v626_v35  ;;  %2672 = vrcp.f32 %v3391_v40  ;;  %vm764_vm8 = vweird.f32 %v2667_v47  ;;  %vm823_vm10 = vweird.f32 %v3385_v53  ;;  %1240 = vrot.lane.b32.xlu2 %v1227_v23, %s2732_s19 }
  0x72   : > { %v1297_v11 = vpack.c.b16 %v1281_v49, %v1280_v62  ;;  %v774_v30 = vmul.f32 %v2669_v3, %v627_v39  ;;  %vm779_vm11 = vweird.f32 %v2669_v3  ;;  %v829_v61 = vand.u32 2147483648, %v3385_v53  ;;  %vm3414_vm13 = vmor %vm763_vm4, %vm764_vm8 }
  0x73   : > { %v760_v10 = vsub.f32 1.0, %v759_v6  ;;  %vm3405_vm12 = vcmp.eq.f32.partialorder %v827_v22, 8.507059e+37  ;;  %2674 = vpow2.f32 %v2269_v4  ;;  %vm838_vm14 = vweird.f32 %v3391_v40  ;;  %vm3426_vm15 = vmor %vm778_vm5, %vm779_vm11 }
  0x74   : > { %1310 = vrot.lane.b32.xlu1 %v1297_v11, %s2733_s20  ;;  %v775_v18 = vsub.f32 1.0, %v774_v30  ;;  %v842_v5 = vand.u32 2147483647, %v3391_v40  ;;  %v1130_v28 = vpack.c.bf16 %v1062_v20, %v1062_v20  ;;  %v844_v4 = vand.u32 2147483648, %v3391_v40  ;;  %v508_v11 = vld [vmem:[%s3439_s9] sm:$0xff] }
  0x75   : > { %v761_v24 = vmul.f32 %v2667_v47, %v760_v10  ;;  %v1131_v12 = vpack.c.bf16 %v1072_v17, %v1072_v17  ;;  %v2270_v36 = vmul.f32 -1.442695, %v3378_v51  ;;  %v532_v20 = vmul.f32 %v2836_v0, %v508_v11  ;;  %v2691_v10 = vld [vmem:[%s2826_s17] ss:$0 sm:$0xff] }
  0x76   : > { %v2671_v60 = vpop.eup %2670  ;;  %v776_v21 = vmul.f32 %v2669_v3, %v775_v18  ;;  %v1290_v57 = vunpack.c.l.b16 %v1130_v28  ;;  %vm3465_vm3 = vcmp.eq.f32.partialorder %v842_v5, 8.507059e+37 }
  0x77   : > { %v762_v42 = vadd.f32 %v2667_v47, %v761_v24  ;;  %v819_v35 = vmul.f32 %v2671_v60, %v3385_v53  ;;  %v2673_v52 = vpop.eup %2672  ;;  %vm824_vm0 = vweird.f32 %v2671_v60  ;;  %v1291_v62 = vunpack.c.l.b16 %v1131_v12 }
  0x78   : > { %v777_v54 = vadd.f32 %v2669_v3, %v776_v21  ;;  %v834_v39 = vmul.f32 %v2673_v52, %v3391_v40  ;;  %vm839_vm1 = vweird.f32 %v2673_v52  ;;  %2676 = vpow2.f32 %v2270_v36  ;;  %vm3456_vm2 = vmor %vm823_vm10, %vm824_vm0 }
  0x79   : > { %v766_v31 = vsel %vm3414_vm13, %v2667_v47, %v762_v42  ;;  %v820_v37 = vsub.f32 1.0, %v819_v35  ;;  %v2675_v49 = vpop.eup %2674  ;;  %vm3474_vm4 = vmor %vm838_vm14, %vm839_vm1  ;;  %vm1012_vm14 = vcmp.lt.s32.totalorder %v2954_v63, 1 }
  0x7a   : > { %v771_v58 = vsel %vm3387_vm6, %v770_v14, %v766_v31  ;;  %v781_v34 = vsel %vm3426_vm15, %v2669_v3, %v777_v54  ;;  %v835_v22 = vsub.f32 1.0, %v834_v39  ;;  %v830_v14 = vor.u32 1.1754944e-38, %v829_v61 }
  0x7b   : > { %v786_v47 = vsel %vm3397_vm7, %v785_v2, %v781_v34  ;;  %v3448_v19 = vmul.f32 %v771_v58, %v3305_v45  ;;  %v821_v6 = vmul.f32 %v2671_v60, %v820_v37  ;;  %v1302_v3 = vpack.c.b16 %v1291_v62, %v1290_v57  ;;  %v2690_v37 = vld [vmem:[%s2820_s13] ss:$0 sm:$0xff] }
  0x7c   : > { %v3451_v50 = vmul.f32 %v786_v47, %v3308_v27  ;;  %v3460_v8 = vadd.f32 1.0, %v2675_v49  ;;  %v836_v41 = vmul.f32 %v2673_v52, %v835_v22  ;;  %v845_v2 = vor.u32 1.1754944e-38, %v844_v4 }
  0x7d   : > { %v1102_v45 = vpack.c.bf16 %v3448_v19, %v3448_v19  ;;  %v822_v30 = vadd.f32 %v2671_v60, %v821_v6  ;;  %1320 = vrot.lane.b32.xlu2 %v1302_v3, %s2733_s20  ;;  %v1037_v18 = vrot.slane %v3448_v19, 1 }
  0x7e   : > { %v1103_v53 = vpack.c.bf16 %v3451_v50, %v3451_v50  ;;  %2678 = vrcp.f32 %v3460_v8  ;;  %v837_v24 = vadd.f32 %v2673_v52, %v836_v41  ;;  %v2677_v40 = vpop.eup %2676  ;;  %v797_v21 = vand.u32 2147483647, %v3460_v8 }
  0x7f   : > { %v1212_v61 = vunpack.c.l.b16 %v1102_v45  ;;  %v826_v23 = vsel %vm3456_vm2, %v2671_v60, %v822_v30  ;;  %v1047_v5 = vrot.slane %v3451_v50, 1  ;;  %v3493_v48 = vadd.f32 1.0, %v2677_v40  ;;  %v509_v60 = vld [vmem:[%s3439_s9 + $0x8] sm:$0xff] }
  0x80   : > { %v1213_v17 = vunpack.c.l.b16 %v1103_v53  ;;  %v831_v26 = vsel %vm3405_vm12, %v830_v14, %v826_v23  ;;  %v841_v28 = vsel %vm3474_vm4, %v2673_v52, %v837_v24  ;;  %v799_v0 = vand.u32 2147483648, %v3460_v8 }
  0x81   : > { %v3491_v42 = vmul.f32 %v831_v26, %v3335_v44  ;;  %v846_v32 = vsel %vm3465_vm3, %v845_v2, %v841_v28  ;;  %v1058_v4 = vsel %vm1053_vm9, %v1037_v18, %v1047_v5  ;;  %v1068_v12 = vsel %vm1053_vm9, %v1047_v5, %v1037_v18 }
  0x82   : > { %v1228_v35 = vpack.c.b16 %v1213_v17, %v1212_v61  ;;  %v3504_v52 = vmul.f32 %v846_v32, %v3338_v56  ;;  %2680 = vrcp.f32 %v3493_v48  ;;  %vm793_vm5 = vweird.f32 %v3460_v8 }
  0x83   : > { %v1106_v44 = vpack.c.bf16 %v3491_v42, %v3491_v42  ;;  %v1039_v54 = vrot.slane %v3491_v42, 1  ;;  %vm3512_vm6 = vcmp.eq.f32.partialorder %v797_v21, 8.507059e+37  ;;  %v1122_v31 = vpack.c.bf16 %v1058_v4, %v1058_v4 }
  0x84   : > { %v2679_v57 = vpop.eup %2678  ;;  %1242 = vrot.lane.b32.xlu0 %v1228_v35, %s2732_s19  ;;  %v533_v56 = vmul.f32 %v2690_v37, %v509_v60  ;;  %v1107_v39 = vpack.c.bf16 %v3504_v52, %v3504_v52  ;;  %v1049_v34 = vrot.slane %v3504_v52, 1  ;;  %v800_v49 = vor.u32 1.1754944e-38, %v799_v0 }
  0x85   : > { %v1216_v58 = vunpack.c.l.b16 %v1106_v44  ;;  %v789_v62 = vmul.f32 %v2679_v57, %v3460_v8  ;;  %vm794_vm7 = vweird.f32 %v2679_v57  ;;  %vm808_vm8 = vweird.f32 %v3493_v48 }
  0x86   : > { %v1123_v47 = vpack.c.bf16 %v1068_v12, %v1068_v12  ;;  %v1217_v6 = vunpack.c.l.b16 %v1107_v39  ;;  %v1060_v22 = vsel %vm1053_vm9, %v1039_v54, %v1049_v34  ;;  %v1070_v1 = vsel %vm1053_vm9, %v1049_v34, %v1039_v54  ;;  %vm3534_vm10 = vmor %vm793_vm5, %vm794_vm7 }
  0x87   : > { %v790_v14 = vsub.f32 1.0, %v789_v62  ;;  %v1126_v3 = vpack.c.bf16 %v1060_v22, %v1060_v22  ;;  %v1127_v11 = vpack.c.bf16 %v1070_v1, %v1070_v1  ;;  %v1282_v45 = vunpack.c.l.b16 %v1122_v31 }
  0x88   : > { %v1283_v30 = vunpack.c.l.b16 %v1123_v47  ;;  %v2681_v41 = vpop.eup %2680  ;;  %v1230_v27 = vpack.c.b16 %v1217_v6, %v1216_v58  ;;  %v3527_v2 = vadd.f32 %v2691_v10, %v532_v20  ;;  %v3529_v18 = vadd.f32 %v2691_v10, %v533_v56  ;;  %v3585_v6 = vld [vmem:[%s3913_s6 + $0x80] sm:$0xff] }
  0x89   : > { %v791_v53 = vmul.f32 %v2679_v57, %v790_v14  ;;  %v1286_v61 = vunpack.c.l.b16 %v1126_v3  ;;  %v1287_v23 = vunpack.c.l.b16 %v1127_v11  ;;  %v804_v40 = vmul.f32 %v2681_v41, %v3493_v48 }
  0x8a   : > { %v814_v17 = vand.u32 2147483648, %v3493_v48  ;;  %1246 = vrot.lane.b32.xlu1 %v1230_v27, %s2732_s19  ;;  %v1298_v20 = vpack.c.b16 %v1283_v30, %v1282_v45  ;;  %v2277_v21 = vmul.f32 -1.442695, %v3527_v2  ;;  %v2278_v5 = vmul.f32 -1.442695, %v3529_v18 }
  0x8b   : > { %v792_v26 = vadd.f32 %v2679_v57, %v791_v53  ;;  %v1300_v28 = vpack.c.b16 %v1287_v23, %v1286_v61  ;;  %v805_v0 = vsub.f32 1.0, %v804_v40  ;;  %vm809_vm11 = vweird.f32 %v2681_v41  ;;  %v2532_v61 = vld [vmem:[%s3913_s6 + $0x58] sm:$0xff] }
  0x8c   : > { %v812_v8 = vand.u32 2147483647, %v3493_v48  ;;  %1312 = vrot.lane.b32.xlu2 %v1298_v20, %s2733_s20  ;;  %2682 = vpow2.f32 %v2277_v21  ;;  %vm810_vm12 = vmor %vm808_vm8, %vm809_vm11  ;;  %v815_v4 = vor.u32 1.1754944e-38, %v814_v17  ;;  %v1002_v44 = vrot.slane %v3054_v59, 7  ;;  %v3602_v23 = vld [vmem:[%s3913_s6 + $0x78] sm:$0xff]  ;;  %v3610_v17 = vld [vmem:[%s3913_s6 + $0x28] sm:$0xff]  ;;  %2547 = vmatpush.bf16.msra.mxu3 %v2532_v61 }
  0x8d   : > { %v796_v60 = vsel %vm3534_vm10, %v2679_v57, %v792_v26  ;;  %1316 = vrot.lane.b32.xlu0 %v1300_v28, %s2733_s20  ;;  %v806_v32 = vmul.f32 %v2681_v41, %v805_v0  ;;  %2684 = vpow2.f32 %v2278_v5  ;;  %v992_v54 = vrot.slane %v3048_v9, 7  ;;  %v3569_v9 = vld [vmem:[%s3913_s6 + $0x88] sm:$0xff]  ;;  %v2531_v28 = vld [vmem:[%s3913_s6 + $0x50] sm:$0xff]  ;;  %1628 = vmatpush.bf16.msra.mxu0 %v2532_v61 }
  0x8e   : > { %v801_v35 = vsel %vm3512_vm6, %v800_v49, %v796_v60  ;;  %vm813_vm13 = vcmp.eq.f32.partialorder %v812_v8, 8.507059e+37  ;;  %1956 = vmatpush.bf16.msra.mxu2 %v3569_v9  ;;  %1777 = vmatpush.bf16.msra.mxu1 %v3610_v17  ;;  %vm1324_vm8 = vcmask 261120   ;;  %vm1355_vm10 = vcmask 523264  }
  0x8f   : > { %v3553_v12 = vmul.f32 %v801_v35, %v3366_v33  ;;  %v807_v57 = vadd.f32 %v2681_v41, %v806_v32  ;;  %v1015_v59 = vsel %vm1012_vm14, %v992_v54, %v1002_v44  ;;  %v1025_v62 = vsel %vm1012_vm14, %v1002_v44, %v992_v54  ;;  %v3626_v35 = vld [vmem:[%s3913_s6 + $0x70] sm:$0xff] }
  0x90   : > { %v1079_v22 = vpack.c.bf16 %v1015_v59, %v1015_v59  ;;  %2548 = vmatpush.bf16.msra.mxu3 %v2531_v28  ;;  %v964_v59 = vstv %s963_s15  ;;  %vm1601_vm11 = vcmask 785408  }
  0x91   : > { %v811_v31 = vsel %vm810_vm12, %v2681_v41, %v807_v57  ;;  %v1104_v36 = vpack.c.bf16 %v3553_v12, %v3553_v12  ;;  %v1038_v33 = vrot.slane %v3553_v12, 1  ;;  %v1078_v41 = vpack.c.bf16 %v1025_v62, %v1025_v62  ;;  %1629 = vmatpush.bf16.msra.mxu0 %v2531_v28  ;;  %v3658_v62 = vld [vmem:[%s3913_s6 + $0x20] sm:$0xff] }
  0x92   : > { %v2683_v37 = vpop.eup %2682  ;;  %v816_v56 = vsel %vm813_vm13, %v815_v4, %v811_v31  ;;  %1957 = vmatpush.bf16.msra.mxu2 %v3585_v6  ;;  %v3594_v10 = vunpack.c.l.b16 %v1079_v22  ;;  %1778 = vmatpush.bf16.msra.mxu1 %v3658_v62  ;;  %vm965_vm7 = vcmp.eq.s32.totalorder %v964_v59, 1 }
  0x93   : > { %v2685_v48 = vpop.eup %2684  ;;  %v3561_v39 = vmul.f32 %v816_v56, %v3378_v51  ;;  %v3564_v58 = vadd.f32 1.0, %v2683_v37  ;;  %v1214_v49 = vunpack.c.l.b16 %v1104_v36  ;;  %v3605_v40 = vunpack.c.l.b16 %v1078_v41 }
  0x94   : > { %v3573_v34 = vadd.f32 1.0, %v2685_v48 }
  0x95   : > { %v1105_v51 = vpack.c.bf16 %v3561_v39, %v3561_v39  ;;  %v1048_v47 = vrot.slane %v3561_v39, 1  ;;  %2686 = vrcp.f32 %v3564_v58  ;;  %vm913_vm15 = vweird.f32 %v3564_v58 }
  0x96   : > { %2688 = vrcp.f32 %v3573_v34  ;;  %v917_v5 = vand.u32 2147483647, %v3564_v58  ;;  %v919_v0 = vand.u32 2147483648, %v3564_v58  ;;  %v1176_v60 = vpack.c.b16 %v3594_v10, %v3605_v40  ;;  %1958 = vmatpush.bf16.msra.mxu2 %v3602_v23  ;;  %v2527_v40 = vld [vmem:[%s3913_s6 + $0x30] sm:$0xff] }
  0x97   : > { %v1215_v1 = vunpack.c.l.b16 %v1105_v51  ;;  %v1059_v14 = vsel %vm1053_vm9, %v1038_v33, %v1048_v47  ;;  %v1069_v3 = vsel %vm1053_vm9, %v1048_v47, %v1038_v33  ;;  %vm928_vm1 = vweird.f32 %v3573_v34  ;;  %v2529_v47 = vld [vmem:[%s3913_s6 + $0x40] sm:$0xff] }
  0x98   : > { %v1124_v11 = vpack.c.bf16 %v1059_v14, %v1059_v14  ;;  %v1125_v45 = vpack.c.bf16 %v1069_v3, %v1069_v3  ;;  %v934_v4 = vand.u32 2147483648, %v3573_v34  ;;  %v932_v54 = vand.u32 2147483647, %v3573_v34  ;;  %v3672_v14 = vld [vmem:[%s3913_s6 + $0x60] sm:$0xff] }
  0x99   : > { %v1229_v30 = vpack.c.b16 %v1215_v1, %v1214_v49  ;;  %v920_v36 = vor.u32 1.1754944e-38, %v919_v0  ;;  %vm918_vm5 = vcmp.eq.f32.partialorder %v917_v5, 8.507059e+37 }
  0x9a   : > { %v1284_v27 = vunpack.c.l.b16 %v1124_v11  ;;  %v1285_v53 = vunpack.c.l.b16 %v1125_v45  ;;  %1959 = vmatpush.bf16.msra.mxu2 %v3626_v35  ;;  %v935_v33 = vor.u32 1.1754944e-38, %v934_v4  ;;  %vm933_vm6 = vcmp.eq.f32.partialorder %v932_v54, 8.507059e+37  ;;  %v2516_v4 = vld [vmem:[%s3913_s6 + $0x18] sm:$0xff] }
  0x9b   : > { %v2687_v24 = vpop.eup %2686  ;;  %1244 = vrot.lane.b32.xlu1 %v1229_v30, %s2732_s19  ;;  %v997_v45 = vrot.slane %v3088_v46, 7  ;;  %v1007_v30 = vrot.slane %v3100_v16, 7  ;;  %1779 = vmatpush.bf16.msra.mxu1 %v2516_v4 }
  0x9c   : > { %v2689_v26 = vpop.eup %2688  ;;  %v1299_v20 = vpack.c.b16 %v1285_v53, %v1284_v27  ;;  %v909_v21 = vmul.f32 %v2687_v24, %v3564_v58  ;;  %vm914_vm0 = vweird.f32 %v2687_v24  ;;  %v2530_v58 = vld [vmem:[%s3913_s6 + $0x48] sm:$0xff] }
  0x9d   : > { %v924_v8 = vmul.f32 %v2689_v26, %v3573_v34  ;;  %vm929_vm2 = vweird.f32 %v2689_v26  ;;  %vm3638_vm3 = vmor %vm913_vm15, %vm914_vm0  ;;  %v3653_v34 = vld [vmem:[%s3913_s6 + $0x68] sm:$0xff]  ;;  %2549 = vmatpush.bf16.msra.mxu3 %v2530_v58  ;;  %1630 = vmatpush.bf16.msra.mxu0 %v2530_v58  ;;  %v1020_v16 = vsel %vm1012_vm14, %v997_v45, %v1007_v30  ;;  %v2528_v58 = vld [vmem:[%s3913_s6 + $0x38] sm:$0xff] }
  0x9e   : > { %1314 = vrot.lane.b32.xlu2 %v1299_v20, %s2733_s20  ;;  %v910_v32 = vsub.f32 1.0, %v909_v21  ;;  %vm3642_vm4 = vmor %vm928_vm1, %vm929_vm2  ;;  %1960 = vmatpush.bf16.msra.mxu2 %v3653_v34 }
  0x9f   : > { %v925_v44 = vsub.f32 1.0, %v924_v8 }
  0xa0   : > { %v911_v57 = vmul.f32 %v2687_v24, %v910_v32  ;;  %v1089_v32 = vpack.c.bf16 %v1020_v16, %v1020_v16 }
  0xa1   : > { %v926_v37 = vmul.f32 %v2689_v26, %v925_v44  ;;  %2550 = vmatpush.bf16.msra.mxu3 %v2529_v47  ;;  %1631 = vmatpush.bf16.msra.mxu0 %v2529_v47 }
  0xa2   : > { %v912_v48 = vadd.f32 %v2687_v24, %v911_v57  ;;  %1961 = vmatpush.bf16.msra.mxu2 %v3672_v14  ;;  %v1169_v59 = vunpack.c.l.b16 %v1089_v32 }
  0xa3   : > { %v927_v51 = vadd.f32 %v2689_v26, %v926_v37  ;;  %v1000_v37 = vrot.slane %v3207_v7, 7 }
  0xa4   : > { %v916_v49 = vsel %vm3638_vm3, %v2687_v24, %v912_v48 }
  0xa5   : > { %v921_v22 = vsel %vm918_vm5, %v920_v36, %v916_v49  ;;  %v931_v1 = vsel %vm3642_vm4, %v2689_v26, %v927_v51  ;;  %v990_v36 = vrot.slane %v3165_v43, 7  ;;  %v2515_v51 = vld [vmem:[%s3913_s6 + $0x10] sm:$0xff]  ;;  %2551 = vmatpush.bf16.msra.mxu3 %v2528_v58  ;;  %1632 = vmatpush.bf16.msra.mxu0 %v2528_v58 }
  0xa6   : > { %v936_v3 = vsel %vm933_vm6, %v935_v33, %v931_v1  ;;  %v956_v11 = vmul.f32 %v921_v22, %v3527_v2  ;;  %1780 = vmatpush.bf16.msra.mxu1 %v2515_v51 }
  0xa7   : > { %v957_v41 = vmul.f32 %v936_v3, %v3529_v18  ;;  %v1030_v18 = vsel %vm1012_vm14, %v1007_v30, %v997_v45  ;;  %v1013_v10 = vsel %vm1012_vm14, %v990_v36, %v1000_v37  ;;  %v1023_v1 = vsel %vm1012_vm14, %v1000_v37, %v990_v36 }
  0xa8   : > { %v3678_v27 = vsel %vm965_vm7, %v956_v11, 0.0  ;;  %v1088_v8 = vpack.c.bf16 %v1030_v18, %v1030_v18  ;;  %v1001_v45 = vrot.slane %v3228_v15, 7  ;;  %v991_v30 = vrot.slane %v3212_v13, 7 }
  0xa9   : > { %v3680_v53 = vsel %vm965_vm7, %v957_v41, 0.0  ;;  %v1042_v61 = vrot.slane %v3678_v27, 1  ;;  %v1112_v24 = vpack.c.bf16 %v3678_v27, %v3678_v27  ;;  %2552 = vmatpush.bf16.msra.mxu3 %v2527_v40  ;;  %1633 = vmatpush.bf16.msra.mxu0 %v2527_v40  ;;  %v1008_v37 = vrot.slane %v3311_v29, 7 }
  0xaa   : > { %v1052_v2 = vrot.slane %v3680_v53, 1  ;;  %v1113_v46 = vpack.c.bf16 %v3680_v53, %v3680_v53  ;;  %v1168_v33 = vunpack.c.l.b16 %v1088_v8  ;;  %v1014_v15 = vsel %vm1012_vm14, %v991_v30, %v1001_v45 }
  0xab   : > { %v1222_v26 = vunpack.c.l.b16 %v1112_v24  ;;  %v1075_v24 = vpack.c.bf16 %v1013_v10, %v1013_v10  ;;  %v1024_v13 = vsel %vm1012_vm14, %v1001_v45, %v991_v30 }
  0xac   : > { %v1223_v20 = vunpack.c.l.b16 %v1113_v46  ;;  %v1063_v21 = vsel %vm1053_vm9, %v1042_v61, %v1052_v2  ;;  %v1073_v5 = vsel %vm1053_vm9, %v1052_v2, %v1042_v61  ;;  %v1181_v22 = vpack.c.b16 %v1169_v59, %v1168_v33 }
  0xad   : > { %v1132_v28 = vpack.c.bf16 %v1063_v21, %v1063_v21  ;;  %v1133_v0 = vpack.c.bf16 %v1073_v5, %v1073_v5  ;;  %vm1446_vm9 = vcmask 781312   ;;  %v1074_v61 = vpack.c.bf16 %v1023_v1, %v1023_v1  ;;  %2553 = vmatpush.bf16.msrb.mxu3 %v3610_v17 }
  0xae   : > { %v1233_v44 = vpack.c.b16 %v1223_v20, %v1222_v26  ;;  %v1155_v20 = vunpack.c.l.b16 %v1075_v24  ;;  %v1077_v17 = vpack.c.bf16 %v1014_v15, %v1014_v15  ;;  %v1003_v24 = vrot.slane %v3369_v38, 7 }
  0xaf   : > { %v1292_v54 = vunpack.c.l.b16 %v1132_v28  ;;  %v1293_v57 = vunpack.c.l.b16 %v1133_v0  ;;  %v1154_v26 = vunpack.c.l.b16 %v1074_v61  ;;  %v1076_v28 = vpack.c.bf16 %v1024_v13, %v1024_v13 }
  0xb0   : > { %1252 = vrot.lane.b32.xlu0 %v1233_v44, %s2732_s19  ;;  %v993_v61 = vrot.slane %v3357_v55, 7 }
  0xb1   : > { %v1239_v31 = vpop.permute.xlu0 %1238  ;;  %v1303_v56 = vpack.c.b16 %v1293_v57, %v1292_v54  ;;  %2554 = vmatpush.bf16.msrb.mxu3 %v3658_v62  ;;  %v1174_v32 = vpack.c.b16 %v1155_v20, %v1154_v26  ;;  %v1156_v54 = vunpack.c.l.b16 %v1076_v28  ;;  %v1157_v57 = vunpack.c.l.b16 %v1077_v17 }
  0xb2   : > { %v1333_v48 = vsel %vm1324_vm8, %v1176_v60, %v1239_v31  ;;  %v2514_v60 = vld [vmem:[%s3913_s6 + $0x8] sm:$0xff]  ;;  %v1237_v2 = vpop.permute.xlu2 %1236  ;;  %v998_v62 = vrot.slane %v3294_v25, 7  ;;  %v1016_v15 = vsel %vm1012_vm14, %v993_v61, %v1003_v24 }
  0xb3   : > { %1322 = vrot.lane.b32.xlu1 %v1303_v56, %s2733_s20  ;;  %1781 = vmatpush.bf16.msra.mxu1 %v2514_v60 }
  0xb4   : > { %v1309_v43 = vpop.permute.xlu1 %1308  ;;  %v1021_v58 = vsel %vm1012_vm14, %v998_v62, %v1008_v37 }
  0xb5   : > { %v1361_v7 = vsel %vm1355_vm10, %v1333_v48, %v1309_v43  ;;  %2555 = vmatpush.bf16.msrb.mxu3 %v2516_v4  ;;  %v1175_v48 = vpack.c.b16 %v1157_v57, %v1156_v54  ;;  %v1031_v43 = vsel %vm1012_vm14, %v1008_v37, %v998_v62 }
  0xb6   : > { %v1390_v49 = vunpack.c.l.b16 %v1361_v7  ;;  %v1391_v47 = vunpack.c.h.b16 %v1361_v7 }
  0xb7   : > { %v1330_v25 = vsel %vm1324_vm8, %v1175_v48, %v1237_v2 }
  0xb8   : > { %v1410_v3 = vpack.c.b16 %v1390_v49, %v1390_v49  ;;  %v1411_v11 = vpack.c.b16 %v1391_v47, %v1391_v47  ;;  %v1090_v49 = vpack.c.bf16 %v1031_v43, %v1031_v43  ;;  %v1091_v47 = vpack.c.bf16 %v1021_v58, %v1021_v58 }
  0xb9   : > { %v1249_v41 = vpop.permute.xlu0 %1248  ;;  %2556 = vmatpush.bf16.msrb.mxu3 %v2515_v51 }
  0xba   : > { %1451 = vst.msk [vmem:[#allocation2 + $0x10] sm:$0xf] %vm1446_vm9, %v1410_v3  ;;  %v1348_v46 = vsel %vm1324_vm8, %v1181_v22, %v1249_v41  ;;  %v2513_v22 = vld [vmem:[%s3913_s6] sm:$0xff]  ;;  %v1170_v30 = vunpack.c.l.b16 %v1090_v49  ;;  %v1171_v41 = vunpack.c.l.b16 %v1091_v47 }
  0xbb   : > { %1452 = vst.msk [vmem:[#allocation2 + $0x14] sm:$0xf] %vm1446_vm9, %v1411_v11  ;;  %1782 = vmatpush.bf16.msra.mxu1 %v2513_v22 }
  0xbc   : > { %v1319_v16 = vpop.permute.xlu1 %1318  ;;  %v1182_v2 = vpack.c.b16 %v1171_v41, %v1170_v30 }
  0xbd   : > { %v1371_v18 = vsel %vm1355_vm10, %v1348_v46, %v1319_v16  ;;  %2557 = vmatpush.bf16.msrb.mxu3 %v2514_v60 }
  0xbe   : > { %v1400_v21 = vunpack.c.l.b16 %v1371_v18  ;;  %v1401_v5 = vunpack.c.h.b16 %v1371_v18  ;;  %v1081_v18 = vpack.c.bf16 %v1016_v15, %v1016_v15 }
  0xc0   : > { %v1420_v0 = vpack.c.b16 %v1400_v21, %v1400_v21  ;;  %v1421_v8 = vpack.c.b16 %v1401_v5, %v1401_v5  ;;  %v1235_v31 = vpop.permute.xlu2 %1234 }
  0xc1   : > { %v1327_v36 = vsel %vm1324_vm8, %v1174_v32, %v1235_v31  ;;  %2558 = vmatpush.bf16.msrb.mxu3 %v2513_v22  ;;  %v1004_v32 = vrot.slane %v3451_v50, 7 }
  0xc2   : > { %1461 = vst.msk [vmem:[#allocation2 + $0x38] sm:$0xf] %vm1446_vm9, %v1420_v0  ;;  %v2533_v44 = vld [vmem:[#allocation2 + $0x10] sm:$0xff]  ;;  %v1161_v0 = vunpack.c.l.b16 %v1081_v18 }
  0xc3   : > { %1462 = vst.msk [vmem:[#allocation2 + $0x3c] sm:$0xf] %vm1446_vm9, %v1421_v8  ;;  %2487 = vmatmul.msk.bf16.vlgmr.msra.gmra.mxu2 %vm1601_vm11, %v2533_v44  ;;  %v994_v8 = vrot.slane %v3448_v19, 7  ;;  %v2520_v37 = vld [vmem:[#allocation2 + $0x10] sm:$0xff] }
  0xc5   : > { %v1027_v19 = vsel %vm1012_vm14, %v1004_v32, %v994_v8 }
  0xc7   : > { %v1305_v56 = vpop.permute.xlu0 %1304 }
  0xc8   : > { %v1357_v33 = vsel %vm1355_vm10, %v1327_v36, %v1305_v56  ;;  %v1082_v56 = vpack.c.bf16 %v1027_v19, %v1027_v19 }
  0xc9   : > { %v1386_v59 = vunpack.c.l.b16 %v1357_v33  ;;  %v1387_v4 = vunpack.c.h.b16 %v1357_v33  ;;  %v996_v33 = vrot.slane %v3491_v42, 7 }
  0xca   : > { %v2525_v7 = vld [vmem:[#allocation2 + $0x38] sm:$0xff] }
  0xcb   : > { %v1406_v10 = vpack.c.b16 %v1386_v59, %v1386_v59  ;;  %v1407_v40 = vpack.c.b16 %v1387_v4, %v1387_v4  ;;  %v1307_v29 = vpop.permute.xlu1 %1306  ;;  %2353 = vmatmul.msk.bf16.vlgmr.msra.gmra.mxu3 %vm1601_vm11, %v2525_v7  ;;  %v1241_v3 = vpop.permute.xlu2 %1240  ;;  %v1006_v59 = vrot.slane %v3504_v52, 7  ;;  %v1162_v4 = vunpack.c.l.b16 %v1082_v56  ;;  %v2507_v52 = vld [vmem:[#allocation2 + $0x10] sm:$0xff] }
  0xcc   : > { %v1359_v51 = vsel %vm1355_vm10, %v1330_v25, %v1307_v29  ;;  %2559 = vmatpush.bf16.msra.mxu3 %v3569_v9  ;;  %v1026_v9 = vsel %vm1012_vm14, %v1003_v24, %v993_v61  ;;  %v999_v61 = vrot.slane %v3678_v27, 7  ;;  %v1009_v24 = vrot.slane %v3680_v53, 7 }
  0xcd   : > { %1447 = vst.msk [vmem:[#allocation2] sm:$0xf] %vm1446_vm9, %v1406_v10  ;;  %v1388_v60 = vunpack.c.l.b16 %v1359_v51  ;;  %v1389_v1 = vunpack.c.h.b16 %v1359_v51  ;;  %v1080_v38 = vpack.c.bf16 %v1026_v9, %v1026_v9  ;;  %v1019_v43 = vsel %vm1012_vm14, %v996_v33, %v1006_v59 }
  0xce   : > { %1448 = vst.msk [vmem:[#allocation2 + $0x4] sm:$0xf] %vm1446_vm9, %v1407_v40  ;;  %v1029_v7 = vsel %vm1012_vm14, %v1006_v59, %v996_v33  ;;  %v1087_v40 = vpack.c.bf16 %v1019_v43, %v1019_v43  ;;  %v2512_v33 = vld [vmem:[#allocation2 + $0x38] sm:$0xff] }
  0xcf   : > { %v1408_v11 = vpack.c.b16 %v1388_v60, %v1388_v60  ;;  %v1409_v45 = vpack.c.b16 %v1389_v1, %v1389_v1  ;;  %v1160_v17 = vunpack.c.l.b16 %v1080_v38  ;;  %v1086_v10 = vpack.c.bf16 %v1029_v7, %v1029_v7 }
  0xd0   : > { %2560 = vmatpush.bf16.msra.mxu3 %v3585_v6  ;;  %v1167_v47 = vunpack.c.l.b16 %v1087_v40 }
  0xd1   : > { %1449 = vst.msk [vmem:[#allocation2 + $0x8] sm:$0xf] %vm1446_vm9, %v1408_v11  ;;  %v1166_v49 = vunpack.c.l.b16 %v1086_v10 }
  0xd2   : > { %1450 = vst.msk [vmem:[#allocation2 + $0xc] sm:$0xf] %vm1446_vm9, %v1409_v45 }
  0xd3   : > { %v1180_v11 = vpack.c.b16 %v1167_v47, %v1166_v49  ;;  %v2538_v47 = vld [vmem:[#allocation2 + $0x38] sm:$0xff] }
  0xd4   : > { %2561 = vmatpush.bf16.msra.mxu3 %v3602_v23  ;;  %v1177_v23 = vpack.c.b16 %v1161_v0, %v1160_v17 }
  0xd5   : > { %v2505_v46 = vld [vmem:[#allocation2] sm:$0xff] }
  0xd6   : > { %2411 = vmatmul.msk.bf16.vlgmr.msra.gmra.mxu1 %vm1601_vm11, %v2505_v46  ;;  %v1005_v46 = vrot.slane %v3561_v39, 7  ;;  %v1032_v39 = vsel %vm1012_vm14, %v1009_v24, %v999_v61 }
  0xd7   : > { %v1321_v13 = vpop.permute.xlu2 %1320 }
  0xd8   : > { %v1251_v16 = vpop.permute.xlu0 %1250  ;;  %2562 = vmatpush.bf16.msra.mxu3 %v3626_v35  ;;  %v1336_v35 = vsel %vm1324_vm8, %v1177_v23, %v1241_v3 }
  0xd9   : > { %v1351_v55 = vsel %vm1324_vm8, %v1182_v2, %v1251_v16  ;;  %v2519_v26 = vld [vmem:[#allocation2 + $0x8] sm:$0xff]  ;;  %v995_v2 = vrot.slane %v3553_v12, 7  ;;  %v1022_v12 = vsel %vm1012_vm14, %v999_v61, %v1009_v24 }
  0xda   : > { %v1373_v6 = vsel %vm1355_vm10, %v1351_v55, %v1321_v13  ;;  %2347 = vmatmul.msk.bf16.vlgmr.msra.gmra.mxu0 %vm1601_vm11, %v2519_v26  ;;  %v2506_v44 = vld [vmem:[#allocation2 + $0x8] sm:$0xff]  ;;  %v1092_v55 = vpack.c.bf16 %v1032_v39, %v1032_v39  ;;  %v1093_v38 = vpack.c.bf16 %v1022_v12, %v1022_v12 }
  0xdb   : > { %v1402_v20 = vunpack.c.l.b16 %v1373_v6  ;;  %v1403_v21 = vunpack.c.h.b16 %v1373_v6  ;;  %v1018_v13 = vsel %vm1012_vm14, %v995_v2, %v1005_v46  ;;  %v1028_v27 = vsel %vm1012_vm14, %v1005_v46, %v995_v2 }
  0xdc   : > { %2563 = vmatpush.bf16.msra.mxu3 %v3653_v34  ;;  %v1017_v34 = vsel %vm1012_vm14, %v994_v8, %v1004_v32  ;;  %v1084_v26 = vpack.c.bf16 %v1028_v27, %v1028_v27 }
  0xdd   : > { %v1422_v5 = vpack.c.b16 %v1402_v20, %v1402_v20  ;;  %v1423_v28 = vpack.c.b16 %v1403_v21, %v1403_v21  ;;  %v1083_v48 = vpack.c.bf16 %v1017_v34, %v1017_v34  ;;  %v1085_v20 = vpack.c.bf16 %v1018_v13, %v1018_v13 }
  0xde   : > { %v1172_v21 = vunpack.c.l.b16 %v1092_v55  ;;  %v1164_v63 = vunpack.c.l.b16 %v1084_v26 }
  0xdf   : > { %1463 = vst.msk [vmem:[#allocation2 + $0x40] sm:$0xf] %vm1446_vm9, %v1422_v5  ;;  %v1163_v58 = vunpack.c.l.b16 %v1083_v48  ;;  %v1173_v5 = vunpack.c.l.b16 %v1093_v38  ;;  %v1165_v32 = vunpack.c.l.b16 %v1085_v20 }
  0xe0   : > { %1464 = vst.msk [vmem:[#allocation2 + $0x44] sm:$0xf] %vm1446_vm9, %v1423_v28  ;;  %2564 = vmatpush.bf16.msra.mxu3 %v3672_v14 }
  0xe1   : > { %v1178_v25 = vpack.c.b16 %v1163_v58, %v1162_v4  ;;  %v1183_v8 = vpack.c.b16 %v1173_v5, %v1172_v21 }
  0xe6   : > { %v1311_v54 = vpop.permute.xlu1 %1310  ;;  %2412 = vmatmul.msk.bf16.gmra.mxu1 %vm1601_vm11, %v2506_v44  ;;  %v1313_v29 = vpop.permute.xlu2 %1312 }
  0xe7   : > { %v1363_v57 = vsel %vm1355_vm10, %v1336_v35, %v1311_v54  ;;  %v2526_v31 = vld [vmem:[#allocation2 + $0x40] sm:$0xff]  ;;  %v1179_v35 = vpack.c.b16 %v1165_v32, %v1164_v63 }
  0xe8   : > { %v1392_v36 = vunpack.c.l.b16 %v1363_v57  ;;  %v1393_v62 = vunpack.c.h.b16 %v1363_v57  ;;  %2354 = vmatmul.msk.bf16.gmra.mxu3 %vm1601_vm11, %v2526_v31 }
  0xea   : > { %v1412_v50 = vpack.c.b16 %v1392_v36, %v1392_v36  ;;  %v1413_v14 = vpack.c.b16 %v1393_v62, %v1393_v62  ;;  %2348 = vmatmul.msk.bf16.gmra.mxu0 %vm1601_vm11, %v2520_v37 }
  0xec   : > { %1453 = vst.msk [vmem:[#allocation2 + $0x18] sm:$0xf] %vm1446_vm9, %v1412_v50 }
  0xed   : > { %1454 = vst.msk [vmem:[#allocation2 + $0x1c] sm:$0xf] %vm1446_vm9, %v1413_v14 }
  0xf4   : > { %v2534_v42 = vld [vmem:[#allocation2 + $0x18] sm:$0xff] }
  0xf5   : > { %2488 = vmatmul.msk.bf16.gmra.mxu2 %vm1601_vm11, %v2534_v42  ;;  %v2521_v45 = vld [vmem:[#allocation2 + $0x18] sm:$0xff] }
  0xf6   : > { %v1243_v51 = vpop.permute.xlu0 %1242  ;;  %2413 = vmatmul.msk.bf16.gmra.mxu1 %vm1601_vm11, %v2507_v52  ;;  %v2508_v23 = vld [vmem:[#allocation2 + $0x18] sm:$0xff] }
  0xf7   : > { %v1339_v22 = vsel %vm1324_vm8, %v1178_v25, %v1243_v51  ;;  %v2539_v51 = vld [vmem:[#allocation2 + $0x40] sm:$0xff] }
  0xf8   : > { %v1365_v60 = vsel %vm1355_vm10, %v1339_v22, %v1313_v29  ;;  %v1315_v54 = vpop.permute.xlu2 %1314 }
  0xf9   : > { %v1394_v1 = vunpack.c.l.b16 %v1365_v60  ;;  %v1395_v3 = vunpack.c.h.b16 %v1365_v60 }
  0xfa   : > { %2349 = vmatmul.msk.bf16.gmra.mxu0 %vm1601_vm11, %v2521_v45 }
  0xfb   : > { %v1414_v30 = vpack.c.b16 %v1394_v1, %v1394_v1  ;;  %v1415_v41 = vpack.c.b16 %v1395_v3, %v1395_v3  ;;  %v3845_v3 = vld [vmem:[%s477_s21] ss:$0 sm:$0xff] }
  0xfc   : > { %v1247_v15 = vpop.permute.xlu1 %1246 }
  0xfd   : > { %1455 = vst.msk [vmem:[#allocation2 + $0x20] sm:$0xf] %vm1446_vm9, %v1414_v30  ;;  %v1345_v9 = vsel %vm1324_vm8, %v1180_v11, %v1247_v15 }
  0xfe   : > { %1456 = vst.msk [vmem:[#allocation2 + $0x24] sm:$0xf] %vm1446_vm9, %v1415_v41 }
  0xff   : > { %v1317_v16 = vpop.permute.xlu0 %1316 }
 0x100   : > { %v1369_v53 = vsel %vm1355_vm10, %v1345_v9, %v1317_v16 }
 0x101   : > { %v1398_v18 = vunpack.c.l.b16 %v1369_v53  ;;  %v1399_v6 = vunpack.c.h.b16 %v1369_v53 }
 0x103   : > { %v1418_v28 = vpack.c.b16 %v1398_v18, %v1398_v18  ;;  %v1419_v17 = vpack.c.b16 %v1399_v6, %v1399_v6 }
 0x105   : > { %v2535_v0 = vld [vmem:[#allocation2 + $0x20] sm:$0xff]  ;;  %1459 = vst.msk [vmem:[#allocation2 + $0x30] sm:$0xf] %vm1446_vm9, %v1418_v28 }
 0x106   : > { %1460 = vst.msk [vmem:[#allocation2 + $0x34] sm:$0xf] %vm1446_vm9, %v1419_v17  ;;  %2489 = vmatmul.msk.bf16.gmra.mxu2 %vm1601_vm11, %v2535_v0  ;;  %2414 = vmatmul.msk.bf16.gmra.mxu1 %vm1601_vm11, %v2508_v23  ;;  %v2522_v44 = vld [vmem:[#allocation2 + $0x20] sm:$0xff] }
 0x107   : > { %v2509_v37 = vld [vmem:[#allocation2 + $0x20] sm:$0xff] }
 0x10a   : > { %2350 = vmatmul.msk.bf16.gmra.mxu0 %vm1601_vm11, %v2522_v44 }
 0x10d   : > { %v1245_v57 = vpop.permute.xlu1 %1244  ;;  %v2511_v31 = vld [vmem:[#allocation2 + $0x30] sm:$0xff] }
 0x10e   : > { %v1342_v36 = vsel %vm1324_vm8, %v1179_v35, %v1245_v57  ;;  %2417 = vmatmul.msk.bf16.vlgmr.msrb.gmra.mxu3 %vm1601_vm11, %v2511_v31  ;;  %v2537_v29 = vld [vmem:[#allocation2 + $0x30] sm:$0xff] }
 0x10f   : > { %v1367_v62 = vsel %vm1355_vm10, %v1342_v36, %v1315_v54  ;;  %v2524_v52 = vld [vmem:[#allocation2 + $0x30] sm:$0xff] }
 0x110   : > { %v1396_v34 = vunpack.c.l.b16 %v1367_v62  ;;  %v1397_v19 = vunpack.c.h.b16 %v1367_v62 }
 0x112   : > { %v1416_v50 = vpack.c.b16 %v1396_v34, %v1396_v34  ;;  %v1417_v14 = vpack.c.b16 %v1397_v19, %v1397_v19 }
 0x114   : > { %1457 = vst.msk [vmem:[#allocation2 + $0x28] sm:$0xf] %vm1446_vm9, %v1416_v50 }
 0x115   : > { %1458 = vst.msk [vmem:[#allocation2 + $0x2c] sm:$0xf] %vm1446_vm9, %v1417_v14 }
 0x116   : > { %2415 = vmatmul.msk.bf16.gmra.mxu1 %vm1601_vm11, %v2509_v37 }
 0x11c   : > { %v2536_v56 = vld [vmem:[#allocation2 + $0x28] sm:$0xff] }
 0x11d   : > { %v2523_v48 = vld [vmem:[#allocation2 + $0x28] sm:$0xff]  ;;  %2490 = vmatmul.msk.bf16.gmra.mxu2 %vm1601_vm11, %v2536_v56 }
 0x11e   : > { %2351 = vmatmul.msk.bf16.gmra.mxu0 %vm1601_vm11, %v2523_v48  ;;  %2418 = vmatmul.msk.bf16.gmra.mxu3 %vm1601_vm11, %v2512_v33  ;;  %v2510_v58 = vld [vmem:[#allocation2 + $0x28] sm:$0xff] }
 0x122   : > { %v1253_v59 = vpop.permute.xlu0 %1252 }
 0x123   : > { %v1354_v4 = vsel %vm1324_vm8, %v1183_v8, %v1253_v59 }
 0x125   : > { %v1323_v43 = vpop.permute.xlu1 %1322 }
 0x126   : > { %v1375_v7 = vsel %vm1355_vm10, %v1354_v4, %v1323_v43  ;;  %2416 = vmatmul.msk.bf16.gmra.mxu1 %vm1601_vm11, %v2510_v58 }
 0x127   : > { %v1404_v10 = vunpack.c.l.b16 %v1375_v7  ;;  %v1405_v40 = vunpack.c.h.b16 %v1375_v7 }
 0x129   : > { %v1424_v25 = vpack.c.b16 %v1404_v10, %v1404_v10  ;;  %v1425_v42 = vpack.c.b16 %v1405_v40, %v1405_v40 }
 0x12b   : > { %1465 = vst.msk [vmem:[#allocation2 + $0x48] sm:$0xf] %vm1446_vm9, %v1424_v25 }
 0x12c   : > { %1466 = vst.msk [vmem:[#allocation2 + $0x4c] sm:$0xf] %vm1446_vm9, %v1425_v42 }
 0x12d   : > { %2491 = vmatmul.msk.bf16.gmra.mxu2 %vm1601_vm11, %v2537_v29 }
 0x12e   : > { %2352 = vmatmul.msk.bf16.gmra.mxu0 %vm1601_vm11, %v2524_v52  ;;  %2493 = vmatmul.msk.bf16.vlgmr.msra.gmra.mxu3 %vm1601_vm11, %v2539_v51 }
 0x133   : > { %v2540_v49 = vld [vmem:[#allocation2 + $0x48] sm:$0xff] }
 0x13d   : > { %2492 = vmatmul.msk.bf16.gmra.mxu2 %vm1601_vm11, %v2538_v47 }
 0x13e   : > { %2494 = vmatmul.msk.bf16.gmra.mxu3 %vm1601_vm11, %v2540_v49 }
 0x146   : > { %v1963_v60 = vpop.f32.mrf.mxu2 }
 0x14e   : > { %v1965_v2 = vpop.f32.mrf.mxu2  ;;  %v1665_v16 = vpop.f32.mrf.mxu3 }
 0x153   : > { %v1784_v22 = vpop.f32.mrf.mxu1 }
 0x156   : > { %v1667_v12 = vpop.f32.mrf.mxu3 }
 0x157   : > { %v1635_v1 = vpop.f32.mrf.mxu0 }
 0x158   : > { %v1785_v11 = vadd.f32 %v1784_v22, %v1635_v1 }
 0x15a   : > { %v2003_v45 = vadd.f32 %v1963_v60, %v1785_v11 }
 0x15b   : > { %v1786_v41 = vpop.f32.mrf.mxu1 }
 0x15c   : > { %v2023_v30 = vadd.f32 %v3845_v3, %v2003_v45 }
 0x15e   : > { %2039 = vst [vmem:[%s3852_s24] sm:$0xff] %v2023_v30 }
 0x15f   : > { %v1637_v61 = vpop.f32.mrf.mxu0 }
 0x160   : > { %v1787_v24 = vadd.f32 %v1786_v41, %v1637_v61 }
 0x162   : > { %v2004_v46 = vadd.f32 %v1965_v2, %v1787_v24 }
 0x163   : > { %v1789_v13 = vpop.f32.mrf.mxu1 }
 0x164   : > { %v2024_v15 = vadd.f32 %v3845_v3, %v2004_v46 }
 0x166   : > { %2040 = vst [vmem:[%s3852_s24 + $0x8] sm:$0xff] %v2024_v15 }
 0x167   : > { %v1640_v9 = vpop.f32.mrf.mxu0 }
 0x168   : > { %v1790_v39 = vadd.f32 %v1789_v13, %v1640_v9 }
 0x16b   : > { %v1791_v53 = vpop.f32.mrf.mxu1  ;;  %v3860_v20 = vpop.f32.mrf.mxu3 }
 0x16f   : > { %v1642_v27 = vpop.f32.mrf.mxu0 }
 0x170   : > { %v1792_v6 = vadd.f32 %v1791_v53, %v1642_v27 }
 0x173   : > { %v1794_v21 = vpop.f32.mrf.mxu1  ;;  %v3864_v8 = vpop.f32.mrf.mxu3 }
 0x177   : > { %v1645_v26 = vpop.f32.mrf.mxu0 }
 0x178   : > { %v1968_v55 = vpop.f32.mrf.mxu2  ;;  %v1795_v0 = vadd.f32 %v1794_v21, %v1645_v26 }
 0x179   : > { %v2005_v38 = vadd.f32 %v1968_v55, %v1790_v39 }
 0x17b   : > { %v2025_v18 = vadd.f32 %v3845_v3, %v2005_v38  ;;  %v1796_v32 = vpop.f32.mrf.mxu1 }
 0x17d   : > { %2041 = vst [vmem:[%s3852_s24 + $0x10] sm:$0xff] %v2025_v18 }
 0x17f   : > { %v1647_v23 = vpop.f32.mrf.mxu0 }
 0x180   : > { %v1970_v5 = vpop.f32.mrf.mxu2  ;;  %v1797_v54 = vadd.f32 %v1796_v32, %v1647_v23 }
 0x181   : > { %v2006_v28 = vadd.f32 %v1970_v5, %v1792_v6 }
 0x183   : > { %v2026_v17 = vadd.f32 %v3845_v3, %v2006_v28  ;;  %v1799_v34 = vpop.f32.mrf.mxu1 }
 0x185   : > { %2042 = vst [vmem:[%s3852_s24 + $0x18] sm:$0xff] %v2026_v17 }
 0x187   : > { %v1650_v31 = vpop.f32.mrf.mxu0 }
 0x188   : > { %v1800_v56 = vadd.f32 %v1799_v34, %v1650_v31 }
 0x189   : > { %v1973_v63 = vpop.f32.mrf.mxu2 }
 0x18a   : > { %v2007_v44 = vadd.f32 %v1973_v63, %v1795_v0 }
 0x18b   : > { %v1801_v37 = vpop.f32.mrf.mxu1 }
 0x18c   : > { %v2027_v35 = vadd.f32 %v3845_v3, %v2007_v44 }
 0x18e   : > { %2043 = vst [vmem:[%s3852_s24 + $0x20] sm:$0xff] %v2027_v35 }
 0x18f   : > { %v1652_v14 = vpop.f32.mrf.mxu0 }
 0x190   : > { %v1802_v43 = vadd.f32 %v1801_v37, %v1652_v14 }
 0x191   : > { %v1975_v57 = vpop.f32.mrf.mxu2  ;;  %v1814_v36 = vpop.f32.mrf.mxu3 }
 0x192   : > { %v2008_v62 = vadd.f32 %v1975_v57, %v1797_v54  ;;  %v1815_v51 = vadd.f32 %v1814_v36, %v1665_v16 }
 0x193   : > { %v1804_v7 = vpop.f32.mrf.mxu1 }
 0x194   : > { %v2028_v19 = vadd.f32 %v3845_v3, %v2008_v62 }
 0x196   : > { %2044 = vst [vmem:[%s3852_s24 + $0x28] sm:$0xff] %v2028_v19 }
 0x199   : > { %v1816_v50 = vpop.f32.mrf.mxu3 }
 0x19a   : > { %v1817_v41 = vadd.f32 %v1816_v50, %v1667_v12 }
 0x19b   : > { %v1655_v58 = vpop.f32.mrf.mxu0  ;;  %v1806_v47 = vpop.f32.mrf.mxu1 }
 0x19c   : > { %v1805_v29 = vadd.f32 %v1804_v7, %v1655_v58 }
 0x1a0   : > { %v1978_v48 = vpop.f32.mrf.mxu2 }
 0x1a1   : > { %v1819_v33 = vpop.f32.mrf.mxu3  ;;  %v2009_v59 = vadd.f32 %v1978_v48, %v1800_v56 }
 0x1a2   : > { %v1820_v39 = vadd.f32 %v1819_v33, %v3860_v20 }
 0x1a3   : > { %v2029_v4 = vadd.f32 %v3845_v3, %v2009_v59  ;;  %v1657_v52 = vpop.f32.mrf.mxu0  ;;  %v1809_v9 = vpop.f32.mrf.mxu1 }
 0x1a4   : > { %v1807_v30 = vadd.f32 %v1806_v47, %v1657_v52 }
 0x1a5   : > { %2045 = vst [vmem:[%s3852_s24 + $0x30] sm:$0xff] %v2029_v4 }
 0x1a8   : > { %v1980_v10 = vpop.f32.mrf.mxu2 }
 0x1a9   : > { %v1821_v40 = vpop.f32.mrf.mxu3  ;;  %v2010_v25 = vadd.f32 %v1980_v10, %v1802_v43 }
 0x1aa   : > { %v1822_v28 = vadd.f32 %v1821_v40, %v3864_v8 }
 0x1ab   : > { %v2030_v42 = vadd.f32 %v3845_v3, %v2010_v25  ;;  %v1660_v24 = vpop.f32.mrf.mxu0  ;;  %v1811_v21 = vpop.f32.mrf.mxu1 }
 0x1ac   : > { %v1810_v27 = vadd.f32 %v1809_v9, %v1660_v24 }
 0x1ad   : > { %2046 = vst [vmem:[%s3852_s24 + $0x38] sm:$0xff] %v2030_v42 }
 0x1b0   : > { %v1983_v49 = vpop.f32.mrf.mxu2 }
 0x1b1   : > { %v1993_v22 = vpop.f32.mrf.mxu3  ;;  %v2011_v60 = vadd.f32 %v1983_v49, %v1805_v29 }
 0x1b2   : > { %v2015_v1 = vadd.f32 %v1993_v22, %v1815_v51 }
 0x1b3   : > { %v2031_v11 = vadd.f32 %v3845_v3, %v2011_v60  ;;  %v1662_v18 = vpop.f32.mrf.mxu0 }
 0x1b4   : > { %v2035_v45 = vadd.f32 %v3845_v3, %v2015_v1  ;;  %v1812_v5 = vadd.f32 %v1811_v21, %v1662_v18 }
 0x1b5   : > { %2047 = vst [vmem:[%s3852_s24 + $0x40] sm:$0xff] %v2031_v11 }
 0x1b6   : > { %2051 = vst [vmem:[%s3852_s24 + $0x60] sm:$0xff] %v2035_v45 }
 0x1b8   : > { %v1985_v61 = vpop.f32.mrf.mxu2 }
 0x1b9   : > { %v1995_v2 = vpop.f32.mrf.mxu3  ;;  %v2012_v46 = vadd.f32 %v1985_v61, %v1807_v30 }
 0x1ba   : > { %v2016_v15 = vadd.f32 %v1995_v2, %v1817_v41 }
 0x1bb   : > { %v2032_v16 = vadd.f32 %v3845_v3, %v2012_v46 }
 0x1bc   : > { %v2036_v13 = vadd.f32 %v3845_v3, %v2016_v15 }
 0x1bd   : > { %2048 = vst [vmem:[%s3852_s24 + $0x48] sm:$0xff] %v2032_v16 }
 0x1be   : > { %2052 = vst [vmem:[%s3852_s24 + $0x68] sm:$0xff] %v2036_v13 }
 0x1c0   : > { %v1988_v53 = vpop.f32.mrf.mxu2 }
 0x1c1   : > { %v1998_v55 = vpop.f32.mrf.mxu3  ;;  %v2013_v12 = vadd.f32 %v1988_v53, %v1810_v27 }
 0x1c2   : > { %v2017_v38 = vadd.f32 %v1998_v55, %v1820_v39 }
 0x1c3   : > { %v2033_v6 = vadd.f32 %v3845_v3, %v2013_v12 }
 0x1c4   : > { %v2037_v26 = vadd.f32 %v3845_v3, %v2017_v38 }
 0x1c5   : > { %2049 = vst [vmem:[%s3852_s24 + $0x50] sm:$0xff] %v2033_v6 }
 0x1c6   : > { %2053 = vst [vmem:[%s3852_s24 + $0x70] sm:$0xff] %v2037_v26 }
 0x1c8   : > { %v1990_v17 = vpop.f32.mrf.mxu2 }
 0x1c9   : > { %v2000_v0 = vpop.f32.mrf.mxu3  ;;  %v2014_v20 = vadd.f32 %v1990_v17, %v1812_v5 }
 0x1ca   : > { %v2018_v23 = vadd.f32 %v2000_v0, %v1822_v28 }
 0x1cb   : > { %v2034_v63 = vadd.f32 %v3845_v3, %v2014_v20 }
 0x1cc   : > { %v2038_v32 = vadd.f32 %v3845_v3, %v2018_v23 }
 0x1cd   : > { %2050 = vst [vmem:[%s3852_s24 + $0x58] sm:$0xff] %v2034_v63 }
 0x1ce   : > { %2054 = vst [vmem:[%s3852_s24 + $0x78] sm:$0xff] %v2038_v32 }
 0x1cf PF: > { %s17_s28 = sadd.s32 1, %s2730_s28   ;;  %s3988_s24 = smov %s2722_s26 }
 0x1d0   : > { %p14_p12 = scmp.ge.s32.totalorder %s17_s28, 6   ;;  %s3989_s25 = smov %s2726_s27 }
 0x1d1   : > { %s3990_s26 = smov %s3993_s29  ;;  %s3991_s27 = smov %s3997_s30 }
 0x1d2   :  { %16 = sbr.rel (!%p14_p12) target bundleno = 3 (0x3), region = 97 }

// kernel: resnet_block_forward.3
= control target key start
LH: loop header
LB: loop body
LE: loop exit
PB: predicated region body
PF: predicated region fallthrough
CT: control target
= control target key end

     0   :  { %s3682_s13 = smov 0   ;;  %s3684_s14 = smov 0   ;;  %s5063_s0 = inlined_call_operand.vmem [shape: f32[2,16,16,128], index: 0, kind: input, shape index: {}, may-alias: {0,1,2}]   ;;  %s5064_s1 = inlined_call_operand.vmem [shape: f32[2,16,16,128], index: 1, kind: input, shape index: {}, may-alias: {0,1,2}]   ;;  %s5065_s2 = inlined_call_operand.vmem [shape: f32[2,16,16,128], index: 2, kind: input, shape index: {}, may-alias: {0,1,2}]   ;;  %s5066_s3 = inlined_call_operand.vmem [shape: f32[2,1,128], index: 3, kind: input, shape index: {}]   ;;  %s5067_s4 = inlined_call_operand.vmem [shape: f32[2,1,128], index: 4, kind: input, shape index: {}]   ;;  %s5068_s5 = inlined_call_operand.vmem [shape: bf16[3,384,128], index: 5, kind: input, shape index: {}]   ;;  %s5069_s6 = inlined_call_operand.vmem [shape: f32[1,128], index: 6, kind: input, shape index: {}]   ;;  %s5070_s7 = inlined_call_operand.vmem [shape: f32[2,16,16,32], index: 7, kind: input, shape index: {}]   ;;  %s5071_s8 = inlined_call_operand.vmem [shape: bf16[32,128], index: 8, kind: input, shape index: {}]   ;;  %s5072_s9 = inlined_call_operand.vmem [shape: f32[1,128], index: 9, kind: input, shape index: {}]   ;;  %s5073_s10 = inlined_call_operand.vmem [shape: f32[2,16,16,128], index: 10, kind: output, shape index: {}]  }
   0x1   :  { %s3686_s15 = smov 0   ;;  %s3688_s16 = smov 0  }
   0x2   :  { %s3690_s17 = smov 0  }
   0x3 LB: > { %s29_s18 = sadd.s32 1, %s3617_s15  ;;  %s32_s19 = sadd.s32 1, %s3621_s16  ;;  %s3625_s17 = sphi %s3690_s17, %s20_s17   ;;  %s3621_s16 = sphi %s3688_s16, %s5138_s16   ;;  %s3617_s15 = sphi %s3686_s15, %s5137_s15   ;;  %s3613_s14 = sphi %s3684_s14, %s5136_s14   ;;  %s3609_s13 = sphi %s3682_s13, %s5135_s13  }
   0x4   : > { %p30_p0 = scmp.ge.s32.totalorder %s29_s18, 2  ;;  %p2911_p1 = scmp.ge.s32.totalorder %s3625_s17, 1 }
   0x5   : > { %p432_p2 = scmp.lt.s32.totalorder %s3625_s17, 5 }
   0x6   : > { %s5140_s18 = smov (%p30_p0, %s29_s18), 0  ;;  %s5142_s19 = smov (!%p30_p0, %s32_s19), %s3621_s16 }
   0x7   : > { %p433_p3 = pnand %p2911_p1, %p432_p2  ;;  %p34_p4 = scmp.ge.s32.totalorder %s5142_s19, 2 }
   0x8   : > { %s3721_s24 = sshll.u32 (!%p433_p3), %s3609_s13, 3  ;;  %p523_p5 = scmp.lt.s32.totalorder (!%p433_p3), %s3613_s14, 1 }
   0x9   : > { %s5144_s19 = smov (%p34_p4, %s5142_s19), 0  ;;  %436 = sbr.rel (%p433_p3) target bundleno = 548 (0x224), region = 60 }
   0xa   : > { %5074 = sst [smem:[#allocation2_spill]] %s5144_s19  ;;  %p525_p6 = scmp.lt.s32.totalorder (!%p433_p3), %s3721_s24, 15 }
   0xb   : > { %s3725_s25 = sadd.s32 (!%p433_p3), 4294967295, %s3721_s24  ;;  %p1064_p9 = scmp.gt.s32.totalorder (!%p433_p3), %s3609_s13, 0 }
   0xc   : > { %p535_p7 = scmp.gt.s32.totalorder (!%p433_p3), %s3725_s25, 0  ;;  %p2918_p8 = scmp.lt.s32.totalorder (!%p433_p3), %s3725_s25, 15 }
   0xd   : > { %s3370_s22 = sadd.s32 (!%p433_p3), 8, %s3721_s24  ;;  %p1068_p11 = scmp.lt.s32.totalorder (!%p433_p3), %s3609_s13, 1 }
   0xe   : > { %v3386_v0 = vld [vmem:[%s5068_s5 + $0x78] sm:$0xff]  ;;  %v3385_v2 = vld [vmem:[%s5068_s5 + $0x70] sm:$0xff]  ;;  %s5146_s14 = smov (!%p523_p5, %s3613_s14), 1  ;;  %v3384_v4 = vld [vmem:[%s5068_s5 + $0x68] sm:$0xff]  ;;  %v1116_v54 = vlaneseq  ;;  %p4851_p10 = scmp.lt.s32.totalorder %s3370_s22, 15 }
   0xf   : > { %v3378_v1 = vld [vmem:[%s5068_s5 + $0x38] sm:$0xff]  ;;  %3445 = vmatpush.bf16.msra.mxu2 %v3386_v0  ;;  %v3377_v3 = vld [vmem:[%s5068_s5 + $0x30] sm:$0xff]  ;;  %1368 = vmatpush.bf16.msra.mxu0 %v3386_v0  ;;  %s526_s30 = scalar_select %p525_p6, %s3721_s24, 15  ;;  %v3376_v5 = vld [vmem:[%s5068_s5 + $0x28] sm:$0xff] }
  0x10   : > { %3453 = vmatpush.bf16.msra.mxu3 %v3378_v1  ;;  %1513 = vmatpush.bf16.msra.mxu1 %v3378_v1  ;;  %s3734_s11 = sshll.u32 %s5146_s14, 5  ;;  %s3739_s21 = scalar_lea.vmem %s5066_s3, %s5146_s14  ;;  %v3383_v7 = vld [vmem:[%s5068_s5 + $0x60] sm:$0xff]  ;;  %v3382_v26 = vld [vmem:[%s5068_s5 + $0x58] sm:$0xff]  ;;  %v3381_v36 = vld [vmem:[%s5068_s5 + $0x50] sm:$0xff] }
  0x11   : > { %s2913_s26 = sshll.u32 %s526_s30, 1  ;;  %s3747_s29 = scalar_lea.vmem %s5067_s4, %s5146_s14  ;;  %v3754_v6 = vld [vmem:[%s3739_s21] ss:$0 sm:$0xff]  ;;  %v3374_v27 = vld [vmem:[%s5068_s5 + $0x18] sm:$0xff]  ;;  %v3373_v37 = vld [vmem:[%s5068_s5 + $0x10] sm:$0xff] }
  0x12   : > { %s529_s20 = sadd.s32 %s3734_s11, %s2913_s26  ;;  %v3770_v8 = vld [vmem:[%s3747_s29] ss:$0 sm:$0xff]  ;;  %v3380_v44 = vld [vmem:[%s5068_s5 + $0x48] sm:$0xff]  ;;  %v3394_v62 = vld [vmem:[%s5068_s5 + $0xb8] sm:$0xff]  ;;  %s5150_s22 = smov (!%p4851_p10, %s3370_s22), 15 }
  0x13   : > { %3446 = vmatpush.bf16.msra.mxu2 %v3385_v2  ;;  %1369 = vmatpush.bf16.msra.mxu0 %v3385_v2  ;;  %s3757_s30 = sshll.u32 %s529_s20, 3  ;;  %v3375_v12 = vld [vmem:[%s5068_s5 + $0x20] sm:$0xff]  ;;  %v3372_v45 = vld [vmem:[%s5068_s5 + $0x8] sm:$0xff]  ;;  %v3402_v0 = vld [vmem:[%s5068_s5 + $0xf8] sm:$0xff]  ;;  %s5152_s22 = smov (!%p4851_p10, %s5150_s22), 15 }
  0x14   : > { %3454 = vmatpush.bf16.msra.mxu3 %v3377_v3  ;;  %1514 = vmatpush.bf16.msra.mxu1 %v3377_v3  ;;  %s3767_s28 = scalar_lea.vmem %s5063_s0, %s3757_s30  ;;  %v3379_v56 = vld [vmem:[%s5068_s5 + $0x40] sm:$0xff]  ;;  %v3880_v3 = vshrl.u32 %v1116_v54, 7  ;;  %s4837_s14 = scalar_lea.vmem %s5070_s7, %s3757_s30 }
  0x15   : > { %v604_v9 = vld [vmem:[%s3767_s28 + $0x30] sm:$0xff]  ;;  %v605_v10 = vld [vmem:[%s3767_s28 + $0x38] sm:$0xff]  ;;  %s536_s19 = scalar_select %p535_p7, %s3725_s25, 0  ;;  %v606_v11 = vld [vmem:[%s3767_s28 + $0x40] sm:$0xff] }
  0x16   : > { %v628_v13 = vmul.f32 %v3754_v6, %v604_v9  ;;  %v629_v14 = vmul.f32 %v3754_v6, %v605_v10  ;;  %v607_v15 = vld [vmem:[%s3767_s28 + $0x48] sm:$0xff]  ;;  %v630_v16 = vmul.f32 %v3754_v6, %v606_v11  ;;  %v598_v17 = vld [vmem:[%s3767_s28] sm:$0xff]  ;;  %vm1118_vm8 = vcmp.lt.s32.totalorder %v3880_v3, 1  ;;  %s2930_s24 = sshll.u32 %s5152_s22, 1  ;;  %s4986_s22 = scalar_lea.vmem %s5073_s10, %s3757_s30 }
  0x17   : > { %3447 = vmatpush.bf16.msra.mxu2 %v3384_v4  ;;  %1370 = vmatpush.bf16.msra.mxu0 %v3384_v4  ;;  %s5148_s19 = smov (!%p2918_p8, %s536_s19), 15  ;;  %v631_v18 = vmul.f32 %v3754_v6, %v607_v15  ;;  %v622_v19 = vmul.f32 %v3754_v6, %v598_v17  ;;  %v599_v24 = vld [vmem:[%s3767_s28 + $0x8] sm:$0xff]  ;;  %v3371_v59 = vld [vmem:[%s5068_s5] sm:$0xff] }
  0x18   : > { %3455 = vmatpush.bf16.msra.mxu3 %v3376_v5  ;;  %1515 = vmatpush.bf16.msra.mxu1 %v3376_v5  ;;  %v3789_v20 = vadd.f32 %v3770_v8, %v628_v13  ;;  %v3792_v21 = vadd.f32 %v3770_v8, %v629_v14  ;;  %v3795_v22 = vadd.f32 %v3770_v8, %v630_v16  ;;  %s2923_s20 = sshll.u32 %s5148_s19, 1 }
  0x19   : > { %v3798_v23 = vadd.f32 %v3770_v8, %v631_v18  ;;  %v3802_v25 = vadd.f32 %v3770_v8, %v622_v19  ;;  %s543_s27 = sadd.s32 %s2923_s20, %s3734_s11  ;;  %v623_v32 = vmul.f32 %v3754_v6, %v599_v24  ;;  %v3393_v24 = vld [vmem:[%s5068_s5 + $0xb0] sm:$0xff] }
  0x1a   : > { %v2949_v28 = vmul.f32 -1.442695, %v3789_v20  ;;  %v2950_v29 = vmul.f32 -1.442695, %v3792_v21  ;;  %s2925_s19 = sshll.u32 %s543_s27, 3  ;;  %s560_s27 = sadd.s32 %s2930_s24, %s3734_s11 }
  0x1b   : > { %3448 = vmatpush.bf16.msra.mxu2 %v3383_v7  ;;  %1371 = vmatpush.bf16.msra.mxu0 %v3383_v7  ;;  %v2951_v30 = vmul.f32 -1.442695, %v3795_v22  ;;  %v2952_v31 = vmul.f32 -1.442695, %v3798_v23  ;;  %s545_s25 = scalar_lea.vmem %s5064_s1, %s2925_s19  ;;  %v2943_v33 = vmul.f32 -1.442695, %v3802_v25  ;;  %v3835_v42 = vadd.f32 %v3770_v8, %v623_v32 }
  0x1c   : > { %3456 = vmatpush.bf16.msra.mxu3 %v3375_v12  ;;  %1516 = vmatpush.bf16.msra.mxu1 %v3375_v12  ;;  %3505 = vpow2.f32 %v2949_v28  ;;  %v596_v34 = vld [vmem:[%s545_s25] sm:$0xff]  ;;  %v597_v35 = vld [vmem:[%s545_s25 + $0x8] sm:$0xff]  ;;  %s3854_s25 = scalar_select %p1064_p9, 1, 0 }
  0x1d   : > { %3507 = vpow2.f32 %v2950_v29  ;;  %v620_v38 = vmul.f32 %v3754_v6, %v596_v34  ;;  %v621_v39 = vmul.f32 %v3754_v6, %v597_v35  ;;  %v2944_v52 = vmul.f32 -1.442695, %v3835_v42  ;;  %s2932_s19 = sshll.u32 %s560_s27, 3 }
  0x1e   : > { %3509 = vpow2.f32 %v2951_v30  ;;  %v1066_v4 = vstv %s3854_s25  ;;  %s562_s12 = scalar_lea.vmem %s5065_s2, %s2932_s19 }
  0x1f   : > { %3449 = vmatpush.bf16.msra.mxu2 %v3382_v26  ;;  %1372 = vmatpush.bf16.msra.mxu0 %v3382_v26  ;;  %3511 = vpow2.f32 %v2952_v31  ;;  %v3829_v40 = vadd.f32 %v3770_v8, %v620_v38  ;;  %v3832_v41 = vadd.f32 %v3770_v8, %v621_v39  ;;  %v3401_v26 = vld [vmem:[%s5068_s5 + $0xf0] sm:$0xff]  ;;  %v3392_v39 = vld [vmem:[%s5068_s5 + $0xa8] sm:$0xff]  ;;  %s1069_s11 = scalar_select %p1068_p11, 1, 0 }
  0x20   : > { %3457 = vmatpush.bf16.msra.mxu3 %v3374_v27  ;;  %1517 = vmatpush.bf16.msra.mxu1 %v3374_v27  ;;  %3513 = vpow2.f32 %v2943_v33  ;;  %v3410_v33 = vld [vmem:[%s5068_s5 + $0x138] sm:$0xff] }
  0x21   : > { %v2941_v46 = vmul.f32 -1.442695, %v3829_v40  ;;  %v2942_v49 = vmul.f32 -1.442695, %v3832_v41 }
  0x22   : > { %v3506_v43 = vpop.eup %3505 }
  0x23   : > { %3450 = vmatpush.bf16.msra.mxu2 %v3381_v36  ;;  %v3508_v47 = vpop.eup %3507  ;;  %1373 = vmatpush.bf16.msra.mxu0 %v3381_v36  ;;  %v3845_v48 = vadd.f32 1.0, %v3506_v43  ;;  %3515 = vpow2.f32 %v2941_v46  ;;  %v3418_v36 = vld [vmem:[%s5068_s5 + $0x178] sm:$0xff] }
  0x24   : > { %3458 = vmatpush.bf16.msra.mxu3 %v3373_v37  ;;  %1518 = vmatpush.bf16.msra.mxu1 %v3373_v37  ;;  %v3510_v50 = vpop.eup %3509  ;;  %v3848_v51 = vadd.f32 1.0, %v3508_v47 }
  0x25   : > { %v3512_v53 = vpop.eup %3511  ;;  %3517 = vrcp.f32 %v3845_v48  ;;  %v873_v57 = vand.u32 2147483647, %v3845_v48  ;;  %v875_v58 = vand.u32 2147483648, %v3845_v48  ;;  %v3870_v63 = vadd.f32 1.0, %v3510_v50 }
  0x26   : > { %v3514_v55 = vpop.eup %3513  ;;  %3519 = vrcp.f32 %v3848_v51  ;;  %v888_v60 = vand.u32 2147483647, %v3848_v51  ;;  %v890_v61 = vand.u32 2147483648, %v3848_v51  ;;  %v3875_v1 = vadd.f32 1.0, %v3512_v53 }
  0x27   : > { %3451 = vmatpush.bf16.msra.mxu2 %v3380_v44  ;;  %1374 = vmatpush.bf16.msra.mxu0 %v3380_v44  ;;  %3521 = vpow2.f32 %v2942_v49  ;;  %v3877_v2 = vadd.f32 1.0, %v3514_v55  ;;  %vm869_vm0 = vweird.f32 %v3845_v48  ;;  %vm3884_vm1 = vcmp.eq.f32.partialorder %v873_v57, 8.507059e+37 }
  0x28   : > { %3459 = vmatpush.bf16.msra.mxu3 %v3372_v45  ;;  %1519 = vmatpush.bf16.msra.mxu1 %v3372_v45  ;;  %3523 = vpow2.f32 %v2944_v52  ;;  %v3888_v9 = vor.u32 1.1754944e-38, %v875_v58  ;;  %vm884_vm2 = vweird.f32 %v3848_v51  ;;  %vm3894_vm3 = vcmp.eq.f32.partialorder %v888_v60, 8.507059e+37 }
  0x29   : > { %3525 = vrcp.f32 %v3870_v63  ;;  %v3516_v5 = vpop.eup %3515  ;;  %v3898_v12 = vor.u32 1.1754944e-38, %v890_v61  ;;  %v905_v14 = vand.u32 2147483648, %v3870_v63  ;;  %vm899_vm4 = vweird.f32 %v3870_v63 }
  0x2a   : > { %3527 = vrcp.f32 %v3875_v1  ;;  %v3900_v13 = vadd.f32 1.0, %v3516_v5  ;;  %v920_v17 = vand.u32 2147483648, %v3875_v1  ;;  %v903_v27 = vand.u32 2147483647, %v3870_v63 }
  0x2b   : > { %3452 = vmatpush.bf16.msra.mxu2 %v3379_v56  ;;  %v3892_v10 = vpop.eup %3517  ;;  %1375 = vmatpush.bf16.msra.mxu0 %v3379_v56  ;;  %3529 = vrcp.f32 %v3877_v2  ;;  %v3936_v37 = vor.u32 1.1754944e-38, %v905_v14  ;;  %vm914_vm7 = vweird.f32 %v3875_v1  ;;  %v918_v38 = vand.u32 2147483647, %v3875_v1 }
  0x2c   : > { %3460 = vmatpush.bf16.msra.mxu3 %v3371_v59  ;;  %v3903_v15 = vpop.eup %3519  ;;  %v865_v16 = vmul.f32 %v3892_v10, %v3845_v48  ;;  %1520 = vmatpush.bf16.msra.mxu1 %v3371_v59  ;;  %vm870_vm5 = vweird.f32 %v3892_v10  ;;  %3531 = vrcp.f32 %v3900_v13  ;;  %v753_v31 = vand.u32 2147483647, %v3900_v13  ;;  %v3409_v59 = vld [vmem:[%s5068_s5 + $0x130] sm:$0xff] }
  0x2d   : > { %v3522_v18 = vpop.eup %3521  ;;  %v880_v19 = vmul.f32 %v3903_v15, %v3848_v51  ;;  %v755_v32 = vand.u32 2147483648, %v3900_v13  ;;  %vm885_vm6 = vweird.f32 %v3903_v15  ;;  %vm749_vm9 = vweird.f32 %v3900_v13  ;;  %vm3955_vm10 = vmor %vm869_vm0, %vm870_vm5  ;;  %v3400_v51 = vld [vmem:[%s5068_s5 + $0xe8] sm:$0xff] }
  0x2e   : > { %v3921_v28 = vpop.eup %3523  ;;  %v866_v29 = vsub.f32 1.0, %v865_v16  ;;  %v3923_v30 = vadd.f32 1.0, %v3522_v18  ;;  %v3949_v45 = vor.u32 1.1754944e-38, %v920_v17  ;;  %vm3964_vm11 = vcmp.eq.f32.partialorder %v903_v27, 8.507059e+37  ;;  %vm3975_vm12 = vmor %vm884_vm2, %vm885_vm6 }
  0x2f   : > { %1674 = vmatpush.bf16.msrb.mxu2 %v3394_v62  ;;  %v3930_v34 = vpop.eup %3525  ;;  %v881_v35 = vsub.f32 1.0, %v880_v19  ;;  %1945 = vmatpush.bf16.msrb.mxu0 %v3410_v33  ;;  %v3960_v49 = vor.u32 1.1754944e-38, %v755_v32  ;;  %vm3979_vm13 = vcmp.eq.f32.partialorder %v753_v31, 8.507059e+37  ;;  %vm3999_vm2 = vcmp.eq.f32.partialorder %v918_v38, 8.507059e+37 }
  0x30   : > { %1810 = vmatpush.bf16.msrb.mxu3 %v3402_v0  ;;  %v3943_v43 = vpop.eup %3527  ;;  %v867_v44 = vmul.f32 %v3892_v10, %v866_v29  ;;  %3533 = vrcp.f32 %v3923_v30  ;;  %v768_v50 = vand.u32 2147483647, %v3923_v30  ;;  %v770_v52 = vand.u32 2147483648, %v3923_v30  ;;  %2080 = vmatpush.bf16.msrb.mxu1 %v3418_v36 }
  0x31   : > { %v882_v47 = vmul.f32 %v3903_v15, %v881_v35  ;;  %v3968_v54 = vpop.eup %3529  ;;  %vm764_vm14 = vweird.f32 %v3923_v30  ;;  %v895_v57 = vmul.f32 %v3930_v34, %v3870_v63  ;;  %v910_v58 = vmul.f32 %v3943_v43, %v3875_v1 }
  0x32   : > { %v868_v48 = vadd.f32 %v3892_v10, %v867_v44  ;;  %v3532_v60 = vpop.eup %3531  ;;  %v3995_v62 = vor.u32 1.1754944e-38, %v770_v52  ;;  %vm900_vm15 = vweird.f32 %v3930_v34  ;;  %vm915_vm0 = vweird.f32 %v3943_v43 }
  0x33   : > { %1675 = vmatpush.bf16.msrb.mxu2 %v3393_v24  ;;  %v883_v61 = vadd.f32 %v3903_v15, %v882_v47  ;;  %v745_v14 = vmul.f32 %v3532_v60, %v3900_v13  ;;  %vm750_vm5 = vweird.f32 %v3532_v60  ;;  %v896_v16 = vsub.f32 1.0, %v895_v57  ;;  %1946 = vmatpush.bf16.msrb.mxu0 %v3409_v59 }
  0x34   : > { %1811 = vmatpush.bf16.msrb.mxu3 %v3401_v26  ;;  %v872_v5 = vsel %vm3955_vm10, %v3892_v10, %v868_v48  ;;  %vm4013_vm6 = vcmp.eq.f32.partialorder %v768_v50, 8.507059e+37  ;;  %vm4019_vm10 = vcmp.eq.s32.totalorder %v1066_v4, 1  ;;  %v911_v24 = vsub.f32 1.0, %v910_v58 }
  0x35   : > { %v877_v17 = vsel %vm3884_vm1, %v3888_v9, %v872_v5  ;;  %v887_v18 = vsel %vm3975_vm12, %v3903_v15, %v883_v61  ;;  %v775_v26 = vmul.f32 %v3968_v54, %v3877_v2  ;;  %v746_v15 = vsub.f32 1.0, %v745_v14  ;;  %vm4040_vm12 = vmor %vm899_vm4, %vm900_vm15 }
  0x36   : > { %v3534_v27 = vpop.eup %3533  ;;  %v892_v7 = vsel %vm3894_vm3, %v3898_v12, %v887_v18  ;;  %v4029_v9 = vmul.f32 %v877_v17, %v3789_v20  ;;  %v897_v29 = vmul.f32 %v3930_v34, %v896_v16  ;;  %v912_v20 = vmul.f32 %v3943_v43, %v911_v24  ;;  %vm4055_vm3 = vmor %vm749_vm9, %vm750_vm5 }
  0x37   : > { %1676 = vmatpush.bf16.msrb.mxu2 %v3392_v39  ;;  %v4033_v4 = vmul.f32 %v892_v7, %v3792_v21  ;;  %v760_v31 = vmul.f32 %v3534_v27, %v3923_v30  ;;  %vm765_vm1 = vweird.f32 %v3534_v27  ;;  %v747_v21 = vmul.f32 %v3532_v60, %v746_v15  ;;  %vm4067_vm4 = vmor %vm914_vm7, %vm915_vm0 }
  0x38   : > { %1812 = vmatpush.bf16.msrb.mxu3 %v3400_v51  ;;  %v1208_v11 = vpack.c.bf16 %v4029_v9, %v4029_v9  ;;  %v1100_v12 = vrot.slane %v4029_v9, 7  ;;  %v898_v33 = vadd.f32 %v3930_v34, %v897_v29  ;;  %v913_v39 = vadd.f32 %v3943_v43, %v912_v20  ;;  %vm4080_vm7 = vmor %vm764_vm14, %vm765_vm1 }
  0x39   : > { %v1209_v35 = vpack.c.bf16 %v4033_v4, %v4033_v4  ;;  %v1110_v36 = vrot.slane %v4033_v4, 7  ;;  %v761_v38 = vsub.f32 1.0, %v760_v31  ;;  %v748_v46 = vadd.f32 %v3532_v60, %v747_v21 }
  0x3a   : > { %v1296_v44 = vunpack.c.l.b16 %v1208_v11  ;;  %v902_v47 = vsel %vm4040_vm12, %v3930_v34, %v898_v33  ;;  %v776_v13 = vsub.f32 1.0, %v775_v26  ;;  %vm779_vm9 = vweird.f32 %v3877_v2  ;;  %v3391_v33 = vld [vmem:[%s5068_s5 + $0xa0] sm:$0xff] }
  0x3b   : > { %v1297_v52 = vunpack.c.l.b16 %v1209_v35  ;;  %v1123_v48 = vsel %vm1118_vm8, %v1100_v12, %v1110_v36  ;;  %v1133_v55 = vsel %vm1118_vm8, %v1110_v36, %v1100_v12  ;;  %v762_v57 = vmul.f32 %v3534_v27, %v761_v38  ;;  %v3399_v35 = vld [vmem:[%s5068_s5 + $0xe0] sm:$0xff]  ;;  %v3408_v36 = vld [vmem:[%s5068_s5 + $0x128] sm:$0xff]  ;;  %1677 = vmatpush.bf16.msrb.mxu2 %v3391_v33 }
  0x3c   : > { %v1188_v58 = vpack.c.bf16 %v1133_v55, %v1133_v55  ;;  %v1189_v34 = vpack.c.bf16 %v1123_v48, %v1123_v48  ;;  %v752_v51 = vsel %vm4055_vm3, %v3532_v60, %v748_v46  ;;  %v907_v59 = vsel %vm3964_vm11, %v3936_v37, %v902_v47  ;;  %v608_v37 = vld [vmem:[%s3767_s28 + $0x50] sm:$0xff]  ;;  %v3416_v47 = vld [vmem:[%s5068_s5 + $0x168] sm:$0xff]  ;;  %1813 = vmatpush.bf16.msrb.mxu3 %v3399_v35 }
  0x3d   : > { %v4087_v61 = vpack.c.b16 %v1297_v52, %v1296_v44  ;;  %v757_v5 = vsel %vm3979_vm13, %v3960_v49, %v752_v51  ;;  %v763_v14 = vadd.f32 %v3534_v27, %v762_v57  ;;  %v917_v60 = vsel %vm4067_vm4, %v3943_v43, %v913_v39  ;;  %1947 = vmatpush.bf16.msrb.mxu0 %v3408_v36 }
  0x3e   : > { %v1441_v30 = vunpack.c.l.b16 %v1188_v58  ;;  %v1442_v16 = vunpack.c.l.b16 %v1189_v34  ;;  %v1044_v17 = vmul.f32 %v757_v5, %v3829_v40  ;;  %v922_v53 = vsel %vm3999_vm2, %v3949_v45, %v917_v60  ;;  %v609_v58 = vld [vmem:[%s3767_s28 + $0x58] sm:$0xff] }
  0x3f   : > { %1396 = vmatmul.bf16.vlgmr.msra.gmra.mxu2 %v4087_v61  ;;  %v767_v56 = vsel %vm4080_vm7, %v3534_v27, %v763_v14  ;;  %v4104_v49 = vmul.f32 %v907_v59, %v3795_v22  ;;  %v4107_v18 = vmul.f32 %v922_v53, %v3798_v23  ;;  %v777_v0 = vmul.f32 %v3968_v54, %v776_v13  ;;  %v600_v59 = vld [vmem:[%s3767_s28 + $0x10] sm:$0xff]  ;;  %v601_v60 = vld [vmem:[%s3767_s28 + $0x18] sm:$0xff] }
  0x40   : > { %v4109_v43 = vpack.c.b16 %v1442_v16, %v1441_v30  ;;  %v772_v40 = vsel %vm4013_vm6, %v3995_v62, %v767_v56  ;;  %v4116_v45 = vsel %vm4019_vm10, %v1044_v17, 0.0  ;;  %v4123_v23 = vadd.f32 1.0, %v3921_v28 }
  0x41   : > { %v1045_v24 = vmul.f32 %v772_v40, %v3832_v41  ;;  %v1200_v22 = vpack.c.bf16 %v4116_v45, %v4116_v45  ;;  %v632_v26 = vmul.f32 %v3754_v6, %v608_v37  ;;  %v1096_v62 = vrot.slane %v4116_v45, 7  ;;  %v3417_v41 = vld [vmem:[%s5068_s5 + $0x170] sm:$0xff]  ;;  %v611_v37 = vld [vmem:[%s3767_s28 + $0x68] sm:$0xff] }
  0x42   : > { %1541 = vmatmul.bf16.vlgmr.msra.gmra.mxu3 %v4109_v43  ;;  %v1210_v19 = vpack.c.bf16 %v4104_v49, %v4104_v49  ;;  %v1101_v27 = vrot.slane %v4104_v49, 7  ;;  %v1111_v7 = vrot.slane %v4107_v18, 7  ;;  %v1211_v15 = vpack.c.bf16 %v4107_v18, %v4107_v18  ;;  %2081 = vmatpush.bf16.msrb.mxu1 %v3417_v41 }
  0x43   : > { %v4137_v28 = vsel %vm4019_vm10, %v1045_v24, 0.0  ;;  %vm780_vm11 = vweird.f32 %v3968_v54  ;;  %v1288_v32 = vunpack.c.l.b16 %v1200_v22  ;;  %v778_v20 = vadd.f32 %v3968_v54, %v777_v0  ;;  %v602_v0 = vld [vmem:[%s3767_s28 + $0x20] sm:$0xff] }
  0x44   : > { %v1106_v29 = vrot.slane %v4137_v28, 7  ;;  %v1201_v31 = vpack.c.bf16 %v4137_v28, %v4137_v28  ;;  %v1298_v11 = vunpack.c.l.b16 %v1210_v19  ;;  %v1124_v10 = vsel %vm1118_vm8, %v1101_v27, %v1111_v7  ;;  %vm4169_vm13 = vmor %vm779_vm9, %vm780_vm11 }
  0x45   : > { %v1134_v12 = vsel %vm1118_vm8, %v1111_v7, %v1101_v27  ;;  %v783_v21 = vand.u32 2147483647, %v3877_v2  ;;  %v1299_v52 = vunpack.c.l.b16 %v1211_v15  ;;  %v1191_v48 = vpack.c.bf16 %v1124_v10, %v1124_v10 }
  0x46   : > { %v1289_v63 = vunpack.c.l.b16 %v1201_v31  ;;  %v1119_v38 = vsel %vm1118_vm8, %v1096_v62, %v1106_v29  ;;  %v1129_v39 = vsel %vm1118_vm8, %v1106_v29, %v1096_v62  ;;  %v1190_v44 = vpack.c.bf16 %v1134_v12, %v1134_v12  ;;  %2082 = vmatpush.bf16.msrb.mxu1 %v3416_v47 }
  0x47   : > { %v1180_v50 = vpack.c.bf16 %v1129_v39, %v1129_v39  ;;  %v1181_v13 = vpack.c.bf16 %v1119_v38, %v1119_v38  ;;  %v785_v57 = vand.u32 2147483648, %v3877_v2  ;;  %v782_v1 = vsel %vm4169_vm13, %v3968_v54, %v778_v20  ;;  %v610_v54 = vld [vmem:[%s3767_s28 + $0x60] sm:$0xff]  ;;  %v3390_v38 = vld [vmem:[%s5068_s5 + $0x98] sm:$0xff] }
  0x48   : > { %v1304_v55 = vpack.c.b16 %v1289_v63, %v1288_v32  ;;  %3535 = vrcp.f32 %v4123_v23  ;;  %v1443_v5 = vunpack.c.l.b16 %v1190_v44  ;;  %v1444_v14 = vunpack.c.l.b16 %v1191_v48  ;;  %v603_v32 = vld [vmem:[%s3767_s28 + $0x28] sm:$0xff]  ;;  %1678 = vmatpush.bf16.msrb.mxu2 %v3390_v38 }
  0x49   : > { %v1433_v34 = vunpack.c.l.b16 %v1180_v50  ;;  %v1434_v51 = vunpack.c.l.b16 %v1181_v13  ;;  %vm784_vm14 = vcmp.eq.f32.partialorder %v783_v21, 8.507059e+37  ;;  %v786_v2 = vor.u32 1.1754944e-38, %v785_v57 }
  0x4a   : > { %1376 = vmatmul.bf16.vlgmr.msra.gmra.mxu0 %v1304_v55  ;;  %v4184_v16 = vpack.c.b16 %v1299_v52, %v1298_v11  ;;  %v633_v17 = vmul.f32 %v3754_v6, %v609_v58  ;;  %v4188_v53 = vadd.f32 %v3770_v8, %v632_v26  ;;  %vm794_vm15 = vweird.f32 %v4123_v23  ;;  %v3407_v58 = vld [vmem:[%s5068_s5 + $0x120] sm:$0xff] }
  0x4b   : > { %v1449_v30 = vpack.c.b16 %v1434_v51, %v1433_v34  ;;  %v798_v56 = vand.u32 2147483647, %v4123_v23  ;;  %v624_v40 = vmul.f32 %v3754_v6, %v600_v59  ;;  %v787_v24 = vsel %vm784_vm14, %v786_v2, %v782_v1  ;;  %1948 = vmatpush.bf16.msrb.mxu0 %v3407_v58 }
  0x4c   : > { %v4197_v22 = vadd.f32 %v3770_v8, %v633_v17  ;;  %v2953_v62 = vmul.f32 -1.442695, %v4188_v53  ;;  %v625_v26 = vmul.f32 %v3754_v6, %v601_v60  ;;  %v4201_v19 = vpack.c.b16 %v1444_v14, %v1443_v5 }
  0x4d   : > { %1521 = vmatmul.bf16.vlgmr.msra.gmra.mxu1 %v1449_v30  ;;  %v4204_v27 = vadd.f32 %v3770_v8, %v624_v40  ;;  %v634_v7 = vmul.f32 %v3754_v6, %v610_v54  ;;  %v635_v41 = vmul.f32 %v3754_v6, %v611_v37  ;;  %v800_v29 = vand.u32 2147483648, %v4123_v23 }
  0x4e   : > { %v3536_v15 = vpop.eup %3535  ;;  %3537 = vpow2.f32 %v2953_v62  ;;  %v2954_v31 = vmul.f32 -1.442695, %v4197_v22  ;;  %v626_v20 = vmul.f32 %v3754_v6, %v602_v0  ;;  %v4215_v10 = vmul.f32 %v787_v24, %v3802_v25 }
  0x4f   : > { %1401 = vmatmul.bf16.gmra.mxu2 %v4184_v16  ;;  %v790_v11 = vmul.f32 %v3536_v15, %v4123_v23  ;;  %v4218_v12 = vadd.f32 %v3770_v8, %v625_v26  ;;  %v2945_v21 = vmul.f32 -1.442695, %v4204_v27  ;;  %vm795_vm0 = vweird.f32 %v3536_v15  ;;  %v3398_v23 = vld [vmem:[%s5068_s5 + $0xd8] sm:$0xff] }
  0x50   : > { %3539 = vpow2.f32 %v2954_v31  ;;  %v4222_v33 = vadd.f32 %v3770_v8, %v634_v7  ;;  %v4225_v35 = vadd.f32 %v3770_v8, %v635_v41  ;;  %v627_v63 = vmul.f32 %v3754_v6, %v603_v32  ;;  %vm4241_vm2 = vmor %vm794_vm15, %vm795_vm0  ;;  %1814 = vmatpush.bf16.msrb.mxu3 %v3398_v23  ;;  %v3406_v31 = vld [vmem:[%s5068_s5 + $0x118] sm:$0xff] }
  0x51   : > { %v791_v36 = vsub.f32 1.0, %v790_v11  ;;  %3541 = vpow2.f32 %v2945_v21  ;;  %v2946_v25 = vmul.f32 -1.442695, %v4218_v12  ;;  %v4236_v46 = vadd.f32 %v3770_v8, %v626_v20  ;;  %1949 = vmatpush.bf16.msrb.mxu0 %v3406_v31 }
  0x52   : > { %1546 = vmatmul.bf16.gmra.mxu3 %v4201_v19  ;;  %v2955_v39 = vmul.f32 -1.442695, %v4222_v33  ;;  %v2956_v44 = vmul.f32 -1.442695, %v4225_v35  ;;  %vm4245_vm5 = vcmp.eq.f32.partialorder %v798_v56, 8.507059e+37  ;;  %v801_v52 = vor.u32 1.1754944e-38, %v800_v29 }
  0x53   : > { %v792_v47 = vmul.f32 %v3536_v15, %v791_v36  ;;  %3543 = vpow2.f32 %v2946_v25  ;;  %v1202_v48 = vpack.c.bf16 %v4215_v10, %v4215_v10  ;;  %v4260_v34 = vadd.f32 %v3770_v8, %v627_v63  ;;  %v3415_v8 = vld [vmem:[%s5068_s5 + $0x160] sm:$0xff]  ;;  %v3397_v29 = vld [vmem:[%s5068_s5 + $0xd0] sm:$0xff]  ;;  %v3414_v36 = vld [vmem:[%s5068_s5 + $0x158] sm:$0xff] }
  0x54   : > { %v3538_v50 = vpop.eup %3537  ;;  %3545 = vpow2.f32 %v2955_v39  ;;  %v2947_v1 = vmul.f32 -1.442695, %v4236_v46  ;;  %v1097_v14 = vrot.slane %v4215_v10, 7  ;;  %2083 = vmatpush.bf16.msrb.mxu1 %v3415_v8  ;;  %1815 = vmatpush.bf16.msrb.mxu3 %v3397_v29 }
  0x55   : > { %v793_v55 = vadd.f32 %v3536_v15, %v792_v47  ;;  %v4251_v57 = vadd.f32 1.0, %v3538_v50  ;;  %3547 = vpow2.f32 %v2956_v44  ;;  %v1290_v40 = vunpack.c.l.b16 %v1202_v48 }
  0x56   : > { %v3540_v51 = vpop.eup %3539  ;;  %v4283_v0 = vmul.f32 -1.442695, %v4260_v34 }
  0x57   : > { %v3542_v59 = vpop.eup %3541  ;;  %v797_v5 = vsel %vm4241_vm2, %v3536_v15, %v793_v55  ;;  %v4266_v2 = vadd.f32 1.0, %v3540_v51  ;;  %3549 = vrcp.f32 %v4251_v57  ;;  %v933_v30 = vand.u32 2147483647, %v4251_v57  ;;  %v3389_v15 = vld [vmem:[%s5068_s5 + $0x90] sm:$0xff] }
  0x58   : > { %v802_v60 = vsel %vm4245_vm5, %v801_v52, %v797_v5  ;;  %v935_v17 = vand.u32 2147483648, %v4251_v57  ;;  %v4276_v54 = vadd.f32 1.0, %v3542_v59  ;;  %vm929_vm6 = vweird.f32 %v4251_v57  ;;  %1679 = vmatpush.bf16.msrb.mxu2 %v3389_v15  ;;  %2084 = vmatpush.bf16.msrb.mxu1 %v3414_v36 }
  0x59   : > { %v3544_v37 = vpop.eup %3543  ;;  %v4279_v56 = vmul.f32 %v802_v60, %v3835_v42  ;;  %3551 = vrcp.f32 %v4266_v2  ;;  %v948_v24 = vand.u32 2147483647, %v4266_v2  ;;  %v950_v62 = vand.u32 2147483648, %v4266_v2 }
  0x5a   : > { %v4287_v26 = vadd.f32 1.0, %v3544_v37  ;;  %3553 = vpow2.f32 %v2947_v1  ;;  %v3546_v7 = vpop.eup %3545  ;;  %vm4303_vm10 = vcmp.eq.f32.partialorder %v933_v30, 8.507059e+37  ;;  %v4307_v11 = vor.u32 1.1754944e-38, %v935_v17 }
  0x5b   : > { %v1203_v41 = vpack.c.bf16 %v4279_v56, %v4279_v56  ;;  %v1107_v42 = vrot.slane %v4279_v56, 7  ;;  %3555 = vrcp.f32 %v4276_v54  ;;  %v3548_v32 = vpop.eup %3547  ;;  %vm944_vm1 = vweird.f32 %v4266_v2 }
  0x5c   : > { %v813_v21 = vand.u32 2147483647, %v4276_v54  ;;  %3557 = vrcp.f32 %v4287_v26  ;;  %vm4320_vm12 = vcmp.eq.f32.partialorder %v948_v24, 8.507059e+37  ;;  %v951_v6 = vor.u32 1.1754944e-38, %v950_v62  ;;  %v3388_v24 = vld [vmem:[%s5068_s5 + $0x88] sm:$0xff] }
  0x5d   : > { %v3550_v25 = vpop.eup %3549  ;;  %v1291_v63 = vunpack.c.l.b16 %v1203_v41  ;;  %v1120_v38 = vsel %vm1118_vm8, %v1097_v14, %v1107_v42  ;;  %v1130_v39 = vsel %vm1118_vm8, %v1107_v42, %v1097_v14  ;;  %vm809_vm4 = vweird.f32 %v4276_v54  ;;  %1680 = vmatpush.bf16.msrb.mxu2 %v3388_v24 }
  0x5e   : > { %v1182_v44 = vpack.c.bf16 %v1130_v39, %v1130_v39  ;;  %v1183_v47 = vpack.c.bf16 %v1120_v38, %v1120_v38  ;;  %v925_v50 = vmul.f32 %v3550_v25, %v4251_v57  ;;  %vm930_vm3 = vweird.f32 %v3550_v25 }
  0x5f   : > { %v3552_v52 = vpop.eup %3551  ;;  %v4324_v48 = vpack.c.b16 %v1291_v63, %v1290_v40  ;;  %v815_v55 = vand.u32 2147483648, %v4276_v54  ;;  %vm4332_vm9 = vcmp.eq.f32.partialorder %v813_v21, 8.507059e+37  ;;  %v828_v8 = vand.u32 2147483647, %v4287_v26  ;;  %vm4350_vm11 = vmor %vm929_vm6, %vm930_vm3  ;;  %v3396_v63 = vld [vmem:[%s5068_s5 + $0xc8] sm:$0xff] }
  0x60   : > { %v4328_v23 = vpop.eup %3553  ;;  %v1435_v58 = vunpack.c.l.b16 %v1182_v44  ;;  %v1436_v51 = vunpack.c.l.b16 %v1183_v47  ;;  %v926_v1 = vsub.f32 1.0, %v925_v50  ;;  %v940_v59 = vmul.f32 %v3552_v52, %v4266_v2  ;;  %v3405_v2 = vld [vmem:[%s5068_s5 + $0x110] sm:$0xff]  ;;  %1816 = vmatpush.bf16.msrb.mxu3 %v3396_v63 }
  0x61   : > { %v3556_v5 = vpop.eup %3555  ;;  %1381 = vmatmul.bf16.gmra.mxu0 %v4324_v48  ;;  %vm945_vm7 = vweird.f32 %v3552_v52  ;;  %v4337_v60 = vadd.f32 1.0, %v3546_v7  ;;  %v816_v7 = vor.u32 1.1754944e-38, %v815_v55  ;;  %vm824_vm14 = vweird.f32 %v4287_v26 }
  0x62   : > { %v4339_v30 = vpack.c.b16 %v1436_v51, %v1435_v58  ;;  %v927_v17 = vmul.f32 %v3550_v25, %v926_v1  ;;  %v941_v37 = vsub.f32 1.0, %v940_v59  ;;  %v805_v40 = vmul.f32 %v3556_v5, %v4276_v54  ;;  %v4345_v62 = vpop.eup %3557  ;;  %vm4363_vm15 = vmor %vm944_vm1, %vm945_vm7  ;;  %1950 = vmatpush.bf16.msrb.mxu0 %v3405_v2 }
  0x63   : > { %vm810_vm13 = vweird.f32 %v3556_v5  ;;  %v4355_v42 = vadd.f32 1.0, %v3548_v32  ;;  %v820_v21 = vmul.f32 %v4345_v62, %v4287_v26  ;;  %vm825_vm0 = vweird.f32 %v4345_v62 }
  0x64   : > { %1526 = vmatmul.bf16.gmra.mxu1 %v4339_v30  ;;  %v928_v15 = vadd.f32 %v3550_v25, %v927_v17  ;;  %v942_v29 = vmul.f32 %v3552_v52, %v941_v37  ;;  %v806_v31 = vsub.f32 1.0, %v805_v40  ;;  %vm4368_vm2 = vcmp.eq.f32.partialorder %v828_v8, 8.507059e+37  ;;  %vm4388_vm5 = vmor %vm809_vm4, %vm810_vm13 }
  0x65   : > { %v830_v36 = vand.u32 2147483648, %v4287_v26  ;;  %3559 = vrcp.f32 %v4337_v60  ;;  %v821_v47 = vsub.f32 1.0, %v820_v21  ;;  %v963_v58 = vand.u32 2147483647, %v4337_v60 }
  0x66   : > { %v932_v38 = vsel %vm4350_vm11, %v3550_v25, %v928_v15  ;;  %v943_v39 = vadd.f32 %v3552_v52, %v942_v29  ;;  %v807_v44 = vmul.f32 %v3556_v5, %v806_v31  ;;  %v965_v51 = vand.u32 2147483648, %v4337_v60  ;;  %v3395_v31 = vld [vmem:[%s5068_s5 + $0xc0] sm:$0xff] }
  0x67   : > { %v937_v50 = vsel %vm4303_vm10, %v4307_v11, %v932_v38  ;;  %3561 = vrcp.f32 %v4355_v42  ;;  %v822_v54 = vmul.f32 %v4345_v62, %v821_v47  ;;  %v831_v59 = vor.u32 1.1754944e-38, %v830_v36  ;;  %vm4418_vm10 = vmor %vm824_vm14, %vm825_vm0  ;;  %1817 = vmatpush.bf16.msrb.mxu3 %v3395_v31 }
  0x68   : > { %v947_v25 = vsel %vm4363_vm15, %v3552_v52, %v943_v39  ;;  %v4398_v20 = vmul.f32 %v937_v50, %v4188_v53  ;;  %v808_v11 = vadd.f32 %v3556_v5, %v807_v44  ;;  %vm959_vm6 = vweird.f32 %v4337_v60 }
  0x69   : > { %v952_v1 = vsel %vm4320_vm12, %v951_v6, %v947_v25  ;;  %v4404_v8 = vor.u32 1.1754944e-38, %v965_v51  ;;  %vm974_vm1 = vweird.f32 %v4355_v42  ;;  %v823_v40 = vadd.f32 %v4345_v62, %v822_v54 }
  0x6a   : > { %v4407_v17 = vmul.f32 %v952_v1, %v4197_v22  ;;  %v1212_v52 = vpack.c.bf16 %v4398_v20, %v4398_v20  ;;  %v1102_v53 = vrot.slane %v4398_v20, 7  ;;  %v812_v37 = vsel %vm4388_vm5, %v3556_v5, %v808_v11 }
  0x6b   : > { %v3560_v22 = vpop.eup %3559  ;;  %v817_v6 = vsel %vm4332_vm9, %v816_v7, %v812_v37  ;;  %v978_v24 = vand.u32 2147483647, %v4355_v42  ;;  %v980_v5 = vand.u32 2147483648, %v4355_v42  ;;  %vm4434_vm12 = vcmp.eq.f32.partialorder %v963_v58, 8.507059e+37 }
  0x6c   : > { %v1213_v41 = vpack.c.bf16 %v4407_v17, %v4407_v17  ;;  %v1300_v26 = vunpack.c.l.b16 %v1212_v52  ;;  %v1112_v15 = vrot.slane %v4407_v17, 7  ;;  %v4432_v29 = vmul.f32 %v817_v6, %v4204_v27 }
  0x6d   : > { %v3562_v14 = vpop.eup %3561  ;;  %v827_v7 = vsel %vm4418_vm10, %v4345_v62, %v823_v40  ;;  %v955_v21 = vmul.f32 %v3560_v22, %v4337_v60  ;;  %vm960_vm3 = vweird.f32 %v3560_v22  ;;  %v981_v57 = vor.u32 1.1754944e-38, %v980_v5 }
  0x6e   : > { %v1301_v36 = vunpack.c.l.b16 %v1213_v41  ;;  %v1125_v63 = vsel %vm1118_vm8, %v1102_v53, %v1112_v15  ;;  %v1135_v27 = vsel %vm1118_vm8, %v1112_v15, %v1102_v53  ;;  %v832_v2 = vsel %vm4368_vm2, %v831_v59, %v827_v7  ;;  %vm4466_vm7 = vmor %vm959_vm6, %vm960_vm3 }
  0x6f   : > { %v1192_v38 = vpack.c.bf16 %v1135_v27, %v1135_v27  ;;  %v1193_v39 = vpack.c.bf16 %v1125_v63, %v1125_v63  ;;  %v4449_v44 = vmul.f32 %v832_v2, %v4218_v12  ;;  %v1204_v62 = vpack.c.bf16 %v4432_v29, %v4432_v29 }
  0x70   : > { %v4453_v47 = vpack.c.b16 %v1301_v36, %v1300_v26  ;;  %v1098_v50 = vrot.slane %v4432_v29, 7  ;;  %v956_v55 = vsub.f32 1.0, %v955_v21  ;;  %v970_v58 = vmul.f32 %v3562_v14, %v4355_v42  ;;  %v3413_v21 = vld [vmem:[%s5068_s5 + $0x150] sm:$0xff] }
  0x71   : > { %v1445_v51 = vunpack.c.l.b16 %v1192_v38  ;;  %v1446_v25 = vunpack.c.l.b16 %v1193_v39  ;;  %v1205_v32 = vpack.c.bf16 %v4449_v44, %v4449_v44  ;;  %v1292_v11 = vunpack.c.l.b16 %v1204_v62  ;;  %2085 = vmatpush.bf16.msrb.mxu1 %v3413_v21  ;;  %v3412_v62 = vld [vmem:[%s5068_s5 + $0x148] sm:$0xff] }
  0x72   : > { %1406 = vmatmul.bf16.gmra.mxu2 %v4453_v47  ;;  %v1108_v12 = vrot.slane %v4449_v44, 7  ;;  %v957_v54 = vmul.f32 %v3560_v22, %v956_v55  ;;  %v971_v1 = vsub.f32 1.0, %v970_v58  ;;  %vm975_vm4 = vweird.f32 %v3562_v14 }
  0x73   : > { %v4461_v59 = vpack.c.b16 %v1446_v25, %v1445_v51  ;;  %v1293_v52 = vunpack.c.l.b16 %v1205_v32  ;;  %3563 = vpow2.f32 %v4283_v0  ;;  %v4472_v37 = vadd.f32 1.0, %v4328_v23  ;;  %vm4483_vm9 = vmor %vm974_vm1, %vm975_vm4  ;;  %v3434_v51 = vld [vmem:[%s5068_s5 + $0x1f8] sm:$0xff] }
  0x74   : > { %v1121_v13 = vsel %vm1118_vm8, %v1098_v50, %v1108_v12  ;;  %v1131_v6 = vsel %vm1118_vm8, %v1108_v12, %v1098_v50  ;;  %v958_v40 = vadd.f32 %v3560_v22, %v957_v54  ;;  %v972_v5 = vmul.f32 %v3562_v14, %v971_v1  ;;  %v3426_v50 = vld [vmem:[%s5068_s5 + $0x1b8] sm:$0xff]  ;;  %v3403_v54 = vld [vmem:[%s5068_s5 + $0x100] sm:$0xff]  ;;  %2351 = vmatpush.bf16.msra.mxu3 %v3434_v51 }
  0x75   : > { %1551 = vmatmul.bf16.gmra.mxu3 %v4461_v59  ;;  %v4479_v60 = vpack.c.b16 %v1293_v52, %v1292_v11  ;;  %v1184_v41 = vpack.c.bf16 %v1131_v6, %v1131_v6  ;;  %v1185_v26 = vpack.c.bf16 %v1121_v13, %v1121_v13  ;;  %3565 = vrcp.f32 %v4472_v37  ;;  %2086 = vmatpush.bf16.msrb.mxu1 %v3412_v62  ;;  %v3442_v51 = vld [vmem:[%s5068_s5 + $0x238] sm:$0xff] }
  0x76   : > { %v1139_v23 = vrot.slane %v4116_v45, 1  ;;  %v962_v15 = vsel %vm4466_vm7, %v3560_v22, %v958_v40  ;;  %v973_v7 = vadd.f32 %v3562_v14, %v972_v5  ;;  %vm979_vm11 = vcmp.eq.f32.partialorder %v978_v24, 8.507059e+37 }
  0x77   : > { %v1149_v36 = vrot.slane %v4137_v28, 1  ;;  %1386 = vmatmul.bf16.gmra.mxu0 %v4479_v60  ;;  %v1437_v42 = vunpack.c.l.b16 %v1184_v41  ;;  %v1438_v63 = vunpack.c.l.b16 %v1185_v26  ;;  %v967_v27 = vsel %vm4434_vm12, %v4404_v8, %v962_v15  ;;  %v3387_v28 = vld [vmem:[%s5068_s5 + $0x80] sm:$0xff]  ;;  %v3404_v8 = vld [vmem:[%s5068_s5 + $0x108] sm:$0xff] }
  0x78   : > { %v977_v45 = vsel %vm4483_vm9, %v3562_v14, %v973_v7  ;;  %v4502_v22 = vmul.f32 %v967_v27, %v4222_v33  ;;  %vm1159_vm13 = vcmp.lt.s32.totalorder %v3880_v3, 7  ;;  %vm839_vm14 = vweird.f32 %v4472_v37  ;;  %1681 = vmatpush.bf16.msrb.mxu2 %v3387_v28  ;;  %1951 = vmatpush.bf16.msrb.mxu0 %v3404_v8  ;;  %v3411_v8 = vld [vmem:[%s5068_s5 + $0x140] sm:$0xff] }
  0x79   : > { %v3564_v24 = vpop.eup %3563  ;;  %v4504_v2 = vpack.c.b16 %v1438_v63, %v1437_v42  ;;  %v982_v38 = vsel %vm979_vm11, %v981_v57, %v977_v45  ;;  %v1170_v58 = vsel %vm1159_vm13, %v1149_v36, %v1139_v23  ;;  %v843_v1 = vand.u32 2147483647, %v4472_v37  ;;  %2087 = vmatpush.bf16.msrb.mxu1 %v3411_v8 }
  0x7a   : > { %v4517_v33 = vmul.f32 %v982_v38, %v4225_v35  ;;  %v1214_v14 = vpack.c.bf16 %v4502_v22, %v4502_v22  ;;  %v1103_v57 = vrot.slane %v4502_v22, 7  ;;  %v4522_v39 = vadd.f32 1.0, %v3564_v24 }
  0x7b   : > { %v3566_v55 = vpop.eup %3565  ;;  %1531 = vmatmul.bf16.gmra.mxu1 %v4504_v2  ;;  %v1160_v35 = vsel %vm1159_vm13, %v1139_v23, %v1149_v36  ;;  %v845_v52 = vand.u32 2147483648, %v4472_v37  ;;  %v1221_v15 = vpack.c.bf16 %v1170_v58, %v1170_v58  ;;  %vm844_vm2 = vcmp.eq.f32.partialorder %v843_v1, 8.507059e+37 }
  0x7c   : > { %v1215_v25 = vpack.c.bf16 %v4517_v33, %v4517_v33  ;;  %v1302_v32 = vunpack.c.l.b16 %v1214_v14  ;;  %v1113_v11 = vrot.slane %v4517_v33, 7  ;;  %v835_v12 = vmul.f32 %v3566_v55, %v4472_v37  ;;  %2216 = vmatpush.bf16.msra.mxu2 %v3426_v50  ;;  %1952 = vmatpush.bf16.msrb.mxu0 %v3403_v54 }
  0x7d   : > { %vm840_vm15 = vweird.f32 %v3566_v55  ;;  %3567 = vrcp.f32 %v4522_v39  ;;  %v1220_v23 = vpack.c.bf16 %v1160_v35, %v1160_v35  ;;  %v846_v36 = vor.u32 1.1754944e-38, %v845_v52 }
  0x7e   : > { %v1303_v53 = vunpack.c.l.b16 %v1215_v25  ;;  %v1126_v13 = vsel %vm1118_vm8, %v1103_v57, %v1113_v11  ;;  %v1136_v6 = vsel %vm1118_vm8, %v1113_v11, %v1103_v57  ;;  %v836_v40 = vsub.f32 1.0, %v835_v12  ;;  %vm841_vm0 = vmor %vm839_vm14, %vm840_vm15  ;;  %v3444_v25 = vld [vmem:[%s5071_s8 + $0x8] sm:$0xff] }
  0x7f   : > { %v1194_v5 = vpack.c.bf16 %v1136_v6, %v1136_v6  ;;  %v1195_v41 = vpack.c.bf16 %v1126_v13, %v1126_v13  ;;  %v1594_v63 = vunpack.c.l.b16 %v1220_v23  ;;  %v1595_v27 = vunpack.c.l.b16 %v1221_v15  ;;  %2646 = vmatpush.bf16.msra.mxu1 %v3444_v25 }
  0x80   : > { %v4553_v26 = vpack.c.b16 %v1303_v53, %v1302_v32  ;;  %v837_v0 = vmul.f32 %v3566_v55, %v836_v40  ;;  %vm854_vm5 = vweird.f32 %v4522_v39  ;;  %v860_v14 = vand.u32 2147483648, %v4522_v39  ;;  %2486 = vmatpush.bf16.msra.mxu0 %v3442_v51 }
  0x81   : > { %v1447_v7 = vunpack.c.l.b16 %v1194_v5  ;;  %v1448_v21 = vunpack.c.l.b16 %v1195_v41  ;;  %v1610_v31 = vpack.c.b16 %v1595_v27, %v1594_v63  ;;  %v858_v62 = vand.u32 2147483647, %v4522_v39 }
  0x82   : > { %1411 = vmatmul.bf16.gmra.mxu2 %v4553_v26  ;;  %v838_v42 = vadd.f32 %v3566_v55, %v837_v0  ;;  %v861_v58 = vor.u32 1.1754944e-38, %v860_v14  ;;  %v1140_v40 = vrot.slane %v4215_v10, 1  ;;  %v1150_v5 = vrot.slane %v4279_v56, 1 }
  0x83   : > { %v3568_v45 = vpop.eup %3567  ;;  %v4559_v24 = vpack.c.b16 %v1448_v21, %v1447_v7  ;;  %vm859_vm1 = vcmp.eq.f32.partialorder %v858_v62, 8.507059e+37  ;;  %v1151_v14 = vrot.slane %v4449_v44, 1  ;;  %v3423_v44 = vld [vmem:[%s5068_s5 + $0x1a0] sm:$0xff] }
  0x84   : > { %v842_v38 = vsel %vm841_vm0, %v3566_v55, %v838_v42  ;;  %v850_v28 = vmul.f32 %v3568_v45, %v4522_v39  ;;  %vm855_vm6 = vweird.f32 %v3568_v45  ;;  %v3425_v39 = vld [vmem:[%s5068_s5 + $0x1b0] sm:$0xff]  ;;  %v1161_v10 = vsel %vm1159_vm13, %v1140_v40, %v1150_v5 }
  0x85   : > { %1556 = vmatmul.bf16.gmra.mxu3 %v4559_v24  ;;  %v847_v37 = vsel %vm844_vm2, %v846_v36, %v842_v38  ;;  %vm4569_vm10 = vmor %vm854_vm5, %vm855_vm6  ;;  %2217 = vmatpush.bf16.msra.mxu2 %v3425_v39  ;;  %v1171_v56 = vsel %vm1159_vm13, %v1150_v5, %v1140_v40  ;;  %v1222_v63 = vpack.c.bf16 %v1161_v10, %v1161_v10  ;;  %v3432_v38 = vld [vmem:[%s5068_s5 + $0x1e8] sm:$0xff]  ;;  %v1143_v40 = vrot.slane %v4029_v9, 1  ;;  %v3438_v10 = vld [vmem:[%s5068_s5 + $0x218] sm:$0xff] }
  0x86   : > { %v851_v57 = vsub.f32 1.0, %v850_v28  ;;  %v4574_v35 = vmul.f32 %v847_v37, %v4236_v46  ;;  %v3433_v46 = vld [vmem:[%s5068_s5 + $0x1f0] sm:$0xff]  ;;  %v1223_v27 = vpack.c.bf16 %v1171_v56, %v1171_v56  ;;  %v1141_v37 = vrot.slane %v4432_v29, 1  ;;  %v3440_v29 = vld [vmem:[%s5068_s5 + $0x228] sm:$0xff]  ;;  %v3443_v56 = vld [vmem:[%s5071_s8] sm:$0xff] }
  0x87   : > { %2352 = vmatpush.bf16.msra.mxu3 %v3433_v46  ;;  %v1596_v28 = vunpack.c.l.b16 %v1222_v63  ;;  %v1153_v5 = vrot.slane %v4033_v4, 1  ;;  %v3421_v63 = vld [vmem:[%s5068_s5 + $0x190] sm:$0xff]  ;;  %2647 = vmatpush.bf16.msra.mxu1 %v3443_v56  ;;  %vm2615_vm0 = vcmask 261120  }
  0x88   : > { %v852_v50 = vmul.f32 %v3568_v45, %v851_v57  ;;  %v1206_v12 = vpack.c.bf16 %v4574_v35, %v4574_v35  ;;  %v1099_v52 = vrot.slane %v4574_v35, 7  ;;  %v1162_v57 = vsel %vm1159_vm13, %v1141_v37, %v1151_v14 }
  0x89   : > { %v1172_v62 = vsel %vm1159_vm13, %v1151_v14, %v1141_v37  ;;  %v1142_v39 = vrot.slane %v4574_v35, 1  ;;  %v3439_v35 = vld [vmem:[%s5068_s5 + $0x220] sm:$0xff] }
  0x8a   : > { %v853_v32 = vadd.f32 %v3568_v45, %v852_v50  ;;  %v1294_v13 = vunpack.c.l.b16 %v1206_v12  ;;  %v1224_v50 = vpack.c.bf16 %v1162_v57, %v1162_v57  ;;  %v1225_v55 = vpack.c.bf16 %v1172_v62, %v1172_v62  ;;  %v4695_v62 = vld [vmem:[%s3747_s29] ss:$0 sm:$0xff] }
  0x8b   : > { %2353 = vmatpush.bf16.msra.mxu3 %v3432_v38  ;;  %v613_v38 = vld [vmem:[%s3767_s28 + $0x78] sm:$0xff] }
  0x8c   : > { %v857_v11 = vsel %vm4569_vm10, %v3568_v45, %v853_v32  ;;  %v3441_v45 = vld [vmem:[%s5068_s5 + $0x230] sm:$0xff]  ;;  %v1598_v51 = vunpack.c.l.b16 %v1224_v50  ;;  %v1599_v25 = vunpack.c.l.b16 %v1225_v55 }
  0x8d   : > { %v862_v54 = vsel %vm859_vm1, %v861_v58, %v857_v11  ;;  %2487 = vmatpush.bf16.msra.mxu0 %v3441_v45  ;;  %v3431_v58 = vld [vmem:[%s5068_s5 + $0x1e0] sm:$0xff]  ;;  %v3429_v45 = vld [vmem:[%s5068_s5 + $0x1d0] sm:$0xff] }
  0x8e   : > { %v1051_v1 = vmul.f32 %v862_v54, %v4260_v34 }
  0x8f   : > { %2354 = vmatpush.bf16.msra.mxu3 %v3431_v58 }
  0x90   : > { %v1207_v53 = vpack.c.bf16 %v1051_v1, %v1051_v1  ;;  %v1109_v6 = vrot.slane %v1051_v1, 7  ;;  %v1152_v32 = vrot.slane %v1051_v1, 1  ;;  %v3422_v1 = vld [vmem:[%s5068_s5 + $0x198] sm:$0xff] }
  0x91   : > { %2488 = vmatpush.bf16.msra.mxu0 %v3440_v29 }
  0x92   : > { %v1295_v41 = vunpack.c.l.b16 %v1207_v53  ;;  %v1122_v0 = vsel %vm1118_vm8, %v1099_v52, %v1109_v6  ;;  %v1132_v23 = vsel %vm1118_vm8, %v1109_v6, %v1099_v52  ;;  %1682 = vmatmul.bf16.vlgmr.msrb.gmra.mxu2 %v1610_v31  ;;  %v1597_v31 = vunpack.c.l.b16 %v1223_v27  ;;  %v3430_v52 = vld [vmem:[%s5068_s5 + $0x1d8] sm:$0xff] }
  0x93   : > { %v1186_v15 = vpack.c.bf16 %v1132_v23, %v1132_v23  ;;  %v1187_v7 = vpack.c.bf16 %v1122_v0, %v1122_v0  ;;  %v1163_v46 = vsel %vm1159_vm13, %v1142_v39, %v1152_v32  ;;  %v1173_v11 = vsel %vm1159_vm13, %v1152_v32, %v1142_v39  ;;  %2355 = vmatpush.bf16.msra.mxu3 %v3430_v52 }
  0x94   : > { %v4600_v34 = vpack.c.b16 %v1295_v41, %v1294_v13  ;;  %v1611_v8 = vpack.c.b16 %v1597_v31, %v1596_v28  ;;  %v1226_v12 = vpack.c.bf16 %v1163_v46, %v1163_v46  ;;  %v1227_v54 = vpack.c.bf16 %v1173_v11, %v1173_v11  ;;  %v4688_v28 = vld [vmem:[%s3739_s21] ss:$0 sm:$0xff] }
  0x95   : > { %v1439_v21 = vunpack.c.l.b16 %v1186_v15  ;;  %v1440_v36 = vunpack.c.l.b16 %v1187_v7  ;;  %1818 = vmatmul.bf16.vlgmr.msrb.gmra.mxu3 %v4339_v30  ;;  %v3424_v30 = vld [vmem:[%s5068_s5 + $0x1a8] sm:$0xff]  ;;  %2489 = vmatpush.bf16.msra.mxu0 %v3439_v35  ;;  %v1164_v0 = vsel %vm1159_vm13, %v1143_v40, %v1153_v5  ;;  %v1174_v23 = vsel %vm1159_vm13, %v1153_v5, %v1143_v40  ;;  %v3437_v40 = vld [vmem:[%s5068_s5 + $0x210] sm:$0xff] }
  0x96   : > { %1391 = vmatmul.bf16.gmra.mxu0 %v4600_v34  ;;  %2218 = vmatpush.bf16.msra.mxu2 %v3424_v30  ;;  %v1600_v53 = vunpack.c.l.b16 %v1226_v12  ;;  %v1601_v13 = vunpack.c.l.b16 %v1227_v54  ;;  %v1228_v4 = vpack.c.bf16 %v1164_v0, %v1164_v0  ;;  %v1229_v7 = vpack.c.bf16 %v1174_v23, %v1174_v23  ;;  %v612_v30 = vld [vmem:[%s3767_s28 + $0x70] sm:$0xff]  ;;  %v3420_v5 = vld [vmem:[%s5068_s5 + $0x188] sm:$0xff] }
  0x97   : > { %v4608_v42 = vpack.c.b16 %v1440_v36, %v1439_v21  ;;  %v636_v31 = vmul.f32 %v4688_v28, %v612_v30  ;;  %2356 = vmatpush.bf16.msra.mxu3 %v3429_v45  ;;  %v1154_v39 = vrot.slane %v4107_v18, 1 }
  0x98   : > { %v4657_v6 = vpack.c.b16 %v1601_v13, %v1600_v53  ;;  %v1602_v37 = vunpack.c.l.b16 %v1228_v4  ;;  %v1603_v14 = vunpack.c.l.b16 %v1229_v7  ;;  %v1145_v4 = vrot.slane %v4398_v20, 1 }
  0x99   : > { %1536 = vmatmul.bf16.gmra.mxu1 %v4608_v42  ;;  %2490 = vmatpush.bf16.msra.mxu0 %v3438_v10  ;;  %v4698_v50 = vadd.f32 %v4695_v62, %v636_v31  ;;  %v1155_v7 = vrot.slane %v4407_v17, 1 }
  0x9a   : > { %2219 = vmatpush.bf16.msra.mxu2 %v3423_v44 }
  0x9b   : > { %v2957_v44 = vmul.f32 -1.442695, %v4698_v50  ;;  %v1176_v20 = vsel %vm1159_vm13, %v1155_v7, %v1145_v4 }
  0x9d   : > { %3569 = vpow2.f32 %v2957_v44  ;;  %2491 = vmatpush.bf16.msra.mxu0 %v3437_v40 }
  0x9e   : > { %2220 = vmatpush.bf16.msra.mxu2 %v3422_v1 }
  0xa2   : > { %1687 = vmatmul.bf16.gmra.mxu2 %v1611_v8 }
  0xa3   : > { %2221 = vmatpush.bf16.msra.mxu2 %v3421_v63  ;;  %v3570_v54 = vpop.eup %3569 }
  0xa4   : > { %v740_v13 = vadd.f32 1.0, %v3570_v54 }
  0xa5   : > { %1823 = vmatmul.bf16.gmra.mxu3 %v4504_v2 }
  0xa6   : > { %1953 = vmatmul.bf16.vlgmr.msrb.gmra.mxu0 %v4324_v48  ;;  %v4637_v48 = vpack.c.b16 %v1599_v25, %v1598_v51  ;;  %v4707_v51 = vpack.c.b16 %v1603_v14, %v1602_v37  ;;  %v1144_v25 = vrot.slane %v4104_v49, 1  ;;  %v995_v44 = vand.u32 2147483648, %v740_v13 }
  0xa7   : > { %2222 = vmatpush.bf16.msra.mxu2 %v3420_v5  ;;  %vm989_vm12 = vweird.f32 %v740_v13 }
  0xa8   : > { %v1165_v32 = vsel %vm1159_vm13, %v1144_v25, %v1154_v39  ;;  %v1175_v46 = vsel %vm1159_vm13, %v1154_v39, %v1144_v25  ;;  %v1233_v39 = vpack.c.bf16 %v1176_v20, %v1176_v20  ;;  %v3419_v20 = vld [vmem:[%s5068_s5 + $0x180] sm:$0xff] }
  0xa9   : > { %2088 = vmatmul.bf16.vlgmr.msrb.gmra.mxu1 %v1611_v8  ;;  %v637_v8 = vmul.f32 %v4688_v28, %v613_v38  ;;  %v1230_v52 = vpack.c.bf16 %v1165_v32, %v1165_v32  ;;  %v1231_v53 = vpack.c.bf16 %v1175_v46, %v1175_v46  ;;  %v1166_v38 = vsel %vm1159_vm13, %v1145_v4, %v1155_v7 }
  0xaa   : > { %v1232_v37 = vpack.c.bf16 %v1166_v38, %v1166_v38  ;;  %v1156_v38 = vrot.slane %v4517_v33, 1 }
  0xab   : > { %v4701_v55 = vadd.f32 %v4695_v62, %v637_v8  ;;  %v1604_v23 = vunpack.c.l.b16 %v1230_v52  ;;  %2223 = vmatpush.bf16.msra.mxu2 %v3419_v20 }
  0xad   : > { %v2958_v58 = vmul.f32 -1.442695, %v4701_v55 }
  0xaf   : > { %3571 = vpow2.f32 %v2958_v58  ;;  %v993_v58 = vand.u32 2147483647, %v740_v13 }
  0xb0   : > { %3573 = vrcp.f32 %v740_v13 }
  0xb1   : > { %vm994_vm9 = vcmp.eq.f32.partialorder %v993_v58, 8.507059e+37 }
  0xb2   : > { %1692 = vmatmul.bf16.gmra.mxu2 %v4637_v48 }
  0xb5   : > { %1828 = vmatmul.bf16.gmra.mxu3 %v4608_v42  ;;  %v3572_v1 = vpop.eup %3571 }
  0xb6   : > { %1958 = vmatmul.bf16.gmra.mxu0 %v4479_v60  ;;  %v741_v0 = vadd.f32 1.0, %v3572_v1  ;;  %v3436_v1 = vld [vmem:[%s5068_s5 + $0x208] sm:$0xff] }
  0xb7   : > { %2492 = vmatpush.bf16.msra.mxu0 %v3436_v1 }
  0xb8   : > { %3575 = vrcp.f32 %v741_v0  ;;  %vm1004_vm7 = vweird.f32 %v741_v0  ;;  %v1008_v54 = vand.u32 2147483647, %v741_v0 }
  0xb9   : > { %2093 = vmatmul.bf16.gmra.mxu1 %v4637_v48 }
  0xba   : > { %vm1009_vm15 = vcmp.eq.f32.partialorder %v1008_v54, 8.507059e+37  ;;  %v3435_v54 = vld [vmem:[%s5068_s5 + $0x200] sm:$0xff] }
  0xbb   : > { %2493 = vmatpush.bf16.msra.mxu0 %v3435_v54 }
  0xc2   : > { %1697 = vmatmul.bf16.gmra.mxu2 %v4657_v6  ;;  %v1397_v41 = vpop.f32.mrf.mxu2 }
  0xc5   : > { %1833 = vmatmul.bf16.gmra.mxu3 %v4109_v43  ;;  %v1542_v15 = vpop.f32.mrf.mxu3 }
  0xc6   : > { %1963 = vmatmul.bf16.gmra.mxu0 %v4600_v34  ;;  %v4668_v9 = vadd.f32 %v1542_v15, %v1397_v41  ;;  %v3428_v41 = vld [vmem:[%s5068_s5 + $0x1c8] sm:$0xff]  ;;  %v1605_v15 = vunpack.c.l.b16 %v1231_v53  ;;  %v1010_v53 = vand.u32 2147483648, %v741_v0 }
  0xc7   : > { %v1377_v21 = vpop.f32.mrf.mxu0  ;;  %2357 = vmatpush.bf16.msra.mxu3 %v3428_v41 }
  0xc8   : > { %v1011_v41 = vor.u32 1.1754944e-38, %v1010_v53 }
  0xc9   : > { %2098 = vmatmul.bf16.gmra.mxu1 %v4657_v6 }
  0xca   : > { %v1522_v36 = vpop.f32.mrf.mxu1  ;;  %v4692_v57 = vpop.f32.mrf.mxu2 }
  0xcb   : > { %v4680_v27 = vadd.f32 %v1522_v36, %v1377_v21  ;;  %v3574_v21 = vpop.eup %3573  ;;  %v4736_v36 = vpack.c.b16 %v1605_v15, %v1604_v23  ;;  %v1606_v23 = vunpack.c.l.b16 %v1232_v37  ;;  %v1607_v15 = vunpack.c.l.b16 %v1233_v39 }
  0xcc   : > { %v3576_v10 = vpop.eup %3575  ;;  %v985_v45 = vmul.f32 %v3574_v21, %v740_v13  ;;  %vm990_vm3 = vweird.f32 %v3574_v21 }
  0xcd   : > { %v4703_v29 = vpop.f32.mrf.mxu3  ;;  %v1000_v31 = vmul.f32 %v3576_v10, %v741_v0  ;;  %vm4747_vm4 = vmor %vm989_vm12, %vm990_vm3  ;;  %vm1005_vm11 = vweird.f32 %v3576_v10 }
  0xce   : > { %v986_v8 = vsub.f32 1.0, %v985_v45  ;;  %vm1006_vm14 = vmor %vm1004_vm7, %vm1005_vm11  ;;  %v1146_v45 = vrot.slane %v4502_v22, 1 }
  0xcf   : > { %v4718_v49 = vpop.f32.mrf.mxu0  ;;  %v1001_v17 = vsub.f32 1.0, %v1000_v31 }
  0xd0   : > { %v987_v14 = vmul.f32 %v3574_v21, %v986_v8  ;;  %v1167_v22 = vsel %vm1159_vm13, %v1146_v45, %v1156_v38  ;;  %v1177_v33 = vsel %vm1159_vm13, %v1156_v38, %v1146_v45 }
  0xd1   : > { %v1002_v25 = vmul.f32 %v3576_v10, %v1001_v17  ;;  %v1235_v39 = vpack.c.bf16 %v1177_v33, %v1177_v33 }
  0xd2   : > { %1702 = vmatmul.bf16.gmra.mxu2 %v4707_v51  ;;  %v1402_v11 = vpop.f32.mrf.mxu2  ;;  %v4720_v18 = vpop.f32.mrf.mxu1  ;;  %v988_v32 = vadd.f32 %v3574_v21, %v987_v14 }
  0xd4   : > { %v992_v52 = vsel %vm4747_vm4, %v3574_v21, %v988_v32 }
  0xd5   : > { %1838 = vmatmul.bf16.gmra.mxu3 %v4201_v19  ;;  %v1547_v12 = vpop.f32.mrf.mxu3 }
  0xd6   : > { %1968 = vmatmul.bf16.gmra.mxu0 %v4087_v61  ;;  %v4722_v35 = vadd.f32 %v1547_v12, %v1402_v11  ;;  %v996_v11 = vor.u32 1.1754944e-38, %v995_v44  ;;  %v1003_v12 = vadd.f32 %v3576_v10, %v1002_v25  ;;  %v1234_v25 = vpack.c.bf16 %v1167_v22, %v1167_v22 }
  0xd8   : > { %v1007_v13 = vsel %vm1006_vm14, %v3576_v10, %v1003_v12  ;;  %v997_v5 = vsel %vm994_vm9, %v996_v11, %v992_v52  ;;  %v4767_v10 = vpack.c.b16 %v1607_v15, %v1606_v23  ;;  %v1608_v1 = vunpack.c.l.b16 %v1234_v25 }
  0xd9   : > { %2103 = vmatmul.bf16.gmra.mxu1 %v4707_v51  ;;  %v1012_v7 = vsel %vm1009_vm15, %v1011_v41, %v1007_v13  ;;  %v1060_v21 = vmul.f32 %v997_v5, %v4698_v50  ;;  %v3427_v50 = vld [vmem:[%s5068_s5 + $0x1c0] sm:$0xff]  ;;  %v1609_v52 = vunpack.c.l.b16 %v1235_v39 }
  0xda   : > { %v4757_v40 = vpop.f32.mrf.mxu2  ;;  %v1061_v0 = vmul.f32 %v1012_v7, %v4701_v55  ;;  %2358 = vmatpush.bf16.msra.mxu3 %v3427_v50 }
  0xdb   : > { %v1104_v31 = vrot.slane %v1060_v21, 7  ;;  %v4796_v41 = vpack.c.b16 %v1609_v52, %v1608_v1  ;;  %v1147_v38 = vrot.slane %v1060_v21, 1 }
  0xdc   : > { %v1114_v8 = vrot.slane %v1061_v0, 7  ;;  %v1217_v22 = vpack.c.bf16 %v1061_v0, %v1061_v0 }
  0xde   : > { %v1382_v56 = vpop.f32.mrf.mxu0  ;;  %v1127_v55 = vsel %vm1118_vm8, %v1104_v31, %v1114_v8  ;;  %v1137_v37 = vsel %vm1118_vm8, %v1114_v8, %v1104_v31  ;;  %v1157_v31 = vrot.slane %v1061_v0, 1  ;;  %v1894_v39 = vunpack.c.l.b16 %v1217_v22 }
  0xdf   : > { %v1196_v11 = vpack.c.bf16 %v1137_v37, %v1137_v37  ;;  %v1197_v12 = vpack.c.bf16 %v1127_v55, %v1127_v55 }
  0xe0   : > { %v1168_v33 = vsel %vm1159_vm13, %v1147_v38, %v1157_v31  ;;  %v1178_v55 = vsel %vm1159_vm13, %v1157_v31, %v1147_v38 }
  0xe1   : > { %v1527_v63 = vpop.f32.mrf.mxu1  ;;  %v1758_v13 = vunpack.c.l.b16 %v1196_v11  ;;  %v1759_v5 = vunpack.c.l.b16 %v1197_v12 }
  0xe2   : > { %1707 = vmatmul.bf16.gmra.mxu2 %v4736_v36  ;;  %v4739_v30 = vadd.f32 %v1527_v63, %v1382_v56  ;;  %v4763_v63 = vpop.f32.mrf.mxu3 }
  0xe3   : > { %v4800_v7 = vpack.c.b16 %v1759_v5, %v1758_v13 }
  0xe5   : > { %1843 = vmatmul.bf16.gmra.mxu3 %v4461_v59 }
  0xe6   : > { %1973 = vmatmul.bf16.gmra.mxu0 %v4184_v16  ;;  %v4759_v4 = vpop.f32.mrf.mxu0 }
  0xe9   : > { %2108 = vmatmul.bf16.gmra.mxu1 %v4736_v36  ;;  %v4761_v56 = vpop.f32.mrf.mxu1 }
  0xf2   : > { %1712 = vmatmul.bf16.gmra.mxu2 %v4767_v10 }
  0xf4   : > { %v1387_v14 = vpop.f32.mrf.mxu0 }
  0xf5   : > { %v1407_v17 = vpop.f32.mrf.mxu2  ;;  %1848 = vmatmul.bf16.gmra.mxu3 %v4559_v24 }
  0xf6   : > { %1978 = vmatmul.bf16.gmra.mxu0 %v4453_v47 }
  0xf8   : > { %v1532_v44 = vpop.f32.mrf.mxu1  ;;  %v1552_v58 = vpop.f32.mrf.mxu3 }
  0xf9   : > { %2113 = vmatmul.bf16.gmra.mxu1 %v4767_v10  ;;  %v4789_v32 = vadd.f32 %v1532_v44, %v1387_v14  ;;  %v4791_v46 = vadd.f32 %v1552_v58, %v1407_v17  ;;  %v1216_v17 = vpack.c.bf16 %v1060_v21, %v1060_v21  ;;  %v1236_v14 = vpack.c.bf16 %v1168_v33, %v1168_v33 }
  0xfa   : > { %v1237_v44 = vpack.c.bf16 %v1178_v55, %v1178_v55  ;;  %v2571_v55 = vld [vmem:[%s4837_s14] sm:$0xff] }
  0xfb   : > { %v1893_v25 = vunpack.c.l.b16 %v1216_v17  ;;  %v2028_v12 = vunpack.c.l.b16 %v1236_v14  ;;  %v2572_v14 = vld [vmem:[%s4837_s14 + $0x8] sm:$0xff] }
  0xfc   : > { %v4806_v20 = vpop.f32.mrf.mxu0  ;;  %v2029_v54 = vunpack.c.l.b16 %v1237_v44  ;;  %v2587_v44 = vpack.c.bf16 %v2572_v14, %v2571_v55 }
  0xfd   : > { %v1409_v53 = vpop.f32.mrf.mxu2  ;;  %v4818_v21 = vpack.c.b16 %v1894_v39, %v1893_v25 }
  0xfe   : > { %v4821_v52 = vpack.c.b16 %v2029_v54, %v2028_v12 }
 0x100   : > { %v1554_v23 = vpop.f32.mrf.mxu3  ;;  %v4814_v37 = vpop.f32.mrf.mxu1 }
 0x101   : > { %v4798_v15 = vadd.f32 %v1554_v23, %v1409_v53 }
 0x102   : > { %1717 = vmatmul.bf16.gmra.mxu2 %v4796_v41 }
 0x105   : > { %v1412_v45 = vpop.f32.mrf.mxu2  ;;  %1853 = vmatmul.bf16.gmra.mxu3 %v4800_v7 }
 0x106   : > { %1983 = vmatmul.bf16.gmra.mxu0 %v4553_v26 }
 0x108   : > { %v1557_v8 = vpop.f32.mrf.mxu3 }
 0x109   : > { %2118 = vmatmul.bf16.gmra.mxu1 %v4796_v41  ;;  %v4808_v50 = vadd.f32 %v1557_v8, %v1412_v45 }
 0x10d   : > { %v1414_v58 = vpop.f32.mrf.mxu2 }
 0x110   : > { %v1559_v11 = vpop.f32.mrf.mxu3 }
 0x111   : > { %v4816_v1 = vadd.f32 %v1559_v11, %v1414_v58 }
 0x112   : > { %2224 = vmatmul.bf16.vlgmr.msra.gmra.mxu2 %v4504_v2  ;;  %v1525_v2 = vadd.f32 %v4720_v18, %v4718_v49 }
 0x113   : > { %v1392_v0 = vpop.f32.mrf.mxu0 }
 0x115   : > { %v1683_v53 = vpop.f32.mrf.mxu2  ;;  %2359 = vmatmul.bf16.vlgmr.msra.gmra.mxu3 %v4479_v60 }
 0x116   : > { %v1537_v13 = vpop.f32.mrf.mxu1  ;;  %1988 = vmatmul.bf16.gmra.mxu0 %v4818_v21  ;;  %v1723_v5 = vadd.f32 %v1683_v53, %v4680_v27 }
 0x117   : > { %v4826_v23 = vadd.f32 %v1537_v13, %v1392_v0  ;;  %v1530_v0 = vadd.f32 %v4761_v56, %v4759_v4 }
 0x118   : > { %v1819_v45 = vpop.f32.mrf.mxu3 }
 0x119   : > { %2123 = vmatmul.bf16.gmra.mxu1 %v4821_v52  ;;  %v1859_v38 = vadd.f32 %v1819_v45, %v1723_v5 }
 0x11b   : > { %v1394_v31 = vpop.f32.mrf.mxu0 }
 0x11d   : > { %v1685_v8 = vpop.f32.mrf.mxu2 }
 0x11e   : > { %v1539_v17 = vpop.f32.mrf.mxu1  ;;  %v1724_v22 = vadd.f32 %v1685_v8, %v1525_v2 }
 0x11f   : > { %v4831_v33 = vadd.f32 %v1539_v17, %v1394_v31  ;;  %v2574_v31 = vld [vmem:[%s4837_s14 + $0x18] sm:$0xff] }
 0x120   : > { %v1821_v60 = vpop.f32.mrf.mxu3 }
 0x121   : > { %v1860_v27 = vadd.f32 %v1821_v60, %v1724_v22 }
 0x122   : > { %2229 = vmatmul.bf16.gmra.mxu2 %v4608_v42 }
 0x123   : > { %v1954_v49 = vpop.f32.mrf.mxu0 }
 0x124   : > { %v1994_v18 = vadd.f32 %v1954_v49, %v1859_v38  ;;  %v2573_v38 = vld [vmem:[%s4837_s14 + $0x10] sm:$0xff] }
 0x125   : > { %v1688_v58 = vpop.f32.mrf.mxu2  ;;  %2364 = vmatmul.bf16.gmra.mxu3 %v4600_v34  ;;  %v2588_v2 = vpack.c.bf16 %v2574_v31, %v2573_v38 }
 0x126   : > { %v2089_v25 = vpop.f32.mrf.mxu1  ;;  %2494 = vmatmul.bf16.vlgmr.msra.gmra.mxu0 %v4637_v48  ;;  %v1725_v39 = vadd.f32 %v1688_v58, %v4739_v30 }
 0x127   : > { %v4845_v11 = vadd.f32 %v2089_v25, %v1994_v18  ;;  %v2575_v25 = vld [vmem:[%s4837_s14 + $0x20] sm:$0xff] }
 0x128   : > { %v1824_v12 = vpop.f32.mrf.mxu3 }
 0x129   : > { %3353 = vmatmul.msk.bf16.vlgmr.msra.gmra.mxu1 %vm2615_vm0, %v2587_v44  ;;  %v1861_v42 = vadd.f32 %v1824_v12, %v1725_v39  ;;  %v2576_v39 = vld [vmem:[%s4837_s14 + $0x28] sm:$0xff] }
 0x12b   : > { %v1956_v54 = vpop.f32.mrf.mxu0 }
 0x12c   : > { %v1995_v34 = vadd.f32 %v1956_v54, %v1860_v27  ;;  %v614_v54 = vld [vmem:[%s562_s12] sm:$0xff] }
 0x12d   : > { %v1690_v53 = vpop.f32.mrf.mxu2 }
 0x12e   : > { %v2091_v48 = vpop.f32.mrf.mxu1  ;;  %v1726_v30 = vadd.f32 %v1690_v53, %v1530_v0  ;;  %v615_v0 = vld [vmem:[%s562_s12 + $0x8] sm:$0xff] }
 0x12f   : > { %v4855_v13 = vadd.f32 %v2091_v48, %v1995_v34  ;;  %v638_v48 = vmul.f32 %v4688_v28, %v614_v54 }
 0x130   : > { %v1826_v5 = vpop.f32.mrf.mxu3 }
 0x131   : > { %v1862_v45 = vadd.f32 %v1826_v5, %v1726_v30 }
 0x132   : > { %2234 = vmatmul.bf16.gmra.mxu2 %v4109_v43 }
 0x133   : > { %v1959_v4 = vpop.f32.mrf.mxu0 }
 0x134   : > { %v1996_v56 = vadd.f32 %v1959_v4, %v1861_v42 }
 0x135   : > { %v1693_v8 = vpop.f32.mrf.mxu2  ;;  %2369 = vmatmul.bf16.gmra.mxu3 %v4087_v61  ;;  %v1535_v61 = vadd.f32 %v4814_v37, %v4806_v20  ;;  %v2589_v37 = vpack.c.bf16 %v2576_v39, %v2575_v25 }
 0x136   : > { %v2094_v17 = vpop.f32.mrf.mxu1  ;;  %2499 = vmatmul.bf16.gmra.mxu0 %v4657_v6  ;;  %v1727_v22 = vadd.f32 %v1693_v8, %v4789_v32 }
 0x137   : > { %v4867_v60 = vadd.f32 %v2094_v17, %v1996_v56 }
 0x138   : > { %v1829_v27 = vpop.f32.mrf.mxu3 }
 0x139   : > { %3354 = vmatmul.msk.bf16.gmra.mxu1 %vm2615_vm0, %v2588_v2  ;;  %v1863_v43 = vadd.f32 %v1829_v27, %v1727_v22  ;;  %v2577_v27 = vld [vmem:[%s4837_s14 + $0x30] sm:$0xff] }
 0x13b   : > { %v1961_v55 = vpop.f32.mrf.mxu0 }
 0x13c   : > { %v1997_v14 = vadd.f32 %v1961_v55, %v1862_v45  ;;  %v4889_v45 = vadd.f32 %v4695_v62, %v638_v48 }
 0x13d   : > { %v1695_v49 = vpop.f32.mrf.mxu2 }
 0x13e   : > { %v2096_v18 = vpop.f32.mrf.mxu1  ;;  %v1728_v6 = vadd.f32 %v1695_v49, %v1535_v61 }
 0x13f   : > { %v4873_v32 = vadd.f32 %v2096_v18, %v1997_v14 }
 0x140   : > { %v1831_v44 = vpop.f32.mrf.mxu3 }
 0x141   : > { %v1864_v58 = vadd.f32 %v1831_v44, %v1728_v6 }
 0x142   : > { %2239 = vmatmul.bf16.gmra.mxu2 %v4201_v19  ;;  %v639_v19 = vmul.f32 %v4688_v28, %v615_v0 }
 0x143   : > { %v1964_v12 = vpop.f32.mrf.mxu0 }
 0x144   : > { %v1998_v20 = vadd.f32 %v1964_v12, %v1863_v43  ;;  %v4892_v38 = vadd.f32 %v4695_v62, %v639_v19  ;;  %v2578_v43 = vld [vmem:[%s4837_s14 + $0x38] sm:$0xff] }
 0x145   : > { %v1698_v42 = vpop.f32.mrf.mxu2  ;;  %2374 = vmatmul.bf16.gmra.mxu3 %v4184_v16  ;;  %v2590_v6 = vpack.c.bf16 %v2578_v43, %v2577_v27 }
 0x146   : > { %v2099_v34 = vpop.f32.mrf.mxu1  ;;  %2504 = vmatmul.bf16.gmra.mxu0 %v4707_v51  ;;  %v1729_v53 = vadd.f32 %v1698_v42, %v4826_v23  ;;  %v2959_v51 = vmul.f32 -1.442695, %v4889_v45  ;;  %v2960_v23 = vmul.f32 -1.442695, %v4892_v38 }
 0x147   : > { %v4886_v30 = vadd.f32 %v2099_v34, %v1998_v20 }
 0x148   : > { %v1834_v5 = vpop.f32.mrf.mxu3  ;;  %3577 = vpow2.f32 %v2959_v51 }
 0x149   : > { %3355 = vmatmul.msk.bf16.gmra.mxu1 %vm2615_vm0, %v2589_v37  ;;  %v1865_v16 = vadd.f32 %v1834_v5, %v1729_v53  ;;  %3579 = vpow2.f32 %v2960_v23 }
 0x14b   : > { %v1966_v31 = vpop.f32.mrf.mxu0 }
 0x14c   : > { %v1999_v28 = vadd.f32 %v1966_v31, %v1864_v58 }
 0x14d   : > { %v1700_v4 = vpop.f32.mrf.mxu2 }
 0x14e   : > { %v2101_v56 = vpop.f32.mrf.mxu1  ;;  %v1730_v2 = vadd.f32 %v1700_v4, %v4831_v33  ;;  %v3578_v22 = vpop.eup %3577 }
 0x14f   : > { %v4898_v8 = vadd.f32 %v2101_v56, %v1999_v28  ;;  %v3580_v55 = vpop.eup %3579  ;;  %v742_v14 = vadd.f32 1.0, %v3578_v22  ;;  %v2580_v28 = vld [vmem:[%s4837_s14 + $0x48] sm:$0xff] }
 0x150   : > { %v1836_v62 = vpop.f32.mrf.mxu3  ;;  %v743_v18 = vadd.f32 1.0, %v3580_v55 }
 0x151   : > { %v1866_v17 = vadd.f32 %v1836_v62, %v1730_v2  ;;  %3581 = vrcp.f32 %v742_v14  ;;  %v1025_v23 = vand.u32 2147483648, %v742_v14  ;;  %vm1019_vm2 = vweird.f32 %v742_v14 }
 0x152   : > { %2244 = vmatmul.bf16.gmra.mxu2 %v4461_v59  ;;  %3583 = vrcp.f32 %v743_v18  ;;  %v1023_v56 = vand.u32 2147483647, %v742_v14  ;;  %vm1034_vm10 = vweird.f32 %v743_v18  ;;  %v1038_v43 = vand.u32 2147483647, %v743_v18 }
 0x153   : > { %v1969_v61 = vpop.f32.mrf.mxu0  ;;  %v1026_v62 = vor.u32 1.1754944e-38, %v1025_v23 }
 0x154   : > { %v2000_v49 = vadd.f32 %v1969_v61, %v1865_v16  ;;  %vm1024_vm12 = vcmp.eq.f32.partialorder %v1023_v56, 8.507059e+37  ;;  %vm1039_vm4 = vcmp.eq.f32.partialorder %v1038_v43, 8.507059e+37 }
 0x155   : > { %v1703_v44 = vpop.f32.mrf.mxu2  ;;  %2379 = vmatmul.bf16.gmra.mxu3 %v4453_v47  ;;  %v1545_v47 = vadd.f32 %v4703_v29, %v4692_v57  ;;  %v1040_v57 = vand.u32 2147483648, %v743_v18  ;;  %v2579_v29 = vld [vmem:[%s4837_s14 + $0x40] sm:$0xff] }
 0x156   : > { %v2104_v33 = vpop.f32.mrf.mxu1  ;;  %2509 = vmatmul.bf16.gmra.mxu0 %v4736_v36  ;;  %v1731_v58 = vadd.f32 %v1703_v44, %v4668_v9  ;;  %v2591_v55 = vpack.c.bf16 %v2580_v28, %v2579_v29 }
 0x157   : > { %v4906_v25 = vadd.f32 %v2104_v33, %v2000_v49  ;;  %v3582_v12 = vpop.eup %3581  ;;  %v1070_v33 = vstv %s1069_s11 }
 0x158   : > { %v1839_v59 = vpop.f32.mrf.mxu3  ;;  %v3584_v37 = vpop.eup %3583  ;;  %v1015_v54 = vmul.f32 %v3582_v12, %v742_v14  ;;  %vm1020_vm5 = vweird.f32 %v3582_v12  ;;  %v1041_v14 = vor.u32 1.1754944e-38, %v1040_v57  ;;  %vm1071_vm7 = vcmp.eq.s32.totalorder %v1070_v33, 1  ;;  %v2583_v33 = vld [vmem:[%s4837_s14 + $0x60] sm:$0xff] }
 0x159   : > { %3356 = vmatmul.msk.bf16.gmra.mxu1 %vm2615_vm0, %v2590_v6  ;;  %v1867_v39 = vadd.f32 %v1839_v59, %v1731_v58  ;;  %v1030_v9 = vmul.f32 %v3584_v37, %v743_v18  ;;  %vm1021_vm6 = vmor %vm1019_vm2, %vm1020_vm5  ;;  %vm1035_vm1 = vweird.f32 %v3584_v37 }
 0x15a   : > { %v1016_v53 = vsub.f32 1.0, %v1015_v54  ;;  %vm1036_vm3 = vmor %vm1034_vm10, %vm1035_vm1 }
 0x15b   : > { %v1971_v20 = vpop.f32.mrf.mxu0  ;;  %v1031_v48 = vsub.f32 1.0, %v1030_v9 }
 0x15c   : > { %v2001_v42 = vadd.f32 %v1971_v20, %v1866_v17  ;;  %v1017_v16 = vmul.f32 %v3582_v12, %v1016_v53  ;;  %v2581_v53 = vld [vmem:[%s4837_s14 + $0x50] sm:$0xff] }
 0x15d   : > { %v1705_v36 = vpop.f32.mrf.mxu2  ;;  %v1032_v31 = vmul.f32 %v3584_v37, %v1031_v48  ;;  %v2582_v48 = vld [vmem:[%s4837_s14 + $0x58] sm:$0xff] }
 0x15e   : > { %v2106_v0 = vpop.f32.mrf.mxu1  ;;  %v1732_v34 = vadd.f32 %v1705_v36, %v1545_v47  ;;  %v1018_v4 = vadd.f32 %v3582_v12, %v1017_v16 }
 0x15f   : > { %v4912_v19 = vadd.f32 %v2106_v0, %v2001_v42  ;;  %v1033_v17 = vadd.f32 %v3584_v37, %v1032_v31 }
 0x160   : > { %v1841_v5 = vpop.f32.mrf.mxu3  ;;  %v1022_v27 = vsel %vm1021_vm6, %v3582_v12, %v1018_v4 }
 0x161   : > { %v1868_v51 = vadd.f32 %v1841_v5, %v1732_v34  ;;  %v1037_v49 = vsel %vm1036_vm3, %v3584_v37, %v1033_v17 }
 0x162   : > { %2249 = vmatmul.bf16.gmra.mxu2 %v4559_v24  ;;  %v1027_v24 = vsel %vm1024_vm12, %v1026_v62, %v1022_v27  ;;  %v1042_v58 = vsel %vm1039_vm4, %v1041_v14, %v1037_v49 }
 0x163   : > { %v1974_v2 = vpop.f32.mrf.mxu0  ;;  %v1062_v18 = vmul.f32 %v1027_v24, %v4889_v45  ;;  %v1063_v12 = vmul.f32 %v1042_v58, %v4892_v38  ;;  %v2584_v58 = vld [vmem:[%s4837_s14 + $0x68] sm:$0xff] }
 0x164   : > { %v2002_v22 = vadd.f32 %v1974_v2, %v1867_v39 }
 0x165   : > { %v1708_v61 = vpop.f32.mrf.mxu2  ;;  %2384 = vmatmul.bf16.gmra.mxu3 %v4553_v26  ;;  %v1094_v37 = vsel %vm1071_vm7, %v1062_v18, 0.0  ;;  %v1095_v47 = vsel %vm1071_vm7, %v1063_v12, 0.0 }
 0x166   : > { %v2109_v6 = vpop.f32.mrf.mxu1  ;;  %2514 = vmatmul.bf16.gmra.mxu0 %v4767_v10  ;;  %v1733_v44 = vadd.f32 %v1708_v61, %v4722_v35  ;;  %v1550_v35 = vadd.f32 %v4763_v63, %v4757_v40  ;;  %v1105_v9 = vrot.slane %v1094_v37, 7  ;;  %v1115_v45 = vrot.slane %v1095_v47, 7 }
 0x167   : > { %v4922_v59 = vadd.f32 %v2109_v6, %v2002_v22  ;;  %v1218_v2 = vpack.c.bf16 %v1094_v37, %v1094_v37  ;;  %v1219_v62 = vpack.c.bf16 %v1095_v47, %v1095_v47  ;;  %v1148_v18 = vrot.slane %v1094_v37, 1 }
 0x168   : > { %v1844_v39 = vpop.f32.mrf.mxu3  ;;  %v1128_v40 = vsel %vm1118_vm8, %v1105_v9, %v1115_v45  ;;  %v1138_v63 = vsel %vm1118_vm8, %v1115_v45, %v1105_v9  ;;  %v1158_v12 = vrot.slane %v1095_v47, 1 }
 0x169   : > { %3357 = vmatmul.msk.bf16.gmra.mxu1 %vm2615_vm0, %v2591_v55  ;;  %v1869_v26 = vadd.f32 %v1844_v39, %v1733_v44  ;;  %v1198_v29 = vpack.c.bf16 %v1138_v63, %v1138_v63  ;;  %v1199_v28 = vpack.c.bf16 %v1128_v40, %v1128_v40  ;;  %v2300_v55 = vunpack.c.l.b16 %v1219_v62 }
 0x16b   : > { %v1976_v20 = vpop.f32.mrf.mxu0  ;;  %v2164_v17 = vunpack.c.l.b16 %v1198_v29  ;;  %v2165_v22 = vunpack.c.l.b16 %v1199_v28 }
 0x16c   : > { %v2003_v10 = vadd.f32 %v1976_v20, %v1868_v51  ;;  %v2592_v51 = vpack.c.bf16 %v2582_v48, %v2581_v53  ;;  %v2593_v20 = vpack.c.bf16 %v2584_v58, %v2583_v33 }
 0x16d   : > { %v1710_v42 = vpop.f32.mrf.mxu2  ;;  %v2166_v24 = vpack.c.b16 %v2165_v22, %v2164_v17 }
 0x16e   : > { %v2111_v54 = vpop.f32.mrf.mxu1  ;;  %v1734_v36 = vadd.f32 %v1710_v42, %v1550_v35  ;;  %v1169_v42 = vsel %vm1159_vm13, %v1148_v18, %v1158_v12 }
 0x16f   : > { %v4929_v34 = vadd.f32 %v2111_v54, %v2003_v10  ;;  %v1179_v54 = vsel %vm1159_vm13, %v1158_v12, %v1148_v18  ;;  %v1238_v47 = vpack.c.bf16 %v1169_v42, %v1169_v42 }
 0x170   : > { %v1846_v0 = vpop.f32.mrf.mxu3  ;;  %v1239_v45 = vpack.c.bf16 %v1179_v54, %v1179_v54 }
 0x171   : > { %v1870_v38 = vadd.f32 %v1846_v0, %v1734_v36  ;;  %v2434_v53 = vunpack.c.l.b16 %v1238_v47 }
 0x172   : > { %2254 = vmatmul.bf16.gmra.mxu2 %v4800_v7  ;;  %v2435_v48 = vunpack.c.l.b16 %v1239_v45 }
 0x173   : > { %v1979_v5 = vpop.f32.mrf.mxu0 }
 0x174   : > { %v2004_v16 = vadd.f32 %v1979_v5, %v1869_v26 }
 0x175   : > { %v1713_v23 = vpop.f32.mrf.mxu2  ;;  %2389 = vmatmul.bf16.gmra.mxu3 %v4818_v21 }
 0x176   : > { %v2114_v31 = vpop.f32.mrf.mxu1  ;;  %2519 = vmatmul.bf16.gmra.mxu0 %v4796_v41  ;;  %v1735_v57 = vadd.f32 %v1713_v23, %v4791_v46  ;;  %v2299_v41 = vunpack.c.l.b16 %v1218_v2  ;;  %v2586_v23 = vld [vmem:[%s4837_s14 + $0x78] sm:$0xff] }
 0x177   : > { %v4941_v7 = vadd.f32 %v2114_v31, %v2004_v16  ;;  %v2436_v16 = vpack.c.b16 %v2435_v48, %v2434_v53 }
 0x178   : > { %v1849_v4 = vpop.f32.mrf.mxu3  ;;  %v2301_v44 = vpack.c.b16 %v2300_v55, %v2299_v41  ;;  %v4972_v55 = vld [vmem:[%s5069_s6] ss:$0 sm:$0xff] }
 0x179   : > { %3358 = vmatmul.msk.bf16.gmra.mxu1 %vm2615_vm0, %v2592_v51  ;;  %v1871_v56 = vadd.f32 %v1849_v4, %v1735_v57  ;;  %v2585_v51 = vld [vmem:[%s4837_s14 + $0x70] sm:$0xff] }
 0x17a   : > { %v2594_v29 = vpack.c.bf16 %v2586_v23, %v2585_v51 }
 0x17b   : > { %v1981_v21 = vpop.f32.mrf.mxu0 }
 0x17c   : > { %v2005_v27 = vadd.f32 %v1981_v21, %v1870_v38 }
 0x17d   : > { %v1715_v43 = vpop.f32.mrf.mxu2 }
 0x17e   : > { %v2116_v46 = vpop.f32.mrf.mxu1  ;;  %v1736_v61 = vadd.f32 %v1715_v43, %v4798_v15 }
 0x17f   : > { %v4945_v49 = vadd.f32 %v2116_v46, %v2005_v27 }
 0x180   : > { %v1851_v14 = vpop.f32.mrf.mxu3 }
 0x181   : > { %v1872_v6 = vadd.f32 %v1851_v14, %v1736_v61  ;;  %v4977_v61 = vld [vmem:[%s5072_s9] ss:$0 sm:$0xff] }
 0x182   : > { %2259 = vmatmul.bf16.gmra.mxu2 %v2166_v24 }
 0x183   : > { %v1984_v39 = vpop.f32.mrf.mxu0 }
 0x184   : > { %v2006_v26 = vadd.f32 %v1984_v39, %v1871_v56 }
 0x185   : > { %v1718_v35 = vpop.f32.mrf.mxu2  ;;  %2394 = vmatmul.bf16.gmra.mxu3 %v2301_v44 }
 0x186   : > { %v2119_v10 = vpop.f32.mrf.mxu1  ;;  %2524 = vmatmul.bf16.gmra.mxu0 %v4821_v52  ;;  %v1737_v15 = vadd.f32 %v1718_v35, %v4808_v50 }
 0x187   : > { %v4955_v36 = vadd.f32 %v2119_v10, %v2006_v26 }
 0x188   : > { %v1854_v9 = vpop.f32.mrf.mxu3 }
 0x189   : > { %3359 = vmatmul.msk.bf16.gmra.mxu1 %vm2615_vm0, %v2593_v20  ;;  %v1873_v37 = vadd.f32 %v1854_v9, %v1737_v15 }
 0x18b   : > { %v1986_v0 = vpop.f32.mrf.mxu0 }
 0x18c   : > { %v2007_v52 = vadd.f32 %v1986_v0, %v1872_v6 }
 0x18d   : > { %v1720_v38 = vpop.f32.mrf.mxu2 }
 0x18e   : > { %v2121_v50 = vpop.f32.mrf.mxu1  ;;  %v1738_v5 = vadd.f32 %v1720_v38, %v4816_v1 }
 0x18f   : > { %v4959_v3 = vadd.f32 %v2121_v50, %v2007_v52 }
 0x190   : > { %v1856_v40 = vpop.f32.mrf.mxu3 }
 0x191   : > { %v1874_v63 = vadd.f32 %v1856_v40, %v1738_v5 }
 0x193   : > { %v1989_v31 = vpop.f32.mrf.mxu0 }
 0x194   : > { %v2008_v57 = vadd.f32 %v1989_v31, %v1873_v37 }
 0x195   : > { %v2225_v28 = vpop.f32.mrf.mxu2 }
 0x196   : > { %v2124_v4 = vpop.f32.mrf.mxu1  ;;  %2529 = vmatmul.bf16.gmra.mxu0 %v2436_v16  ;;  %v2265_v17 = vadd.f32 %v2225_v28, %v4845_v11 }
 0x197   : > { %v4963_v56 = vadd.f32 %v2124_v4, %v2008_v57 }
 0x198   : > { %v2360_v2 = vpop.f32.mrf.mxu3 }
 0x199   : > { %3360 = vmatmul.msk.bf16.gmra.mxu1 %vm2615_vm0, %v2594_v29  ;;  %v2400_v43 = vadd.f32 %v2360_v2, %v2265_v17 }
 0x19b   : > { %v1991_v62 = vpop.f32.mrf.mxu0 }
 0x19c   : > { %v2009_v1 = vadd.f32 %v1991_v62, %v1874_v63 }
 0x19d   : > { %v2227_v22 = vpop.f32.mrf.mxu2 }
 0x19e   : > { %v2126_v21 = vpop.f32.mrf.mxu1  ;;  %v2266_v11 = vadd.f32 %v2227_v22, %v4855_v13 }
 0x19f   : > { %v4967_v27 = vadd.f32 %v2126_v21, %v2009_v1 }
 0x1a0   : > { %v2362_v41 = vpop.f32.mrf.mxu3 }
 0x1a1   : > { %v2401_v58 = vadd.f32 %v2362_v41, %v2266_v11 }
 0x1a3   : > { %v2495_v46 = vpop.f32.mrf.mxu0 }
 0x1a4   : > { %v2535_v24 = vadd.f32 %v2495_v46, %v2400_v43 }
 0x1a5   : > { %v2230_v14 = vpop.f32.mrf.mxu2 }
 0x1a6   : > { %v2649_v6 = vpop.f32.mrf.mxu1  ;;  %v2555_v44 = vadd.f32 %v4972_v55, %v2535_v24  ;;  %v2267_v13 = vadd.f32 %v2230_v14, %v4867_v60 }
 0x1a7   : > { %v2650_v33 = vadd.f32 %v4977_v61, %v2649_v6 }
 0x1a8   : > { %v2365_v39 = vpop.f32.mrf.mxu3 }
 0x1a9   : > { %v2689_v18 = vadd.f32 %v2650_v33, %v2555_v44  ;;  %v2402_v42 = vadd.f32 %v2365_v39, %v2267_v13 }
 0x1ab   : > { %2705 = vst [vmem:[%s4986_s22] sm:$0xff] %v2689_v18  ;;  %v2497_v12 = vpop.f32.mrf.mxu0 }
 0x1ac   : > { %v2536_v26 = vadd.f32 %v2497_v12, %v2401_v58 }
 0x1ad   : > { %v2232_v20 = vpop.f32.mrf.mxu2 }
 0x1ae   : > { %v2651_v35 = vpop.f32.mrf.mxu1  ;;  %v2556_v10 = vadd.f32 %v4972_v55, %v2536_v26  ;;  %v2268_v45 = vadd.f32 %v2232_v20, %v4873_v32 }
 0x1af   : > { %v2652_v15 = vadd.f32 %v4977_v61, %v2651_v35 }
 0x1b0   : > { %v2367_v54 = vpop.f32.mrf.mxu3 }
 0x1b1   : > { %v2690_v9 = vadd.f32 %v2652_v15, %v2556_v10  ;;  %v2403_v50 = vadd.f32 %v2367_v54, %v2268_v45 }
 0x1b3   : > { %2706 = vst [vmem:[%s4986_s22 + $0x8] sm:$0xff] %v2690_v9  ;;  %v2500_v37 = vpop.f32.mrf.mxu0 }
 0x1b4   : > { %v2537_v47 = vadd.f32 %v2500_v37, %v2402_v42 }
 0x1b5   : > { %v2235_v0 = vpop.f32.mrf.mxu2 }
 0x1b6   : > { %v2654_v52 = vpop.f32.mrf.mxu1  ;;  %v2557_v38 = vadd.f32 %v4972_v55, %v2537_v47  ;;  %v2269_v63 = vadd.f32 %v2235_v0, %v4886_v30 }
 0x1b7   : > { %v2655_v60 = vadd.f32 %v4977_v61, %v2654_v52 }
 0x1b8   : > { %v2370_v53 = vpop.f32.mrf.mxu3 }
 0x1b9   : > { %v2691_v48 = vadd.f32 %v2655_v60, %v2557_v38  ;;  %v2404_v31 = vadd.f32 %v2370_v53, %v2269_v63 }
 0x1bb   : > { %2707 = vst [vmem:[%s4986_s22 + $0x10] sm:$0xff] %v2691_v48  ;;  %v2502_v5 = vpop.f32.mrf.mxu0 }
 0x1bc   : > { %v2538_v40 = vadd.f32 %v2502_v5, %v2403_v50 }
 0x1bd   : > { %v2237_v16 = vpop.f32.mrf.mxu2 }
 0x1be   : > { %v2656_v51 = vpop.f32.mrf.mxu1  ;;  %v2558_v23 = vadd.f32 %v4972_v55, %v2538_v40  ;;  %v2270_v2 = vadd.f32 %v2237_v16, %v4898_v8 }
 0x1bf   : > { %v2657_v32 = vadd.f32 %v4977_v61, %v2656_v51 }
 0x1c0   : > { %v2372_v57 = vpop.f32.mrf.mxu3 }
 0x1c1   : > { %v2692_v29 = vadd.f32 %v2657_v32, %v2558_v23  ;;  %v2405_v22 = vadd.f32 %v2372_v57, %v2270_v2 }
 0x1c3   : > { %2708 = vst [vmem:[%s4986_s22 + $0x18] sm:$0xff] %v2692_v29  ;;  %v2505_v28 = vpop.f32.mrf.mxu0 }
 0x1c4   : > { %v2539_v4 = vadd.f32 %v2505_v28, %v2404_v31 }
 0x1c5   : > { %v2240_v62 = vpop.f32.mrf.mxu2 }
 0x1c6   : > { %v2659_v1 = vpop.f32.mrf.mxu1  ;;  %v2559_v17 = vadd.f32 %v4972_v55, %v2539_v4  ;;  %v2271_v24 = vadd.f32 %v2240_v62, %v4906_v25 }
 0x1c7   : > { %v2660_v30 = vadd.f32 %v4977_v61, %v2659_v1 }
 0x1c8   : > { %v2375_v21 = vpop.f32.mrf.mxu3 }
 0x1c9   : > { %v2693_v43 = vadd.f32 %v2660_v30, %v2559_v17  ;;  %v2406_v44 = vadd.f32 %v2375_v21, %v2271_v24 }
 0x1cb   : > { %2709 = vst [vmem:[%s4986_s22 + $0x20] sm:$0xff] %v2693_v43  ;;  %v2507_v41 = vpop.f32.mrf.mxu0 }
 0x1cc   : > { %v2540_v46 = vadd.f32 %v2507_v41, %v2405_v22 }
 0x1cd   : > { %v2242_v11 = vpop.f32.mrf.mxu2 }
 0x1ce   : > { %v2661_v14 = vpop.f32.mrf.mxu1  ;;  %v2560_v6 = vadd.f32 %v4972_v55, %v2540_v46  ;;  %v2272_v12 = vadd.f32 %v2242_v11, %v4912_v19 }
 0x1cf   : > { %v2662_v8 = vadd.f32 %v4977_v61, %v2661_v14 }
 0x1d0   : > { %v2377_v33 = vpop.f32.mrf.mxu3 }
 0x1d1   : > { %v2694_v58 = vadd.f32 %v2662_v8, %v2560_v6  ;;  %v2407_v35 = vadd.f32 %v2377_v33, %v2272_v12 }
 0x1d3   : > { %2710 = vst [vmem:[%s4986_s22 + $0x28] sm:$0xff] %v2694_v58  ;;  %v2510_v39 = vpop.f32.mrf.mxu0 }
 0x1d4   : > { %v2541_v18 = vadd.f32 %v2510_v39, %v2406_v44 }
 0x1d5   : > { %v2245_v26 = vpop.f32.mrf.mxu2 }
 0x1d6   : > { %v2664_v13 = vpop.f32.mrf.mxu1  ;;  %v2561_v20 = vadd.f32 %v4972_v55, %v2541_v18  ;;  %v2273_v9 = vadd.f32 %v2245_v26, %v4922_v59 }
 0x1d7   : > { %v2665_v25 = vadd.f32 %v4977_v61, %v2664_v13 }
 0x1d8   : > { %v2380_v10 = vpop.f32.mrf.mxu3 }
 0x1d9   : > { %v2695_v15 = vadd.f32 %v2665_v25, %v2561_v20  ;;  %v2408_v0 = vadd.f32 %v2380_v10, %v2273_v9 }
 0x1db   : > { %2711 = vst [vmem:[%s4986_s22 + $0x30] sm:$0xff] %v2695_v15  ;;  %v2512_v42 = vpop.f32.mrf.mxu0 }
 0x1dc   : > { %v2542_v54 = vadd.f32 %v2512_v42, %v2407_v35 }
 0x1dd   : > { %v2247_v37 = vpop.f32.mrf.mxu2 }
 0x1de   : > { %v2666_v47 = vpop.f32.mrf.mxu1  ;;  %v2562_v45 = vadd.f32 %v4972_v55, %v2542_v54  ;;  %v2274_v53 = vadd.f32 %v2247_v37, %v4929_v34 }
 0x1df   : > { %v2667_v19 = vadd.f32 %v4977_v61, %v2666_v47 }
 0x1e0   : > { %v2382_v52 = vpop.f32.mrf.mxu3 }
 0x1e1   : > { %v2696_v38 = vadd.f32 %v2667_v19, %v2562_v45  ;;  %v2409_v63 = vadd.f32 %v2382_v52, %v2274_v53 }
 0x1e3   : > { %2712 = vst [vmem:[%s4986_s22 + $0x38] sm:$0xff] %v2696_v38  ;;  %v2515_v60 = vpop.f32.mrf.mxu0 }
 0x1e4   : > { %v2543_v50 = vadd.f32 %v2515_v60, %v2408_v0 }
 0x1e5   : > { %v2250_v48 = vpop.f32.mrf.mxu2 }
 0x1e6   : > { %v2669_v5 = vpop.f32.mrf.mxu1  ;;  %v2563_v40 = vadd.f32 %v4972_v55, %v2543_v50  ;;  %v2275_v31 = vadd.f32 %v2250_v48, %v4941_v7 }
 0x1e7   : > { %v2670_v59 = vadd.f32 %v4977_v61, %v2669_v5 }
 0x1e8   : > { %v2385_v16 = vpop.f32.mrf.mxu3 }
 0x1e9   : > { %v2697_v51 = vadd.f32 %v2670_v59, %v2563_v40  ;;  %v2410_v4 = vadd.f32 %v2385_v16, %v2275_v31 }
 0x1eb   : > { %2713 = vst [vmem:[%s4986_s22 + $0x40] sm:$0xff] %v2697_v51  ;;  %v2517_v23 = vpop.f32.mrf.mxu0 }
 0x1ec   : > { %v2544_v32 = vadd.f32 %v2517_v23, %v2409_v63 }
 0x1ed   : > { %v2252_v57 = vpop.f32.mrf.mxu2 }
 0x1ee   : > { %v2671_v29 = vpop.f32.mrf.mxu1  ;;  %v2564_v28 = vadd.f32 %v4972_v55, %v2544_v32  ;;  %v2276_v30 = vadd.f32 %v2252_v57, %v4945_v49 }
 0x1ef   : > { %v2672_v34 = vadd.f32 %v4977_v61, %v2671_v29 }
 0x1f0   : > { %v2387_v2 = vpop.f32.mrf.mxu3 }
 0x1f1   : > { %v2698_v62 = vadd.f32 %v2672_v34, %v2564_v28  ;;  %v2411_v41 = vadd.f32 %v2387_v2, %v2276_v30 }
 0x1f3   : > { %2714 = vst [vmem:[%s4986_s22 + $0x48] sm:$0xff] %v2698_v62  ;;  %v2520_v1 = vpop.f32.mrf.mxu0 }
 0x1f4   : > { %v2545_v17 = vadd.f32 %v2520_v1, %v2410_v4 }
 0x1f5   : > { %v2255_v22 = vpop.f32.mrf.mxu2 }
 0x1f6   : > { %v2674_v21 = vpop.f32.mrf.mxu1  ;;  %v2565_v43 = vadd.f32 %v4972_v55, %v2545_v17  ;;  %v2277_v6 = vadd.f32 %v2255_v22, %v4955_v36 }
 0x1f7   : > { %v2675_v7 = vadd.f32 %v4977_v61, %v2674_v21 }
 0x1f8   : > { %v2390_v46 = vpop.f32.mrf.mxu3 }
 0x1f9   : > { %v2699_v24 = vadd.f32 %v2675_v7, %v2565_v43  ;;  %v2412_v58 = vadd.f32 %v2390_v46, %v2277_v6 }
 0x1fb   : > { %2715 = vst [vmem:[%s4986_s22 + $0x50] sm:$0xff] %v2699_v24  ;;  %v2522_v11 = vpop.f32.mrf.mxu0 }
 0x1fc   : > { %v2546_v14 = vadd.f32 %v2522_v11, %v2411_v41 }
 0x1fd   : > { %v2257_v8 = vpop.f32.mrf.mxu2 }
 0x1fe   : > { %v2676_v44 = vpop.f32.mrf.mxu1  ;;  %v2566_v49 = vadd.f32 %v4972_v55, %v2546_v14  ;;  %v2278_v13 = vadd.f32 %v2257_v8, %v4959_v3 }
 0x1ff   : > { %v2677_v33 = vadd.f32 %v4977_v61, %v2676_v44 }
 0x200   : > { %v2392_v18 = vpop.f32.mrf.mxu3 }
 0x201   : > { %v2700_v39 = vadd.f32 %v2677_v33, %v2566_v49  ;;  %v2413_v10 = vadd.f32 %v2392_v18, %v2278_v13 }
 0x203   : > { %2716 = vst [vmem:[%s4986_s22 + $0x58] sm:$0xff] %v2700_v39  ;;  %v2525_v12 = vpop.f32.mrf.mxu0 }
 0x204   : > { %v2547_v26 = vadd.f32 %v2525_v12, %v2412_v58 }
 0x205   : > { %v2260_v35 = vpop.f32.mrf.mxu2 }
 0x206   : > { %v2679_v20 = vpop.f32.mrf.mxu1  ;;  %v2567_v25 = vadd.f32 %v4972_v55, %v2547_v26  ;;  %v2279_v37 = vadd.f32 %v2260_v35, %v4963_v56 }
 0x207   : > { %v2680_v36 = vadd.f32 %v4977_v61, %v2679_v20 }
 0x208   : > { %v2395_v54 = vpop.f32.mrf.mxu3 }
 0x209   : > { %v2701_v15 = vadd.f32 %v2680_v36, %v2567_v25  ;;  %v2414_v19 = vadd.f32 %v2395_v54, %v2279_v37 }
 0x20b   : > { %2717 = vst [vmem:[%s4986_s22 + $0x60] sm:$0xff] %v2701_v15  ;;  %v2527_v42 = vpop.f32.mrf.mxu0 }
 0x20c   : > { %v2548_v9 = vadd.f32 %v2527_v42, %v2413_v10 }
 0x20d   : > { %v2262_v52 = vpop.f32.mrf.mxu2 }
 0x20e   : > { %v2681_v47 = vpop.f32.mrf.mxu1  ;;  %v2568_v45 = vadd.f32 %v4972_v55, %v2548_v9  ;;  %v2280_v50 = vadd.f32 %v2262_v52, %v4967_v27 }
 0x20f   : > { %v2682_v3 = vadd.f32 %v4977_v61, %v2681_v47 }
 0x210   : > { %v2397_v53 = vpop.f32.mrf.mxu3 }
 0x211   : > { %v2702_v0 = vadd.f32 %v2682_v3, %v2568_v45  ;;  %v2415_v40 = vadd.f32 %v2397_v53, %v2280_v50 }
 0x213   : > { %2718 = vst [vmem:[%s4986_s22 + $0x68] sm:$0xff] %v2702_v0  ;;  %v2530_v38 = vpop.f32.mrf.mxu0 }
 0x214   : > { %v2549_v60 = vadd.f32 %v2530_v38, %v2414_v19 }
 0x216   : > { %v2684_v48 = vpop.f32.mrf.mxu1  ;;  %v2569_v5 = vadd.f32 %v4972_v55, %v2549_v60 }
 0x217   : > { %v2685_v56 = vadd.f32 %v4977_v61, %v2684_v48 }
 0x219   : > { %v2703_v59 = vadd.f32 %v2685_v56, %v2569_v5 }
 0x21b   : > { %2719 = vst [vmem:[%s4986_s22 + $0x70] sm:$0xff] %v2703_v59  ;;  %v2532_v63 = vpop.f32.mrf.mxu0 }
 0x21c   : > { %v2550_v16 = vadd.f32 %v2532_v63, %v2415_v40 }
 0x21e   : > { %v2686_v51 = vpop.f32.mrf.mxu1  ;;  %v2570_v23 = vadd.f32 %v4972_v55, %v2550_v16 }
 0x21f   : > { %v2687_v32 = vadd.f32 %v4977_v61, %v2686_v51 }
 0x221   : > { %v2704_v31 = vadd.f32 %v2687_v32, %v2570_v23 }
 0x223   : > { %2720 = vst [vmem:[%s4986_s22 + $0x78] sm:$0xff] %v2704_v31 }
 0x224 PF: > { %s20_s17 = sadd.s32 1, %s3625_s17   ;;  %s5134_s30 = sld [smem:[#allocation2_spill]] }
 0x225   : > { %p17_p12 = scmp.ge.s32.totalorder %s20_s17, 6   ;;  %s5135_s13 = smov %s3617_s15 }
 0x226   : > { %s5136_s14 = smov %s3621_s16  ;;  %s5137_s15 = smov %s5140_s18 }
 0x227   :  { %19 = sbr.rel (!%p17_p12) target bundleno = 3 (0x3), region = 107 }
 0x22a   : > { %s5138_s16 = smov %s5134_s30 }

</bundles_post_ra>
